<compile_context>
chip_gen: v7x
topology: tpu7x:2x2x1
jax: 0.10.0
libtpu: 0.0.40
codegen_flags: <defaults>
</compile_context>

<pallas_src>
import functools

import jax
import jax.numpy as jnp
from jax.experimental import pallas as pl
from jax.experimental.pallas import tpu as pltpu


def _policy_kernel(x_ref, w1_ref, b1_ref, w2_ref, b2_ref, wht_ref, part_ref):
    # h1 = relu(x @ W1 + b1)                         (B, H) f32 -- tiny (in_dim x H)
    x_bf = x_ref[...].astype(jnp.bfloat16)
    h1 = jnp.dot(x_bf, w1_ref[...],
                 preferred_element_type=jnp.float32) + b1_ref[...]
    h1 = jnp.maximum(h1, 0.0)

    # h2 j-panel = relu(h1 @ W2[:, j_block] + b2[j_block])      (B, Hj) f32
    h2 = jnp.dot(h1.astype(jnp.bfloat16), w2_ref[...],
                 preferred_element_type=jnp.float32) + b2_ref[...]
    h2 = jnp.maximum(h2, 0.0)

    # Fused, lane-dense actor|critic head: partial (over this j-panel of H) of
    # h2 @ [Wa | Wc].  Head weights are stored transposed as (A+1, H), so contract
    # the last dims of both operands (q @ k^T pattern).
    part = jax.lax.dot_general(
        h2.astype(jnp.bfloat16), wht_ref[...],
        dimension_numbers=(((1,), (1,)), ((), ())),
        preferred_element_type=jnp.float32)            # (B, A+1)
    part_ref[...] = part[None].astype(part_ref.dtype)


@functools.partial(jax.jit, static_argnames=("n_j",))
def policy_network_forward(x, params, *, n_j=2):
    """x: (B, in_features) f32.  params: see init_params (bf16 weights, f32 biases).

    Returns (action (B, n_actions), value (B, 1)), both f32."""
    w1, b1, w2, b2, wh_t, bh = params
    B, in_dim = x.shape
    H = w1.shape[1]            # 2048
    Ap1 = wh_t.shape[0]        # n_actions + 1

    assert H % n_j == 0, "hidden width must divide n_j"
    Hj = H // n_j
    assert H % 128 == 0 and Hj % 128 == 0, "panels must stay lane-aligned (128)"

    grid_spec = pltpu.PrefetchScalarGridSpec(
        num_scalar_prefetch=0,
        grid=(n_j,),
        in_specs=[
            pl.BlockSpec((B, in_dim), lambda j: (0, 0)),    # x        (full, resident)
            pl.BlockSpec((in_dim, H), lambda j: (0, 0)),    # W1       (full, tiny)
            pl.BlockSpec((1, H), lambda j: (0, 0)),         # b1
            pl.BlockSpec((H, Hj), lambda j: (0, j)),        # W2 column panel (4 MiB bf16)
            pl.BlockSpec((1, Hj), lambda j: (0, j)),        # b2 panel
            pl.BlockSpec((Ap1, Hj), lambda j: (0, j)),      # [Wa|Wc]^T panel (lane-dense)
        ],
        out_specs=pl.BlockSpec((1, B, Ap1), lambda j: (j, 0, 0)),  # per-j head partial
    )

    partials = pl.pallas_call(
        _policy_kernel,
        out_shape=jax.ShapeDtypeStruct((n_j, B, Ap1), jnp.float32),
        grid_spec=grid_spec,
        compiler_params=pltpu.CompilerParams(
            dimension_semantics=("parallel",),   # j -> megacore split on v7x,
                                                 # 2-step DMA/compute pipeline otherwise
            vmem_limit_bytes=32 << 20,           # ~8.5 MiB actual; v7x-safe (64 MiB phys)
        ),
    )(x, w1, b1, w2, b2, wh_t)

    head = partials.sum(axis=0) + bh             # (B, A+1) -- trivial epilogue
    A = Ap1 - 1
    return head[:, :A], head[:, A:]              # (action, value)


def init_params(key, in_dim, hidden, n_actions):
    """torch.nn.Linear-style init U(-1/sqrt(fan_in), 1/sqrt(fan_in)).

    Weights stored (in_features, out_features) in bf16; biases f32 (1, out).
    Actor/critic heads are fused ONCE here and stored transposed (lane-dense)
    as wh_t: (n_actions+1, hidden) with fused bias bh: (1, n_actions+1)."""
    def linear(k, fan_in, fan_out):
        kw, kb = jax.random.split(k)
        bound = 1.0 / jnp.sqrt(jnp.float32(fan_in))
        w = jax.random.uniform(kw, (fan_in, fan_out), jnp.float32, -bound, bound)
        b = jax.random.uniform(kb, (1, fan_out), jnp.float32, -bound, bound)
        return w, b

    k1, k2, k3, k4 = jax.random.split(key, 4)
    w1, b1 = linear(k1, in_dim, hidden)
    w2, b2 = linear(k2, hidden, hidden)
    wa, ba = linear(k3, hidden, n_actions)
    wc, bc = linear(k4, hidden, 1)

    wh_t = jnp.concatenate([wa, wc], axis=1).T          # (n_actions+1, hidden)
    bh = jnp.concatenate([ba, bc], axis=1)              # (1, n_actions+1)

    return (w1.astype(jnp.bfloat16), b1,
            w2.astype(jnp.bfloat16), b2,
            wh_t.astype(jnp.bfloat16), bh)


def reference_forward(x, params):
    """Plain-JAX reference with the same dtypes (bf16 weights, f32 accumulation)."""
    w1, b1, w2, b2, wh_t, bh = params
    h1 = jnp.maximum(
        jnp.dot(x.astype(jnp.bfloat16), w1, preferred_element_type=jnp.float32) + b1, 0.0)
    h2 = jnp.maximum(
        jnp.dot(h1.astype(jnp.bfloat16), w2, preferred_element_type=jnp.float32) + b2, 0.0)
    head = jnp.dot(h2.astype(jnp.bfloat16), wh_t.T,
                   preferred_element_type=jnp.float32) + bh
    A = wh_t.shape[0] - 1
    return head[:, :A], head[:, A:]


if __name__ == "__main__":
    # Small, module-consistent shapes: input_shape=(8,), n_actions=4, batch=8.
    B, IN_DIM, HIDDEN, N_ACTIONS = 8, 8, 2048, 4

    key = jax.random.PRNGKey(0)
    kx, kp = jax.random.split(key)
    x = jax.random.normal(kx, (B, IN_DIM), dtype=jnp.float32)
    params = init_params(kp, IN_DIM, HIDDEN, N_ACTIONS)

    action, value = policy_network_forward(x, params)
    action = jax.block_until_ready(action)
    value = jax.block_until_ready(value)

    # Correctness check against a plain-JAX reference of the same forward pass.
    ref_action, ref_value = reference_forward(x, params)
    assert action.shape == (B, N_ACTIONS) and value.shape == (B, 1)
    assert jnp.allclose(action, ref_action, atol=2e-2, rtol=2e-2)
    assert jnp.allclose(value, ref_value, atol=2e-2, rtol=2e-2)

    print("KERNEL_OK")
</pallas_src>

<mosaic_0001>
module attributes {stable_mosaic.version = 11 : i64} {
  func.func @_policy_kernel(%arg0: i32, %arg1: memref<8x8xf32, #tpu.memory_space<vmem>>, %arg2: memref<8x2048xbf16, #tpu.memory_space<vmem>>, %arg3: memref<1x2048xf32, #tpu.memory_space<vmem>>, %arg4: memref<2048x1024xbf16, #tpu.memory_space<vmem>>, %arg5: memref<1x1024xf32, #tpu.memory_space<vmem>>, %arg6: memref<5x1024xbf16, #tpu.memory_space<vmem>>, %arg7: memref<1x8x5xf32, #tpu.memory_space<vmem>>) attributes {dimension_semantics = [#tpu.dimension_semantics<parallel>], iteration_bounds = array<i64: 2>, scalar_prefetch = 0 : i64, scratch_operands = 0 : i64, tpu.core_type = #tpu.core_type<tc>, window_params = [{pipeline_mode = #tpu.pipeline_mode<synchronous>, transform_indices = @transform_0, window_bounds = array<i64: 8, 8>}, {pipeline_mode = #tpu.pipeline_mode<synchronous>, transform_indices = @transform_1, window_bounds = array<i64: 8, 2048>}, {pipeline_mode = #tpu.pipeline_mode<synchronous>, transform_indices = @transform_2, window_bounds = array<i64: 1, 2048>}, {transform_indices = @transform_3, window_bounds = array<i64: 2048, 1024>}, {transform_indices = @transform_4, window_bounds = array<i64: 1, 1024>}, {transform_indices = @transform_5, window_bounds = array<i64: 5, 1024>}, {transform_indices = @transform_6, window_bounds = array<i64: 1, 8, 5>}]} {
    %c0 = arith.constant 0 : index
    %c0_0 = arith.constant 0 : index
    %0 = vector.load %arg1[%c0, %c0_0] : memref<8x8xf32, #tpu.memory_space<vmem>>, vector<8x8xf32>
    %1 = arith.truncf %0 : vector<8x8xf32> to vector<8x8xbf16>
    %c0_1 = arith.constant 0 : index
    %c0_2 = arith.constant 0 : index
    %2 = vector.load %arg2[%c0_1, %c0_2] : memref<8x2048xbf16, #tpu.memory_space<vmem>>, vector<8x2048xbf16>
    %cst = arith.constant dense<0.000000e+00> : vector<8x2048xf32>
    %3 = tpu.matmul %1, %2, %cst {dimension_numbers = #tpu.dot_dimension_numbers<[1], [0], [0], [1], [0, 0, 1, 1], [], []>} : vector<8x8xbf16>, vector<8x2048xbf16>, vector<8x2048xf32> -> vector<8x2048xf32>
    %c0_3 = arith.constant 0 : index
    %c0_4 = arith.constant 0 : index
    %4 = vector.load %arg3[%c0_3, %c0_4] : memref<1x2048xf32, #tpu.memory_space<vmem>>, vector<1x2048xf32>
    %5 = vector.broadcast %4 : vector<1x2048xf32> to vector<8x2048xf32>
    %6 = arith.addf %3, %5 : vector<8x2048xf32>
    %cst_5 = arith.constant 0.000000e+00 : f32
    %7 = vector.broadcast %cst_5 : f32 to vector<8x2048xf32>
    %8 = arith.maximumf %6, %7 : vector<8x2048xf32>
    %9 = arith.truncf %8 : vector<8x2048xf32> to vector<8x2048xbf16>
    %c0_6 = arith.constant 0 : index
    %c0_7 = arith.constant 0 : index
    %10 = vector.load %arg4[%c0_6, %c0_7] : memref<2048x1024xbf16, #tpu.memory_space<vmem>>, vector<2048x1024xbf16>
    %cst_8 = arith.constant dense<0.000000e+00> : vector<8x1024xf32>
    %11 = tpu.matmul %9, %10, %cst_8 {dimension_numbers = #tpu.dot_dimension_numbers<[1], [0], [0], [1], [0, 0, 1, 1], [], []>} : vector<8x2048xbf16>, vector<2048x1024xbf16>, vector<8x1024xf32> -> vector<8x1024xf32>
    %c0_9 = arith.constant 0 : index
    %c0_10 = arith.constant 0 : index
    %12 = vector.load %arg5[%c0_9, %c0_10] : memref<1x1024xf32, #tpu.memory_space<vmem>>, vector<1x1024xf32>
    %13 = vector.broadcast %12 : vector<1x1024xf32> to vector<8x1024xf32>
    %14 = arith.addf %11, %13 : vector<8x1024xf32>
    %cst_11 = arith.constant 0.000000e+00 : f32
    %15 = vector.broadcast %cst_11 : f32 to vector<8x1024xf32>
    %16 = arith.maximumf %14, %15 : vector<8x1024xf32>
    %17 = arith.truncf %16 : vector<8x1024xf32> to vector<8x1024xbf16>
    %c0_12 = arith.constant 0 : index
    %c0_13 = arith.constant 0 : index
    %18 = vector.load %arg6[%c0_12, %c0_13] : memref<5x1024xbf16, #tpu.memory_space<vmem>>, vector<5x1024xbf16>
    %cst_14 = arith.constant dense<0.000000e+00> : vector<8x5xf32>
    %19 = tpu.matmul %17, %18, %cst_14 {dimension_numbers = #tpu.dot_dimension_numbers<[1], [1], [0], [0], [0, 0, 1, 0], [], []>} : vector<8x1024xbf16>, vector<5x1024xbf16>, vector<8x5xf32> -> vector<8x5xf32>
    %20 = vector.shape_cast %19 : vector<8x5xf32> to vector<1x8x5xf32>
    %c0_15 = arith.constant 0 : index
    %c0_16 = arith.constant 0 : index
    %c0_17 = arith.constant 0 : index
    %21 = vector.load %arg7[%c0_15, %c0_16, %c0_17] : memref<1x8x5xf32, #tpu.memory_space<vmem>>, vector<1x8x5xf32>
    tpu.vector_store %arg7[%c0_15, %c0_16, %c0_17], %20 {strides = array<i32>} : memref<1x8x5xf32, #tpu.memory_space<vmem>>, vector<1x8x5xf32>,
    return
  }
  func.func @transform_0(%arg0: i32) -> (i32, i32) {
    %c0_i32 = arith.constant 0 : i32
    %c0_i32_0 = arith.constant 0 : i32
    %c0_i32_1 = arith.constant 0 : i32
    return %c0_i32, %c0_i32_0 : i32, i32
  }
  func.func @transform_1(%arg0: i32) -> (i32, i32) {
    %c0_i32 = arith.constant 0 : i32
    %c0_i32_0 = arith.constant 0 : i32
    %c0_i32_1 = arith.constant 0 : i32
    return %c0_i32, %c0_i32_0 : i32, i32
  }
  func.func @transform_2(%arg0: i32) -> (i32, i32) {
    %c0_i32 = arith.constant 0 : i32
    %c0_i32_0 = arith.constant 0 : i32
    %c0_i32_1 = arith.constant 0 : i32
    return %c0_i32, %c0_i32_0 : i32, i32
  }
  func.func @transform_3(%arg0: i32) -> (i32, i32) {
    %c0_i32 = arith.constant 0 : i32
    %c0_i32_0 = arith.constant 0 : i32
    return %c0_i32, %arg0 : i32, i32
  }
  func.func @transform_4(%arg0: i32) -> (i32, i32) {
    %c0_i32 = arith.constant 0 : i32
    %c0_i32_0 = arith.constant 0 : i32
    return %c0_i32, %arg0 : i32, i32
  }
  func.func @transform_5(%arg0: i32) -> (i32, i32) {
    %c0_i32 = arith.constant 0 : i32
    %c0_i32_0 = arith.constant 0 : i32
    return %c0_i32, %arg0 : i32, i32
  }
  func.func @transform_6(%arg0: i32) -> (i32, i32, i32) {
    %c0_i32 = arith.constant 0 : i32
    %c0_i32_0 = arith.constant 0 : i32
    %c0_i32_1 = arith.constant 0 : i32
    return %arg0, %c0_i32, %c0_i32_0 : i32, i32, i32
  }
}

</mosaic_0001>

<bundles_post_ra>
// kernel: policy_network_forward.1
= control target key start
LH: loop header
LB: loop body
LE: loop exit
PB: predicated region body
PF: predicated region fallthrough
CT: control target
= control target key end

     0   :  { %s11945_s0 = inlined_call_operand.hbm [shape: f32[8,8], index: 0, kind: input, shape index: {}]   ;;  %s11946_s1 = inlined_call_operand.hbm [shape: bf16[8,2048], index: 1, kind: input, shape index: {}]   ;;  %s11947_s2 = inlined_call_operand.hbm [shape: f32[1,2048], index: 2, kind: input, shape index: {}]   ;;  %s11948_s3 = inlined_call_operand.hbm [shape: bf16[2048,2048], index: 3, kind: input, shape index: {}]   ;;  %s11949_s4 = inlined_call_operand.hbm [shape: f32[1,2048], index: 4, kind: input, shape index: {}]   ;;  %s11950_s5 = inlined_call_operand.hbm [shape: bf16[5,2048], index: 5, kind: input, shape index: {}]   ;;  %s11951_s6 = inlined_call_operand.vmem [shape: f32[2,8,5], index: 6, kind: output, shape index: {}]  }
   0x1   :  { %11967 = sst [smem:[#allocation19_spill]] %s11946_s1 }
   0x2   :  { %11968 = sst [smem:[#allocation20_spill]] %s11948_s3 }
   0x3   :  { %11969 = sst [smem:[#allocation21_spill]] %s11951_s6 }
   0x4   :  { %11 = vsyncpa [#allocation3], 0 }
   0x5   :  { %12 = vsyncpa [#allocation5], 0 }
   0x6   :  { %13 = vsyncpa [#allocation8], 0 }
   0x7   :  { %15 = vsyncpa [#allocation8 + $0x1], 0 }
   0x8   :  { %16 = vsyncpa [#allocation11], 0 }
   0x9   :  { %18 = vsyncpa [#allocation11 + $0x1], 0  ;;  %s10380_s21 = smov 0   ;;  %s10382_s22 = smov 0  }
   0xa   :  { %s10384_s23 = smov 0   ;;  %s10386_s24 = smov 0  }
   0xb LB: > { %11970 = sst [smem:[#allocation16_spill]] %s10329_s23  ;;  %s10399_s25 = sadd.s32 4294967295, %s10333_s24   ;;  %s10333_s24 = sphi %s10386_s24, %s11996_s24   ;;  %s10329_s23 = sphi %s10384_s23, %s11998_s23   ;;  %s10325_s22 = sphi %s10382_s22, %s12000_s22   ;;  %s10321_s21 = sphi %s10380_s21, %s11999_s21  }
   0xc   : > { %s10402_s26 = sadd.s32 1, %s10333_s24   ;;  %s94_s28 = sadd.s32 1, %s10329_s23 }
   0xd   : > { %11971 = sst [smem:[#allocation17_spill]] %s10402_s26  ;;  %s91_s27 = ssub.s32 %s10333_s24, %s10402_s26 }
   0xe   : > { %p92_p0 = scmp.eq.s32.totalorder %s91_s27, 0  ;;  %p101_p1 = scmp.ne.s32.totalorder %s10329_s23, %s10325_s22 }
   0xf   : > { %p102_p2 = scmp.eq.s32.totalorder %s10333_s24, 0  ;;  %p107_p3 = scmp.ne.s32.totalorder %s10325_s22, %s10321_s21 }
  0x10   : > { %s10412_s29 = scalar_select %p92_p0, %s10329_s23, %s94_s28  }
  0x11   : > { %p10414_p4 = por %p102_p2, %p101_p1  ;;  %p11952_p5 = scmp.eq.s32.totalorder %s10399_s25, 0 }
  0x12   : > { %11972 = sst [smem:[#allocation18_spill]] %s10412_s29  ;;  %p8780_p6 = scmp.ge.s32.totalorder %s10333_s24, 1 }
  0x13   : > { %p196_p7 = scmp.lt.s32.totalorder %s10333_s24, 3  ;;  %p10423_p8 = por %p11952_p5, %p107_p3 }
  0x14   : > { %s10335_s9 = smov [#allocation4]   ;;  %p10044_p11 = scmp.lt.s32.totalorder %s10333_s24, 2 }
  0x15   : > { %s11974_s7 = scalar_select %p10423_p8, 1, 0 }
  0x16   : > { %p10427_p9 = pnand %p8780_p6, %p196_p7  ;;  %s220_s10 = sshll.u32 %s10335_s9, 4  ;;  %s221_s10 = int_to_ptr.vmem [resolvable:$true] %s220_s10 }
  0x17   : > { %s242_s11 = sand.u32 1, %s10333_s24   ;;  %p10443_p13 = pnand %p10044_p11, %p10414_p4 }
  0x18   : > { %s11975_s8 = scalar_select %p10427_p9, 1, 0 }
  0x19   : > { %p10021_p10 = pneg %p10427_p9  ;;  %s10448_s14 = sand.u32 1, %s10329_s23  }
  0x1a   : > { %s11977_s13 = scalar_select %p10443_p13, 1, 0 }
  0x1b   : > { %p10437_p12 = pnand %p10021_p10, %p11952_p5  ;;  %s8785_s15 = sshll.u32 %s10448_s14, 13 }
  0x1c   : > { %s11978_s1 = sld [smem:[#allocation19_spill]] }
  0x1d   : > { %s11976_s12 = scalar_select %p10437_p12, 1, 0 }
  0x1e   : > { %p10459_p1 = pneg %p10437_p12 }
  0x20   : > { %s11979_s21 = scalar_select %p10459_p1, 1, 0 }
  0x22   : > { %s10113_s18 = scalar_lea.hbm %s11978_s1, 1024 }
  0x23   : > { %p10114_p0 = scmp.ne.s32.totalorder %s11978_s1, %s10113_s18  ;;  %p10120_p4 = scmp.lt.u32.totalorder %s10113_s18, %s11978_s1 }
  0x25   : > { %p10116_p2 = pnand %p10459_p1, %p10114_p0 }
  0x27   : > { %p10117_p3 = pneg %p10116_p2 }
  0x29   : > { %p10122_p6 = pnand %p10120_p4, %p10117_p3 }
  0x2b   : > { %10125 = shalt.err (!%p10122_p6)
}
  0x2c   : > { %s10126_s30 = scalar_lea.vmem %s221_s10, 1024  ;;  %p10134_p5 = scmp.lt.s32.totalorder %s221_s10, %s221_s10 }
  0x2d   : > { %p10127_p7 = scmp.ne.s32.totalorder %s221_s10, %s10126_s30  ;;  %p10135_p8 = scmp.lt.s32.totalorder %s10126_s30, %s10126_s30 }
  0x2f   : > { %p10129_p10 = pnand %p10127_p7, %p10459_p1  ;;  %p10136_p9 = por %p10135_p8, %p10134_p5 }
  0x31   : > { %p10130_p11 = pneg %p10129_p10 }
  0x33   : > { %p10137_p13 = pnand %p10136_p9, %p10130_p11 }
  0x35   : > { %10140 = shalt.err (!%p10137_p13)
}
  0x36   : > { %10027 = dma.hbm_to_vmem [thread:$0]  (!%p10437_p12), %s11978_s1, 1024, %s221_s10, [#allocation5]  }
  0x37   : > { %s11960_s17 = sshll.u32 %s10333_s24, 9  ;;  %s246_s18 = scalar_lea.vmem [#allocation7], %s8785_s15 }
  0x38   : > { %s253_s19 = sshll.u32 %s246_s18, 4  ;;  %s11980_s3 = sld [smem:[#allocation20_spill]]  ;;  %s10483_s19 = int_to_ptr.vmem [resolvable:$true] %s253_s19 }
  0x39   : > { %s10485_s30 = scalar_lea.sflag [#allocation8], %s242_s11  ;;  %p11981_p8 = scmp.ne.s32.totalorder %s11977_s13, 0 }
  0x3b   : > { %p10491_p9 = pneg %p11981_p8 }
  0x3d   : > { %s11982_s10 = scalar_select %p10491_p9, 1, 0 }
  0x3e   : > { %s10481_s28 = scalar_lea.hbm %s11980_s3, %s11960_s17  ;;  %s10146_s18 = scalar_lea.hbm %s11980_s3, 262144 }
  0x3f   : > { %s10141_s9 = scalar_lea.hbm %s10481_s28, 131072  ;;  %p10147_p2 = scmp.lt.u32.totalorder %s10481_s28, %s11980_s3 }
  0x40   : > { %p10142_p5 = scmp.ne.s32.totalorder %s10481_s28, %s10141_s9  ;;  %p10148_p3 = scmp.lt.u32.totalorder %s10146_s18, %s10141_s9 }
  0x41   : > { %p10150_p6 = scmp.lt.u32.totalorder %s10141_s9, %s10481_s28 }
  0x42   : > { %p10144_p13 = pnand %p10491_p9, %p10142_p5  ;;  %p10149_p4 = por %p10148_p3, %p10147_p2 }
  0x44   : > { %p10145_p0 = pneg %p10144_p13  ;;  %p10151_p7 = por %p10150_p6, %p10149_p4 }
  0x46   : > { %p10152_p10 = pnand %p10151_p7, %p10145_p0 }
  0x48   : > { %10155 = shalt.err (!%p10152_p10)
}
  0x49   : > { %s10156_s11 = scalar_lea.vmem %s10483_s19, 131072  ;;  %s10336_s15 = smov [#allocation7]  }
  0x4a   : > { %p10157_p11 = scmp.ne.s32.totalorder %s10483_s19, %s10156_s11  ;;  %s10161_s16 = sshll.u32 %s10336_s15, 4  ;;  %s10162_s16 = int_to_ptr.vmem [resolvable:$false] %s10161_s16 }
  0x4b   : > { %s10163_s20 = scalar_lea.vmem %s10162_s16, 262144  ;;  %p10164_p12 = scmp.lt.s32.totalorder %s10483_s19, %s10162_s16 }
  0x4c   : > { %p10159_p5 = pnand %p10157_p11, %p10491_p9  ;;  %p10165_p1 = scmp.lt.s32.totalorder %s10163_s20, %s10156_s11 }
  0x4e   : > { %p10160_p13 = pneg %p10159_p5  ;;  %p10166_p2 = por %p10165_p1, %p10164_p12 }
  0x50   : > { %p10167_p3 = pnand %p10166_p2, %p10160_p13 }
  0x52   : > { %10170 = shalt.err (!%p10167_p3)
}
  0x53   : > { %s10337_s9 = smov 1024   ;;  %s10338_s18 = smov 512  }
  0x54   : > { %s10339_s27 = smov 32   ;;  %s10340_s17 = smov [#allocation2]  }
  0x55   : > { %10034 = dma.hbm_to_vmem [thread:$0]  (!%p11981_p8), %s10481_s28, 131072, %s10483_s19, %s10485_s30, %s10337_s9, %s10338_s18, %s10339_s27  }
  0x56   : > { %s209_s1 = sshll.u32 %s10340_s17, 4  ;;  %s10341_s15 = smov [#allocation6]   ;;  %s210_s1 = int_to_ptr.vmem [resolvable:$true] %s209_s1 }
  0x57   : > { %s231_s3 = sshll.u32 %s10341_s15, 4  ;;  %s10171_s20 = scalar_lea.hbm %s11945_s0, 128  ;;  %s232_s3 = int_to_ptr.vmem [resolvable:$true] %s231_s3 }
  0x58   : > { %p10172_p12 = scmp.ne.s32.totalorder %s11945_s0, %s10171_s20  ;;  %p11983_p1 = scmp.ne.s32.totalorder %s11979_s21, 0 }
  0x59   : > { %p10178_p6 = scmp.lt.u32.totalorder %s10171_s20, %s11945_s0 }
  0x5a   : > { %p10174_p0 = pnand %p10172_p12, %p11983_p1 }
  0x5c   : > { %p10175_p4 = pneg %p10174_p0 }
  0x5e   : > { %p10180_p7 = pnand %p10178_p6, %p10175_p4 }
  0x60   : > { %10183 = shalt.err (!%p10180_p7)
}
  0x61   : > { %s10184_s17 = scalar_lea.vmem %s210_s1, 128  ;;  %p10192_p13 = scmp.lt.s32.totalorder %s210_s1, %s210_s1 }
  0x62   : > { %p10185_p10 = scmp.ne.s32.totalorder %s210_s1, %s10184_s17  ;;  %p10193_p2 = scmp.lt.s32.totalorder %s10184_s17, %s10184_s17 }
  0x64   : > { %p10187_p11 = pnand %p10185_p10, %p11983_p1  ;;  %p10194_p3 = por %p10193_p2, %p10192_p13 }
  0x66   : > { %p10188_p5 = pneg %p10187_p11 }
  0x68   : > { %p10195_p8 = pnand %p10194_p3, %p10188_p5 }
  0x6a   : > { %10198 = shalt.err (!%p10195_p8)
}
  0x6b   : > { %p11984_p12 = scmp.ne.s32.totalorder %s11976_s12, 0  ;;  %s8788_s6 = sshll.u32 %s10448_s14, 3 }
  0x6c   : > { %s10199_s28 = scalar_lea.hbm %s11947_s2, 256 }
  0x6d   : > { %10024 = dma.hbm_to_vmem [thread:$0]  (!%p11984_p12), %s11945_s0, 128, %s210_s1, [#allocation3]  }
  0x6e   : > { %p10200_p0 = scmp.ne.s32.totalorder %s11947_s2, %s10199_s28  ;;  %p10206_p6 = scmp.lt.u32.totalorder %s10199_s28, %s11947_s2 }
  0x70   : > { %p10202_p8 = pnand %p10200_p0, %p11983_p1 }
  0x72   : > { %p10203_p4 = pneg %p10202_p8 }
  0x74   : > { %p10208_p7 = pnand %p10206_p6, %p10203_p4 }
  0x76   : > { %10211 = shalt.err (!%p10208_p7)
}
  0x77   : > { %s10212_s1 = scalar_lea.vmem %s232_s3, 256  ;;  %p10220_p13 = scmp.lt.s32.totalorder %s232_s3, %s232_s3 }
  0x78   : > { %p10213_p10 = scmp.ne.s32.totalorder %s232_s3, %s10212_s1  ;;  %p10221_p2 = scmp.lt.s32.totalorder %s10212_s1, %s10212_s1 }
  0x7a   : > { %p10215_p11 = pnand %p10213_p10, %p11983_p1  ;;  %p10222_p3 = por %p10221_p2, %p10220_p13 }
  0x7c   : > { %p10216_p5 = pneg %p10215_p11 }
  0x7e   : > { %p10223_p9 = pnand %p10222_p3, %p10216_p5 }
  0x80   : > { %10226 = shalt.err (!%p10223_p9)
}
  0x81   : > { %10030 = dma.hbm_to_vmem [thread:$0]  (!%p11984_p12), %s11947_s2, 256, %s232_s3, [#allocation5]  }
  0x82   : > { %s9869_s20 = sshll.u32 %s10333_s24, 7  ;;  %s267_s29 = scalar_lea.vmem [#allocation9], %s8788_s6 }
  0x83   : > { %s10556_s21 = scalar_lea.hbm %s11949_s4, %s9869_s20  ;;  %s275_s26 = sshll.u32 %s267_s29, 4  ;;  %s276_s26 = int_to_ptr.vmem [resolvable:$true] %s275_s26 }
  0x84   : > { %s10227_s12 = scalar_lea.hbm %s10556_s21, 128  ;;  %p11985_p1 = scmp.ne.s32.totalorder %s11982_s10, 0 }
  0x85   : > { %p10228_p9 = scmp.ne.s32.totalorder %s10556_s21, %s10227_s12  ;;  %s10232_s28 = scalar_lea.hbm %s11949_s4, 256 }
  0x86   : > { %p10233_p12 = scmp.lt.u32.totalorder %s10556_s21, %s11949_s4  ;;  %p10234_p4 = scmp.lt.u32.totalorder %s10232_s28, %s10227_s12 }
  0x87   : > { %p10230_p0 = pnand %p10228_p9, %p11985_p1  ;;  %p10236_p7 = scmp.lt.u32.totalorder %s10227_s12, %s10556_s21 }
  0x88   : > { %p10235_p6 = por %p10234_p4, %p10233_p12 }
  0x89   : > { %p10231_p8 = pneg %p10230_p0 }
  0x8a   : > { %p10237_p10 = por %p10236_p7, %p10235_p6 }
  0x8c   : > { %p10238_p11 = pnand %p10237_p10, %p10231_p8 }
  0x8e   : > { %10241 = shalt.err (!%p10238_p11)
}
  0x8f   : > { %s10242_s6 = scalar_lea.vmem %s276_s26, 128  ;;  %s10342_s27 = smov [#allocation9]  }
  0x90   : > { %p10243_p5 = scmp.ne.s32.totalorder %s276_s26, %s10242_s6  ;;  %s10247_s15 = sshll.u32 %s10342_s27, 4  ;;  %s10248_s15 = int_to_ptr.vmem [resolvable:$false] %s10247_s15 }
  0x91   : > { %s10249_s1 = scalar_lea.vmem %s10248_s15, 256  ;;  %p10250_p3 = scmp.lt.s32.totalorder %s276_s26, %s10248_s15 }
  0x92   : > { %p10245_p13 = pnand %p10243_p5, %p11985_p1  ;;  %p10251_p9 = scmp.lt.s32.totalorder %s10249_s1, %s10242_s6 }
  0x94   : > { %p10246_p2 = pneg %p10245_p13  ;;  %p10252_p0 = por %p10251_p9, %p10250_p3 }
  0x96   : > { %p10253_p4 = pnand %p10252_p0, %p10246_p2 }
  0x98   : > { %10256 = shalt.err (!%p10253_p4)
}
  0x99   : > { %p11986_p12 = scmp.ne.s32.totalorder %s11977_s13, 0  ;;  %s8791_s16 = sshll.u32 %s10448_s14, 5 }
  0x9a   : > { %s11987_s11 = sshll.u32 %s10333_s24, 9  ;;  %s286_s29 = scalar_lea.vmem [#allocation10], %s8791_s16 }
  0x9b   : > { %10037 = dma.hbm_to_vmem [thread:$0]  (!%p11986_p12), %s10556_s21, 128, %s276_s26, %s10485_s30  }
  0x9c   : > { %s10582_s23 = scalar_lea.hbm %s11950_s5, %s11987_s11  ;;  %s294_s12 = sshll.u32 %s286_s29, 4  ;;  %s295_s12 = int_to_ptr.vmem [resolvable:$true] %s294_s12 }
  0x9d   : > { %s283_s19 = scalar_lea.sflag [#allocation11], %s10448_s14  ;;  %s10257_s3 = scalar_lea.hbm %s10582_s23, 512 }
  0x9e   : > { %p10258_p8 = scmp.ne.s32.totalorder %s10582_s23, %s10257_s3  ;;  %s10262_s21 = scalar_lea.hbm %s11950_s5, 1024 }
  0x9f   : > { %p10263_p10 = scmp.lt.u32.totalorder %s10582_s23, %s11950_s5  ;;  %p10264_p11 = scmp.lt.u32.totalorder %s10262_s21, %s10257_s3 }
  0xa0   : > { %p10260_p6 = pnand %p10258_p8, %p11985_p1  ;;  %p10266_p13 = scmp.lt.u32.totalorder %s10257_s3, %s10582_s23 }
  0xa1   : > { %p10265_p5 = por %p10264_p11, %p10263_p10 }
  0xa2   : > { %p10261_p7 = pneg %p10260_p6 }
  0xa3   : > { %p10267_p2 = por %p10266_p13, %p10265_p5 }
  0xa5   : > { %p10268_p3 = pnand %p10267_p2, %p10261_p7 }
  0xa7   : > { %10271 = shalt.err (!%p10268_p3)
}
  0xa8   : > { %s10272_s14 = scalar_lea.vmem %s295_s12, 512  ;;  %s10343_s9 = smov [#allocation10]  }
  0xa9   : > { %p10273_p9 = scmp.ne.s32.totalorder %s295_s12, %s10272_s14  ;;  %s10277_s18 = sshll.u32 %s10343_s9, 4  ;;  %s10278_s18 = int_to_ptr.vmem [resolvable:$false] %s10277_s18 }
  0xaa   : > { %s10279_s6 = scalar_lea.vmem %s10278_s18, 1024  ;;  %p10280_p8 = scmp.lt.s32.totalorder %s295_s12, %s10278_s18 }
  0xab   : > { %p10275_p0 = pnand %p10273_p9, %p11985_p1  ;;  %p10281_p6 = scmp.lt.s32.totalorder %s10279_s6, %s10272_s14 }
  0xad   : > { %p10276_p4 = pneg %p10275_p0  ;;  %p10282_p12 = por %p10281_p6, %p10280_p8 }
  0xaf   : > { %p10283_p10 = pnand %p10282_p12, %p10276_p4 }
  0xb1   : > { %10286 = shalt.err (!%p10283_p10)
}
  0xb2   : > { %p11988_p11 = scmp.ne.s32.totalorder %s11977_s13, 0  ;;  %p11989_p7 = scmp.ne.s32.totalorder %s11975_s8, 0 }
  0xb3   : > { %p11990_p5 = scmp.eq.s32.totalorder (!%p11989_p7), %s10399_s25, 0 }
  0xb4   : > { %10040 = dma.hbm_to_vmem [thread:$0]  (!%p11988_p11), %s10582_s23, 512, %s295_s12, %s283_s19  }
  0xb5   : > { %303 = sbr.rel (%p11989_p7) target bundleno = 1836 (0x72c), region = 44 }
  0xbc   : > { %10304 = dma.done.wait (%p11990_p5), [#allocation3], 128   ;;  %p11991_p1 = pmov %p11990_p5 }
  0xbe   : > { %10306 = vsyncadd (%p11991_p1), [#allocation3], 4294967168  ;;  %p11992_p13 = pmov %p11991_p1 }
  0xbf   : > { %p11993_p2 = pmov %p11991_p1 }
  0xc0   : > { %10308 = dma.done.wait (%p11992_p13), [#allocation5], 1280  }
  0xc1   : > { %10310 = vsyncadd (%p11993_p2), [#allocation5], 4294966016  ;;  %s317_s13 = sand.u32 1, %s10399_s25   ;;  %s319_s10 = sand.u32 1, %s10325_s22  }
  0xc2   : > { %s8798_s27 = sshll.u32 %s319_s10, 13  ;;  %s318_s8 = scalar_lea.sflag [#allocation8], %s317_s13 }
  0xc3   : > { %s10614_s15 = scalar_lea.vmem [#allocation7], %s8798_s27  ;;  %p11994_p12 = scmp.ne.s32.totalorder %s11974_s7, 0 }
  0xc5   : > { %10312 = dma.done.wait (%p11994_p12), %s318_s8, 131200  }
  0xc6   : > { %10314 = vsyncadd (%p11994_p12), %s318_s8, 4294836096  ;;  %s8799_s1 = sshll.u32 %s319_s10, 3  ;;  %s8800_s16 = sshll.u32 %s319_s10, 5 }
  0xc7   : > { %s10620_s11 = scalar_lea.vmem [#allocation9], %s8799_s1  ;;  %s336_s20 = scalar_lea.sflag [#allocation11], %s319_s10 }
  0xc8   : > { %s10622_s17 = scalar_lea.vmem [#allocation10], %s8800_s16 }
  0xc9   : > { %10316 = dma.done.wait (%p11994_p12), %s336_s20, 512  }
  0xca   : > { %10318 = vsyncadd (%p11994_p12), %s336_s20, 4294966784  ;;  %v10344_v0 = vmov 0   ;;  %v387_v1 = vld [vmem:[#allocation4] sm:$0xff]  ;;  %vm523_vm0 = vcmask 1043456   ;;  %v385_v2 = vld [vmem:[#allocation2] sm:$0xff]  ;;  %vm519_vm1 = vcmask 64512  }
  0xcb   : > { %604 = vmatprep.mubr.bf16.mxu1 %v10344_v0  ;;  %768 = vmatprep.mubr.bf16.mxu0 %v10344_v0  ;;  %v388_v3 = vld [vmem:[#allocation4 + $0x8] sm:$0xff]  ;;  %v8803_v4 = vcombine.high %v387_v1, %v387_v1  ;;  %v8802_v5 = vcombine.low %v387_v1, %v387_v1  ;;  %v389_v7 = vld [vmem:[#allocation4 + $0x10] sm:$0xff]  ;;  %v391_v8 = vld [vmem:[#allocation4 + $0x20] sm:$0xff]  ;;  %v10632_v12 = vpack.c.bf16 %v385_v2, %v385_v2  ;;  %p380_p3 = scmp.lt.s32.totalorder %s10399_s25, 1  ;;  %s11995_s12 = sld [smem:[#allocation21_spill]]  ;;  %vm8638_vm2 = vcmask 39936  }
  0xcc   : > { %v8805_v6 = vcombine.high %v388_v3, %v388_v3  ;;  %v8804_v9 = vcombine.low %v388_v3, %v388_v3  ;;  %v393_v10 = vld [vmem:[#allocation4 + $0x30] sm:$0xff]  ;;  %v8811_v13 = vcombine.high %v391_v8, %v391_v8  ;;  %v8810_v14 = vcombine.low %v391_v8, %v391_v8  ;;  %v390_v25 = vld [vmem:[#allocation4 + $0x18] sm:$0xff]  ;;  %v392_v35 = vld [vmem:[#allocation4 + $0x28] sm:$0xff] }
  0xcd   : > { %8818 = vmatprep.subr.msk.bf16.mxu1 %vm523_vm0, %v8803_v4  ;;  %v525_v11 = vsel %vm523_vm0, %v8802_v5, 0  ;;  %v8807_v15 = vcombine.high %v389_v7, %v389_v7  ;;  %v932_v16 = vld [vmem:[%s10614_s15] sm:$0xff]  ;;  %v8815_v20 = vcombine.high %v393_v10, %v393_v10  ;;  %v8814_v21 = vcombine.low %v393_v10, %v393_v10  ;;  %v394_v47 = vld [vmem:[#allocation4 + $0x38] sm:$0xff]  ;;  %s12002_s25 = smov (!%p380_p3, %s10399_s25), 1 }
  0xce   : > { %573 = vmatpush1.bf16.msra.mxu1 %v525_v11  ;;  %v936_v17 = vld [vmem:[%s10614_s15 + $0x20] sm:$0xff]  ;;  %v531_v18 = vsel %vm523_vm0, %v8804_v9, 0  ;;  %8826 = vmatprep.subr.msk.bf16.mxu0 %vm523_vm0, %v8811_v13  ;;  %v549_v19 = vsel %vm523_vm0, %v8810_v14, 0  ;;  %v8806_v24 = vcombine.low %v389_v7, %v389_v7  ;;  %v8809_v29 = vcombine.high %v390_v25, %v390_v25  ;;  %v933_v59 = vld [vmem:[%s10614_s15 + $0x8] sm:$0xff]  ;;  %s8801_s7 = sshll.u32 %s12002_s25, 3 }
  0xcf   : > { %8820 = vmatprep.subr.msk.bf16.mxu1 %vm523_vm0, %v8805_v6  ;;  %737 = vmatpush1.bf16.msra.mxu0 %v549_v19  ;;  %v561_v22 = vsel %vm523_vm0, %v8814_v21, 0  ;;  %v8835_v23 = vcombine.high %v932_v16, %v936_v17  ;;  %v940_v26 = vld [vmem:[%s10614_s15 + $0x40] sm:$0xff]  ;;  %v8834_v30 = vcombine.low %v932_v16, %v936_v17  ;;  %v8808_v34 = vcombine.low %v390_v25, %v390_v25  ;;  %v937_v60 = vld [vmem:[%s10614_s15 + $0x28] sm:$0xff] }
  0xd0   : > { %8830 = vmatprep.subr.msk.bf16.mxu0 %vm523_vm0, %v8815_v20  ;;  %v944_v27 = vld [vmem:[%s10614_s15 + $0x60] sm:$0xff]  ;;  %v537_v28 = vsel %vm523_vm0, %v8806_v24, 0  ;;  %v8813_v41 = vcombine.high %v392_v35, %v392_v35  ;;  %v8812_v46 = vcombine.low %v392_v35, %v392_v35  ;;  %v8817_v53 = vcombine.high %v394_v47, %v394_v47  ;;  %v941_v8 = vld [vmem:[%s10614_s15 + $0x48] sm:$0xff] }
  0xd1   : > { %8819 = vmatmul.mubr.msk.bf16.vlgmr.msra.gmra.mrb[0].mxu1 %vm519_vm1, %v10632_v12  ;;  %v8843_v31 = vcombine.high %v940_v26, %v944_v27  ;;  %v948_v32 = vld [vmem:[%s10614_s15 + $0x80] sm:$0xff]  ;;  %v8842_v36 = vcombine.low %v940_v26, %v944_v27  ;;  %v543_v40 = vsel %vm523_vm0, %v8808_v34, 0  ;;  %v8816_v58 = vcombine.low %v394_v47, %v394_v47  ;;  %v945_v9 = vld [vmem:[%s10614_s15 + $0x68] sm:$0xff]  ;;  %s383_s19 = scalar_lea.vmem %s11995_s12, %s8801_s7 }
  0xd2   : > { %614 = vmatpush1.bf16.msra.mxu1 %v531_v18  ;;  %645 = vmatprep.mubr.bf16.mxu1 %v10344_v0  ;;  %v952_v33 = vld [vmem:[%s10614_s15 + $0xa0] sm:$0xff]  ;;  %v555_v52 = vsel %vm523_vm0, %v8812_v46, 0  ;;  %v8837_v3 = vcombine.high %v933_v59, %v937_v60  ;;  %v8836_v13 = vcombine.low %v933_v59, %v937_v60  ;;  %v8845_v16 = vcombine.high %v941_v8, %v945_v9  ;;  %v949_v17 = vld [vmem:[%s10614_s15 + $0x88] sm:$0xff] }
  0xd3   : > { %8822 = vmatprep.subr.msk.bf16.mxu1 %vm523_vm0, %v8807_v15  ;;  %8827 = vmatmul.mubr.msk.bf16.vlgmr.msra.gmra.mrb[0].mxu0 %vm519_vm1, %v10632_v12  ;;  %v8851_v37 = vcombine.high %v948_v32, %v952_v33  ;;  %v956_v38 = vld [vmem:[%s10614_s15 + $0xc0] sm:$0xff]  ;;  %v8850_v42 = vcombine.low %v948_v32, %v952_v33  ;;  %v567_v2 = vsel %vm523_vm0, %v8816_v58, 0  ;;  %v953_v18 = vld [vmem:[%s10614_s15 + $0xa8] sm:$0xff]  ;;  %v8844_v20 = vcombine.low %v941_v8, %v945_v9 }
  0xd4   : > { %819 = vmatpush1.bf16.msra.mxu0 %v561_v22  ;;  %850 = vmatprep.mubr.bf16.mxu0 %v10344_v0  ;;  %v960_v39 = vld [vmem:[%s10614_s15 + $0xe0] sm:$0xff]  ;;  %v957_v24 = vld [vmem:[%s10614_s15 + $0xc8] sm:$0xff] }
  0xd5   : > { %7118 = vmatprep.subr.bf16.mxu0 %v8835_v23  ;;  %v8859_v43 = vcombine.high %v956_v38, %v960_v39  ;;  %v964_v44 = vld [vmem:[%s10614_s15 + $0x100] sm:$0xff]  ;;  %v8858_v48 = vcombine.low %v956_v38, %v960_v39  ;;  %v8853_v23 = vcombine.high %v949_v17, %v953_v18  ;;  %v961_v25 = vld [vmem:[%s10614_s15 + $0xe8] sm:$0xff] }
  0xd6   : > { %v968_v45 = vld [vmem:[%s10614_s15 + $0x120] sm:$0xff]  ;;  %v969_v32 = vld [vmem:[%s10614_s15 + $0x128] sm:$0xff]  ;;  %v8860_v35 = vcombine.low %v957_v24, %v961_v25 }
  0xd7   : > { %v8867_v49 = vcombine.high %v964_v44, %v968_v45  ;;  %v972_v50 = vld [vmem:[%s10614_s15 + $0x140] sm:$0xff]  ;;  %v8866_v54 = vcombine.low %v964_v44, %v968_v45  ;;  %v973_v39 = vld [vmem:[%s10614_s15 + $0x148] sm:$0xff] }
  0xd8   : > { %v976_v51 = vld [vmem:[%s10614_s15 + $0x160] sm:$0xff]  ;;  %v981_v47 = vld [vmem:[%s10614_s15 + $0x188] sm:$0xff] }
  0xd9   : > { %8821 = vmatmul.mubr.msk.bf16.vlgmr.msra.gmra.mrb[4].mxu1 %vm519_vm1, %v10632_v12  ;;  %v8875_v55 = vcombine.high %v972_v50, %v976_v51  ;;  %v980_v56 = vld [vmem:[%s10614_s15 + $0x180] sm:$0xff]  ;;  %v8874_v61 = vcombine.low %v972_v50, %v976_v51  ;;  %v997_v58 = vld [vmem:[%s10614_s15 + $0x208] sm:$0xff] }
  0xda   : > { %655 = vmatpush1.bf16.msra.mxu1 %v537_v28  ;;  %686 = vmatprep.mubr.bf16.mxu1 %v10344_v0  ;;  %v984_v57 = vld [vmem:[%s10614_s15 + $0x1a0] sm:$0xff]  ;;  %v1001_v59 = vld [vmem:[%s10614_s15 + $0x228] sm:$0xff] }
  0xdb   : > { %8824 = vmatprep.subr.msk.bf16.mxu1 %vm523_vm0, %v8809_v29  ;;  %8831 = vmatmul.mubr.msk.bf16.vlgmr.msra.gmra.mrb[4].mxu0 %vm519_vm1, %v10632_v12  ;;  %v8883_v62 = vcombine.high %v980_v56, %v984_v57  ;;  %v988_v63 = vld [vmem:[%s10614_s15 + $0x1c0] sm:$0xff]  ;;  %v8882_v4 = vcombine.low %v980_v56, %v984_v57  ;;  %v1025_v8 = vld [vmem:[%s10614_s15 + $0x2e8] sm:$0xff] }
  0xdc   : > { %7119 = vmatpush1.bf16.msra.mxu0 %v8834_v30  ;;  %v992_v1 = vld [vmem:[%s10614_s15 + $0x1e0] sm:$0xff]  ;;  %v8861_v30 = vcombine.high %v957_v24, %v961_v25 }
  0xdd   : > { %7120 = vmatprep.subr.bf16.mxu0 %v8843_v31  ;;  %v8891_v5 = vcombine.high %v988_v63, %v992_v1  ;;  %v996_v6 = vld [vmem:[%s10614_s15 + $0x200] sm:$0xff]  ;;  %v8890_v10 = vcombine.low %v988_v63, %v992_v1  ;;  %v965_v31 = vld [vmem:[%s10614_s15 + $0x108] sm:$0xff]  ;;  %v8900_v1 = vcombine.low %v997_v58, %v1001_v59 }
  0xde   : > { %v1000_v7 = vld [vmem:[%s10614_s15 + $0x220] sm:$0xff]  ;;  %v8869_v38 = vcombine.high %v965_v31, %v969_v32  ;;  %v1009_v63 = vld [vmem:[%s10614_s15 + $0x268] sm:$0xff] }
  0xdf   : > { %v8899_v11 = vcombine.high %v996_v6, %v1000_v7  ;;  %v1004_v14 = vld [vmem:[%s10614_s15 + $0x240] sm:$0xff] }
  0xe0   : > { %7121 = vmatpush1.bf16.msra.mxu0 %v8842_v36  ;;  %v1008_v15 = vld [vmem:[%s10614_s15 + $0x260] sm:$0xff] }
  0xe1   : > { %8823 = vmatmul.mubr.msk.bf16.vlgmr.msra.gmra.mrb[8].mxu1 %vm519_vm1, %v10632_v12  ;;  %7122 = vmatprep.subr.bf16.mxu0 %v8851_v37  ;;  %v8907_v19 = vcombine.high %v1004_v14, %v1008_v15  ;;  %v1012_v21 = vld [vmem:[%s10614_s15 + $0x280] sm:$0xff]  ;;  %v8906_v26 = vcombine.low %v1004_v14, %v1008_v15 }
  0xe2   : > { %696 = vmatpush1.bf16.msra.mxu1 %v543_v40  ;;  %727 = vmatprep.mubr.bf16.mxu1 %v10344_v0  ;;  %v1016_v22 = vld [vmem:[%s10614_s15 + $0x2a0] sm:$0xff]  ;;  %v977_v40 = vld [vmem:[%s10614_s15 + $0x168] sm:$0xff] }
  0xe3   : > { %8828 = vmatprep.subr.msk.bf16.mxu1 %vm523_vm0, %v8813_v41  ;;  %v8915_v27 = vcombine.high %v1012_v21, %v1016_v22  ;;  %v1020_v28 = vld [vmem:[%s10614_s15 + $0x2c0] sm:$0xff]  ;;  %v8914_v33 = vcombine.low %v1012_v21, %v1016_v22  ;;  %v8877_v46 = vcombine.high %v973_v39, %v977_v40  ;;  %v8876_v51 = vcombine.low %v973_v39, %v977_v40 }
  0xe4   : > { %7123 = vmatpush1.bf16.msra.mxu0 %v8850_v42  ;;  %v1024_v29 = vld [vmem:[%s10614_s15 + $0x2e0] sm:$0xff] }
  0xe5   : > { %7124 = vmatprep.subr.bf16.mxu0 %v8859_v43  ;;  %v8923_v34 = vcombine.high %v1020_v28, %v1024_v29  ;;  %v1028_v36 = vld [vmem:[%s10614_s15 + $0x300] sm:$0xff]  ;;  %v8922_v41 = vcombine.low %v1020_v28, %v1024_v29  ;;  %v8868_v43 = vcombine.low %v965_v31, %v969_v32 }
  0xe6   : > { %v1032_v37 = vld [vmem:[%s10614_s15 + $0x320] sm:$0xff] }
  0xe7   : > { %v8931_v42 = vcombine.high %v1028_v36, %v1032_v37  ;;  %v1036_v44 = vld [vmem:[%s10614_s15 + $0x340] sm:$0xff] }
  0xe8   : > { %7125 = vmatpush1.bf16.msra.mxu0 %v8858_v48  ;;  %v1040_v45 = vld [vmem:[%s10614_s15 + $0x360] sm:$0xff]  ;;  %v985_v48 = vld [vmem:[%s10614_s15 + $0x1a8] sm:$0xff] }
  0xe9   : > { %8825 = vmatmul.mubr.msk.bf16.vlgmr.msra.gmra.mrb[12].mxu1 %vm519_vm1, %v10632_v12  ;;  %7126 = vmatprep.subr.bf16.mxu0 %v8867_v49  ;;  %v8930_v49 = vcombine.low %v1028_v36, %v1032_v37  ;;  %v8939_v50 = vcombine.high %v1036_v44, %v1040_v45  ;;  %v8884_v56 = vcombine.low %v981_v47, %v985_v48  ;;  %v1044_v14 = vld [vmem:[%s10614_s15 + $0x380] sm:$0xff]  ;;  %v1053_v37 = vld [vmem:[%s10614_s15 + $0x3c8] sm:$0xff] }
  0xea   : > { %778 = vmatpush1.bf16.msra.mxu1 %v555_v52  ;;  %809 = vmatprep.mubr.bf16.mxu1 %v10344_v0  ;;  %v8885_v52 = vcombine.high %v981_v47, %v985_v48  ;;  %v1048_v15 = vld [vmem:[%s10614_s15 + $0x3a0] sm:$0xff] }
  0xeb   : > { %8832 = vmatprep.subr.msk.bf16.mxu1 %vm523_vm0, %v8817_v53  ;;  %v989_v53 = vld [vmem:[%s10614_s15 + $0x1c8] sm:$0xff]  ;;  %v1052_v21 = vld [vmem:[%s10614_s15 + $0x3c0] sm:$0xff] }
  0xec   : > { %7127 = vmatpush1.bf16.msra.mxu0 %v8866_v54  ;;  %v993_v54 = vld [vmem:[%s10614_s15 + $0x1e8] sm:$0xff]  ;;  %v1056_v22 = vld [vmem:[%s10614_s15 + $0x3e0] sm:$0xff] }
  0xed   : > { %7128 = vmatprep.subr.bf16.mxu0 %v8875_v55  ;;  %v8938_v55 = vcombine.low %v1036_v44, %v1040_v45  ;;  %v8893_v57 = vcombine.high %v989_v53, %v993_v54  ;;  %v8892_v60 = vcombine.low %v989_v53, %v993_v54  ;;  %v8955_v24 = vcombine.high %v1052_v21, %v1056_v22  ;;  %v1060_v28 = vld [vmem:[%s10614_s15 + $0x400] sm:$0xff] }
  0xee   : > { %v1064_v29 = vld [vmem:[%s10614_s15 + $0x420] sm:$0xff] }
  0xef   : > { %v8963_v32 = vcombine.high %v1060_v28, %v1064_v29 }
  0xf0   : > { %7129 = vmatpush1.bf16.msra.mxu0 %v8874_v61  ;;  %v8901_v61 = vcombine.high %v997_v58, %v1001_v59  ;;  %v1068_v58 = vld [vmem:[%s10614_s15 + $0x440] sm:$0xff] }
  0xf1   : > { %8829 = vmatmul.mubr.msk.bf16.vlgmr.msra.gmra.mrb[16].mxu1 %vm519_vm1, %v10632_v12  ;;  %7130 = vmatprep.subr.bf16.mxu0 %v8883_v62  ;;  %v1005_v62 = vld [vmem:[%s10614_s15 + $0x248] sm:$0xff] }
  0xf2   : > { %860 = vmatpush1.bf16.msra.mxu1 %v567_v2  ;;  %891 = vmatprep.mubr.bf16.mxu1 %v10344_v0  ;;  %v8898_v0 = vcombine.low %v996_v6, %v1000_v7  ;;  %v8909_v2 = vcombine.high %v1005_v62, %v1009_v63  ;;  %v1021_v7 = vld [vmem:[%s10614_s15 + $0x2c8] sm:$0xff] }
  0xf3   : > { %7446 = vmatprep.subr.bf16.mxu1 %v8837_v3  ;;  %v1013_v3 = vld [vmem:[%s10614_s15 + $0x288] sm:$0xff] }
  0xf4   : > { %7131 = vmatpush1.bf16.msra.mxu0 %v8882_v4  ;;  %v1017_v4 = vld [vmem:[%s10614_s15 + $0x2a8] sm:$0xff] }
  0xf5   : > { %7132 = vmatprep.subr.bf16.mxu0 %v8891_v5  ;;  %v8908_v5 = vcombine.low %v1005_v62, %v1009_v63  ;;  %v8917_v6 = vcombine.high %v1013_v3, %v1017_v4  ;;  %v8916_v9 = vcombine.low %v1013_v3, %v1017_v4  ;;  %v1073_v62 = vld [vmem:[%s10614_s15 + $0x468] sm:$0xff] }
  0xf8   : > { %7133 = vmatpush1.bf16.msra.mxu0 %v8890_v10  ;;  %v8925_v10 = vcombine.high %v1021_v7, %v1025_v8 }
  0xf9   : > { %8833 = vmatmul.mubr.msk.bf16.vlgmr.msra.gmra.mrb[20].mxu1 %vm519_vm1, %v10632_v12  ;;  %7134 = vmatprep.subr.bf16.mxu0 %v8899_v11  ;;  %v8852_v12 = vcombine.low %v949_v17, %v953_v18  ;;  %v1029_v11 = vld [vmem:[%s10614_s15 + $0x308] sm:$0xff]  ;;  %v8947_v17 = vcombine.high %v1044_v14, %v1048_v15 }
  0xfa   : > { %7447 = vmatpush1.bf16.msra.mxu1 %v8836_v13  ;;  %v1033_v13 = vld [vmem:[%s10614_s15 + $0x328] sm:$0xff] }
  0xfb   : > { %7448 = vmatprep.subr.bf16.mxu1 %v8845_v16  ;;  %v8924_v16 = vcombine.low %v1021_v7, %v1025_v8  ;;  %v8933_v18 = vcombine.high %v1029_v11, %v1033_v13  ;;  %v1077_v7 = vld [vmem:[%s10614_s15 + $0x488] sm:$0xff] }
  0xfc   : > { %7135 = vmatpush1.bf16.msra.mxu0 %v8898_v0  ;;  %v8946_v0 = vcombine.low %v1044_v14, %v1048_v15  ;;  %v1081_v8 = vld [vmem:[%s10614_s15 + $0x4a8] sm:$0xff] }
  0xfd   : > { %7136 = vmatprep.subr.bf16.mxu0 %v8907_v19  ;;  %v1037_v19 = vld [vmem:[%s10614_s15 + $0x348] sm:$0xff] }
  0xfe   : > { %7449 = vmatpush1.bf16.msra.mxu1 %v8844_v20  ;;  %v1041_v20 = vld [vmem:[%s10614_s15 + $0x368] sm:$0xff] }
  0xff   : > { %7450 = vmatprep.subr.bf16.mxu1 %v8853_v23  ;;  %v8932_v23 = vcombine.low %v1029_v11, %v1033_v13  ;;  %v8941_v25 = vcombine.high %v1037_v19, %v1041_v20  ;;  %v8940_v31 = vcombine.low %v1037_v19, %v1041_v20  ;;  %v1088_v19 = vld [vmem:[%s10614_s15 + $0x4e0] sm:$0xff]  ;;  %v1085_v20 = vld [vmem:[%s10614_s15 + $0x4c8] sm:$0xff] }
 0x100   : > { %7137 = vmatpush1.bf16.msra.mxu0 %v8906_v26  ;;  %v8954_v26 = vcombine.low %v1052_v21, %v1056_v22  ;;  %v1089_v21 = vld [vmem:[%s10614_s15 + $0x4e8] sm:$0xff] }
 0x101   : > { %7138 = vmatprep.subr.bf16.mxu0 %v8915_v27  ;;  %v1045_v27 = vld [vmem:[%s10614_s15 + $0x388] sm:$0xff] }
 0x102   : > { %7451 = vmatpush1.bf16.msra.mxu1 %v8852_v12  ;;  %v1049_v12 = vld [vmem:[%s10614_s15 + $0x3a8] sm:$0xff] }
 0x103   : > { %7452 = vmatprep.subr.bf16.mxu1 %v8861_v30  ;;  %v1061_v30 = vld [vmem:[%s10614_s15 + $0x408] sm:$0xff]  ;;  %v8948_v39 = vcombine.low %v1045_v27, %v1049_v12 }
 0x104   : > { %7139 = vmatpush1.bf16.msra.mxu0 %v8914_v33  ;;  %v1065_v33 = vld [vmem:[%s10614_s15 + $0x428] sm:$0xff] }
 0x105   : > { %7140 = vmatprep.subr.bf16.mxu0 %v8923_v34  ;;  %v8949_v34 = vcombine.high %v1045_v27, %v1049_v12  ;;  %v8964_v36 = vcombine.low %v1061_v30, %v1065_v33  ;;  %v8989_v27 = vcombine.high %v1085_v20, %v1089_v21  ;;  %v1092_v12 = vld [vmem:[%s10614_s15 + $0x500] sm:$0xff] }
 0x106   : > { %7453 = vmatpush1.bf16.msra.mxu1 %v8860_v35  ;;  %v8962_v35 = vcombine.low %v1060_v28, %v1064_v29  ;;  %v1096_v29 = vld [vmem:[%s10614_s15 + $0x520] sm:$0xff] }
 0x107   : > { %7454 = vmatprep.subr.bf16.mxu1 %v8869_v38  ;;  %v1057_v38 = vld [vmem:[%s10614_s15 + $0x3e8] sm:$0xff] }
 0x108   : > { %7141 = vmatpush1.bf16.msra.mxu0 %v8922_v41  ;;  %v8957_v40 = vcombine.high %v1053_v37, %v1057_v38  ;;  %v8956_v41 = vcombine.low %v1053_v37, %v1057_v38  ;;  %v8995_v38 = vcombine.high %v1092_v12, %v1096_v29 }
 0x109   : > { %7142 = vmatprep.subr.bf16.mxu0 %v8931_v42  ;;  %v8965_v42 = vcombine.high %v1061_v30, %v1065_v33  ;;  %v1093_v30 = vld [vmem:[%s10614_s15 + $0x508] sm:$0xff] }
 0x10a   : > { %7455 = vmatpush1.bf16.msra.mxu1 %v8868_v43  ;;  %v399_v43 = vlaneseq }
 0x10b   : > { %7456 = vmatprep.subr.bf16.mxu1 %v8877_v46  ;;  %v10743_v46 = vld [vmem:[#allocation6] sm:$0xff] }
 0x10c   : > { %7143 = vmatpush1.bf16.msra.mxu0 %v8930_v49  ;;  %v10738_v44 = vshrl.u32 %v399_v43, 7  ;;  %v1104_v43 = vld [vmem:[%s10614_s15 + $0x560] sm:$0xff] }
 0x10d   : > { %7144 = vmatprep.subr.bf16.mxu0 %v8939_v50 }
 0x10e   : > { %7457 = vmatpush1.bf16.msra.mxu1 %v8876_v51  ;;  %v10741_v45 = vsub.s32 0, %v10738_v44  ;;  %v10746_v47 = vsub.s32 1, %v10738_v44 }
 0x10f   : > { %7458 = vmatprep.subr.bf16.mxu1 %v8885_v52 }
 0x110   : > { %7145 = vmatpush1.bf16.msra.mxu0 %v8938_v55  ;;  %v402_v48 = vrot.slane %v10743_v46, %v10741_v45  ;;  %v406_v49 = vrot.slane %v10743_v46, %v10746_v47  ;;  %v10753_v55 = vsub.s32 3, %v10738_v44 }
 0x111   : > { %7146 = vmatprep.subr.bf16.mxu0 %v8947_v17  ;;  %v8981_v17 = vcombine.high %v1077_v7, %v1081_v8 }
 0x112   : > { %7459 = vmatpush1.bf16.msra.mxu1 %v8884_v56 }
 0x113   : > { %7460 = vmatprep.subr.bf16.mxu1 %v8893_v57 }
 0x114   : > { %7147 = vmatpush1.bf16.msra.mxu0 %v8946_v0 }
 0x115   : > { %7148 = vmatprep.subr.bf16.mxu0 %v8955_v24  ;;  %v8980_v24 = vcombine.low %v1077_v7, %v1081_v8 }
 0x116   : > { %7461 = vmatpush1.bf16.msra.mxu1 %v8892_v60  ;;  %v1072_v60 = vld [vmem:[%s10614_s15 + $0x460] sm:$0xff] }
 0x117   : > { %7462 = vmatprep.subr.bf16.mxu1 %v8901_v61  ;;  %v1069_v61 = vld [vmem:[%s10614_s15 + $0x448] sm:$0xff]  ;;  %v8971_v3 = vcombine.high %v1068_v58, %v1072_v60  ;;  %v8970_v11 = vcombine.low %v1068_v58, %v1072_v60  ;;  %v1108_v58 = vld [vmem:[%s10614_s15 + $0x580] sm:$0xff] }
 0x118   : > { %7149 = vmatpush1.bf16.msra.mxu0 %v8954_v26  ;;  %v8973_v4 = vcombine.high %v1069_v61, %v1073_v62  ;;  %v8972_v13 = vcombine.low %v1069_v61, %v1073_v62  ;;  %v1112_v61 = vld [vmem:[%s10614_s15 + $0x5a0] sm:$0xff]  ;;  %v1109_v62 = vld [vmem:[%s10614_s15 + $0x588] sm:$0xff] }
 0x119   : > { %7159 = vmatprep.subr.bf16.mxu0 %v8963_v32 }
 0x11a   : > { %7463 = vmatpush1.bf16.msra.mxu1 %v8900_v1  ;;  %v414_v1 = vrot.slane %v10743_v46, %v10753_v55 }
 0x11b   : > { %7464 = vmatprep.subr.bf16.mxu1 %v8909_v2 }
 0x11e   : > { %7465 = vmatpush1.bf16.msra.mxu1 %v8908_v5  ;;  %v1076_v5 = vld [vmem:[%s10614_s15 + $0x480] sm:$0xff] }
 0x11f   : > { %7466 = vmatprep.subr.bf16.mxu1 %v8917_v6  ;;  %v1080_v6 = vld [vmem:[%s10614_s15 + $0x4a0] sm:$0xff] }
 0x122   : > { %7467 = vmatpush1.bf16.msra.mxu1 %v8916_v9 }
 0x123   : > { %7468 = vmatprep.subr.bf16.mxu1 %v8925_v10 }
 0x126   : > { %7469 = vmatpush1.bf16.msra.mxu1 %v8924_v16  ;;  %v8979_v16 = vcombine.high %v1076_v5, %v1080_v6 }
 0x127   : > { %7470 = vmatprep.subr.bf16.mxu1 %v8933_v18  ;;  %v1084_v18 = vld [vmem:[%s10614_s15 + $0x4c0] sm:$0xff] }
 0x128   : > { %v8987_v26 = vcombine.high %v1084_v18, %v1088_v19 }
 0x12a   : > { %7471 = vmatpush1.bf16.msra.mxu1 %v8932_v23  ;;  %v8978_v23 = vcombine.low %v1076_v5, %v1080_v6 }
 0x12b   : > { %7472 = vmatprep.subr.bf16.mxu1 %v8941_v25 }
 0x12e   : > { %7473 = vmatpush1.bf16.msra.mxu1 %v8940_v31  ;;  %v1097_v31 = vld [vmem:[%s10614_s15 + $0x528] sm:$0xff] }
 0x12f   : > { %7474 = vmatprep.subr.bf16.mxu1 %v8949_v34  ;;  %v8986_v34 = vcombine.low %v1084_v18, %v1088_v19  ;;  %v1120_v19 = vld [vmem:[%s10614_s15 + $0x5e0] sm:$0xff] }
 0x132   : > { %7475 = vmatpush1.bf16.msra.mxu1 %v8948_v39  ;;  %v8997_v39 = vcombine.high %v1093_v30, %v1097_v31 }
 0x133   : > { %7476 = vmatprep.subr.bf16.mxu1 %v8957_v40  ;;  %v1100_v40 = vld [vmem:[%s10614_s15 + $0x540] sm:$0xff] }
 0x134   : > { %v9002_v7 = vcombine.low %v1100_v40, %v1104_v43 }
 0x136   : > { %7477 = vmatpush1.bf16.msra.mxu1 %v8956_v41 }
 0x137   : > { %7487 = vmatprep.subr.bf16.mxu1 %v8965_v42 }
 0x1a4   : > { %v606_v50 = vpop.f32.mrb[0].mxu1 }
 0x1a5   : > { %v607_v51 = vadd.f32 %v606_v50, %v402_v48  ;;  %v608_v52 = vpop.f32.mrb[1].mxu1  ;;  %v1101_v48 = vld [vmem:[%s10614_s15 + $0x548] sm:$0xff] }
 0x1a6   : > { %v609_v53 = vadd.f32 %v608_v52, %v406_v49  ;;  %v610_v54 = vpop.f32.mrb[2].mxu1  ;;  %v10782_v28 = vpop.f32.mrb[0].mxu0  ;;  %v1105_v49 = vld [vmem:[%s10614_s15 + $0x568] sm:$0xff]  ;;  %v8994_v52 = vcombine.low %v1092_v12, %v1096_v29 }
 0x1a7   : > { %v900_v56 = vmax.f32 %v607_v51, 0.0  ;;  %v611_v57 = vpop.f32.mrb[3].mxu1  ;;  %v10793_v37 = vpop.f32.mrb[1].mxu0  ;;  %v10800_v51 = vsub.s32 4, %v10738_v44  ;;  %v10802_v54 = vld [vmem:[#allocation6 + $0x8] sm:$0xff]  ;;  %v9004_v8 = vcombine.low %v1101_v48, %v1105_v49 }
 0x1a8   : > { %v901_v59 = vmax.f32 %v609_v53, 0.0  ;;  %v774_v42 = vpop.f32.mrb[2].mxu0  ;;  %v8996_v53 = vcombine.low %v1093_v30, %v1097_v31  ;;  %v9005_v57 = vcombine.high %v1101_v48, %v1105_v49  ;;  %v446_v12 = vrot.slane %v10802_v54, %v10753_v55  ;;  %v1124_v31 = vld [vmem:[%s10614_s15 + $0x600] sm:$0xff] }
 0x1a9   : > { %v10763_v2 = vpack.c.bf16 %v900_v56, %v900_v56  ;;  %v775_v50 = vpop.f32.mrb[3].mxu0  ;;  %v9003_v56 = vcombine.high %v1100_v40, %v1104_v43 }
 0x1aa   : > { %v10759_v63 = vpack.c.bf16 %v901_v59, %v901_v59  ;;  %v450_v59 = vrot.slane %v10802_v54, %v10800_v51 }
 0x1ac   : > { %7150 = vmatprep.mubr.bf16.mxu0 %v10759_v63  ;;  %7478 = vmatprep.mubr.bf16.mxu1 %v10759_v63  ;;  %v10771_v9 = vpop.f32.mrb[4].mxu1 }
 0x1ad   : > { %7151 = vmatmul.mubr.bf16.vlgmr.msra.gmra.mrb[8].mxu0 %v10763_v2  ;;  %7479 = vmatmul.mubr.bf16.vlgmr.msra.gmra.mrb[24].mxu1 %v10763_v2  ;;  %v649_v10 = vpop.f32.mrb[5].mxu1 }
 0x1ae   : > { %7160 = vmatpush1.bf16.msra.mxu0 %v8962_v35  ;;  %7488 = vmatpush1.bf16.msra.mxu1 %v8964_v36  ;;  %v650_v14 = vadd.f32 %v649_v10, %v414_v1  ;;  %v651_v15 = vpop.f32.mrb[6].mxu1  ;;  %v8988_v35 = vcombine.low %v1085_v20, %v1089_v21  ;;  %v852_v60 = vpop.f32.mrb[4].mxu0  ;;  %v1113_v1 = vld [vmem:[%s10614_s15 + $0x5a8] sm:$0xff] }
 0x1af   : > { %7161 = vmatprep.subr.bf16.mxu0 %v8971_v3  ;;  %7489 = vmatprep.subr.bf16.mxu1 %v8973_v4  ;;  %v652_v0 = vpop.f32.mrb[7].mxu1  ;;  %v10811_v3 = vsub.s32 5, %v10738_v44  ;;  %v10817_v6 = vadd.f32 %v852_v60, %v450_v59  ;;  %v9013_v15 = vcombine.high %v1109_v62, %v1113_v1  ;;  %v1117_v20 = vld [vmem:[%s10614_s15 + $0x5c8] sm:$0xff]  ;;  %v10850_v60 = vsub.s32 7, %v10738_v44 }
 0x1b0   : > { %v903_v22 = vmax.f32 %v650_v14, 0.0  ;;  %v9011_v14 = vcombine.high %v1108_v58, %v1112_v61  ;;  %v1121_v21 = vld [vmem:[%s10614_s15 + $0x5e8] sm:$0xff] }
 0x1b1   : > { %v9021_v30 = vcombine.high %v1117_v20, %v1121_v21  ;;  %v9020_v42 = vcombine.low %v1117_v20, %v1121_v21  ;;  %v1137_v59 = vld [vmem:[%s10614_s15 + $0x668] sm:$0xff] }
 0x1b2   : > { %7162 = vmatpush1.bf16.msra.mxu0 %v8970_v11  ;;  %7490 = vmatpush1.bf16.msra.mxu1 %v8972_v13  ;;  %v10779_v25 = vpack.c.bf16 %v903_v22, %v903_v22  ;;  %v454_v11 = vrot.slane %v10802_v54, %v10811_v3  ;;  %v854_v13 = vpop.f32.mrb[5].mxu0 }
 0x1b3   : > { %7163 = vmatprep.subr.bf16.mxu0 %v8979_v16  ;;  %7491 = vmatprep.subr.bf16.mxu1 %v8981_v17  ;;  %v1116_v16 = vld [vmem:[%s10614_s15 + $0x5c0] sm:$0xff]  ;;  %v10823_v17 = vsub.s32 2, %v10738_v44  ;;  %v856_v0 = vpop.f32.mrb[6].mxu0 }
 0x1b4   : > { %7191 = vmatprep.mubr.bf16.mxu0 %v10779_v25  ;;  %7519 = vmatprep.mubr.bf16.mxu1 %v10779_v25  ;;  %v10789_v32 = vpop.f32.mrb[8].mxu1  ;;  %v10828_v22 = vadd.f32 %v854_v13, %v454_v11  ;;  %v9019_v29 = vcombine.high %v1116_v16, %v1120_v19  ;;  %v1140_v11 = vld [vmem:[%s10614_s15 + $0x680] sm:$0xff] }
 0x1b5   : > { %v10791_v33 = vpop.f32.mrb[9].mxu1  ;;  %v1144_v13 = vld [vmem:[%s10614_s15 + $0x6a0] sm:$0xff] }
 0x1b6   : > { %7164 = vmatpush1.bf16.msra.mxu0 %v8978_v23  ;;  %7492 = vmatpush1.bf16.msra.mxu1 %v8980_v24  ;;  %v692_v36 = vpop.f32.mrb[10].mxu1  ;;  %v857_v23 = vpop.f32.mrb[7].mxu0  ;;  %v442_v24 = vrot.slane %v10802_v54, %v10823_v17  ;;  %v9043_v21 = vcombine.high %v1140_v11, %v1144_v13 }
 0x1b7   : > { %7165 = vmatprep.subr.bf16.mxu0 %v8987_v26  ;;  %7493 = vmatprep.subr.bf16.mxu1 %v8989_v27  ;;  %v693_v41 = vpop.f32.mrb[11].mxu1  ;;  %v9010_v26 = vcombine.low %v1108_v58, %v1112_v61  ;;  %v9012_v27 = vcombine.low %v1109_v62, %v1113_v1  ;;  %v1129_v36 = vld [vmem:[%s10614_s15 + $0x628] sm:$0xff] }
 0x1b8   : > { %v9018_v41 = vcombine.low %v1116_v16, %v1120_v19  ;;  %v1133_v58 = vld [vmem:[%s10614_s15 + $0x648] sm:$0xff] }
 0x1ba   : > { %7166 = vmatpush1.bf16.msra.mxu0 %v8986_v34  ;;  %7494 = vmatpush1.bf16.msra.mxu1 %v8988_v35  ;;  %v1128_v34 = vld [vmem:[%s10614_s15 + $0x620] sm:$0xff]  ;;  %v1125_v35 = vld [vmem:[%s10614_s15 + $0x608] sm:$0xff] }
 0x1bb   : > { %7167 = vmatprep.subr.bf16.mxu0 %v8995_v38  ;;  %7495 = vmatprep.subr.bf16.mxu1 %v8997_v39  ;;  %v9027_v49 = vcombine.high %v1124_v31, %v1128_v34  ;;  %v9029_v50 = vcombine.high %v1125_v35, %v1129_v36  ;;  %v9026_v62 = vcombine.low %v1124_v31, %v1128_v34 }
 0x1bc   : > { %v10813_v4 = vpop.f32.mrb[12].mxu1  ;;  %v9028_v1 = vcombine.low %v1125_v35, %v1129_v36  ;;  %v1156_v36 = vld [vmem:[%s10614_s15 + $0x700] sm:$0xff] }
 0x1bd   : > { %v10815_v5 = vpop.f32.mrb[13].mxu1 }
 0x1be   : > { %7168 = vmatpush1.bf16.msra.mxu0 %v8994_v52  ;;  %7496 = vmatpush1.bf16.msra.mxu1 %v8996_v53  ;;  %v733_v10 = vpop.f32.mrb[14].mxu1  ;;  %v1132_v52 = vld [vmem:[%s10614_s15 + $0x640] sm:$0xff]  ;;  %v10844_v53 = vsub.s32 6, %v10738_v44  ;;  %v1145_v44 = vld [vmem:[%s10614_s15 + $0x6a8] sm:$0xff] }
 0x1bf   : > { %7169 = vmatprep.subr.bf16.mxu0 %v9003_v56  ;;  %7497 = vmatprep.subr.bf16.mxu1 %v9005_v57  ;;  %v734_v18 = vpop.f32.mrb[15].mxu1  ;;  %v1136_v57 = vld [vmem:[%s10614_s15 + $0x660] sm:$0xff]  ;;  %v9037_v10 = vcombine.high %v1133_v58, %v1137_v59 }
 0x1c0   : > { %v458_v61 = vrot.slane %v10802_v54, %v10844_v53  ;;  %v9034_v0 = vcombine.low %v1132_v52, %v1136_v57 }
 0x1c2   : > { %7170 = vmatpush1.bf16.msra.mxu0 %v9002_v7  ;;  %7498 = vmatpush1.bf16.msra.mxu1 %v9004_v8  ;;  %v462_v7 = vrot.slane %v10802_v54, %v10850_v60  ;;  %v9035_v8 = vcombine.high %v1132_v52, %v1136_v57  ;;  %v9036_v54 = vcombine.low %v1133_v58, %v1137_v59  ;;  %v1164_v52 = vld [vmem:[%s10614_s15 + $0x740] sm:$0xff]  ;;  %v1165_v57 = vld [vmem:[%s10614_s15 + $0x748] sm:$0xff] }
 0x1c3   : > { %7171 = vmatprep.subr.bf16.mxu0 %v9011_v14  ;;  %7499 = vmatprep.subr.bf16.mxu1 %v9013_v15  ;;  %v1141_v14 = vld [vmem:[%s10614_s15 + $0x688] sm:$0xff] }
 0x1c4   : > { %v811_v38 = vpop.f32.mrb[16].mxu1  ;;  %v9045_v23 = vcombine.high %v1141_v14, %v1145_v44  ;;  %v9044_v31 = vcombine.low %v1141_v14, %v1145_v44  ;;  %v1169_v58 = vld [vmem:[%s10614_s15 + $0x768] sm:$0xff] }
 0x1c5   : > { %v10838_v39 = vadd.f32 %v811_v38, %v442_v24  ;;  %v813_v40 = vpop.f32.mrb[17].mxu1  ;;  %v1148_v24 = vld [vmem:[%s10614_s15 + $0x6c0] sm:$0xff]  ;;  %v9068_v44 = vcombine.low %v1165_v57, %v1169_v58 }
 0x1c6   : > { %7172 = vmatpush1.bf16.msra.mxu0 %v9010_v26  ;;  %7500 = vmatpush1.bf16.msra.mxu1 %v9012_v27  ;;  %v10840_v43 = vadd.f32 %v813_v40, %v446_v12  ;;  %v815_v48 = vpop.f32.mrb[18].mxu1  ;;  %v1152_v27 = vld [vmem:[%s10614_s15 + $0x6e0] sm:$0xff]  ;;  %v1149_v12 = vld [vmem:[%s10614_s15 + $0x6c8] sm:$0xff] }
 0x1c7   : > { %7173 = vmatprep.subr.bf16.mxu0 %v9019_v29  ;;  %7501 = vmatprep.subr.bf16.mxu1 %v9021_v30  ;;  %v816_v56 = vpop.f32.mrb[19].mxu1  ;;  %v1153_v29 = vld [vmem:[%s10614_s15 + $0x6e8] sm:$0xff]  ;;  %v9042_v30 = vcombine.low %v1140_v11, %v1144_v13  ;;  %v9051_v34 = vcombine.high %v1148_v24, %v1152_v27  ;;  %v1160_v38 = vld [vmem:[%s10614_s15 + $0x720] sm:$0xff]  ;;  %v410_v13 = vrot.slane %v10743_v46, %v10823_v17 }
 0x1c8   : > { %v9053_v35 = vcombine.high %v1149_v12, %v1153_v29  ;;  %v1157_v40 = vld [vmem:[%s10614_s15 + $0x708] sm:$0xff]  ;;  %v9052_v48 = vcombine.low %v1149_v12, %v1153_v29  ;;  %v1168_v56 = vld [vmem:[%s10614_s15 + $0x760] sm:$0xff]  ;;  %v9058_v59 = vcombine.low %v1156_v36, %v1160_v38 }
 0x1c9   : > { %v1177_v11 = vld [vmem:[%s10614_s15 + $0x7a8] sm:$0xff]  ;;  %v9066_v14 = vcombine.low %v1164_v52, %v1168_v56 }
 0x1ca   : > { %7174 = vmatpush1.bf16.msra.mxu0 %v9018_v41  ;;  %7502 = vmatpush1.bf16.msra.mxu1 %v9020_v42  ;;  %v1161_v41 = vld [vmem:[%s10614_s15 + $0x728] sm:$0xff]  ;;  %v9050_v42 = vcombine.low %v1148_v24, %v1152_v27  ;;  %v648_v24 = vadd.f32 %v10771_v9, %v410_v13 }
 0x1cb   : > { %7175 = vmatprep.subr.bf16.mxu0 %v9027_v49  ;;  %7503 = vmatprep.subr.bf16.mxu1 %v9029_v50  ;;  %v9059_v49 = vcombine.high %v1156_v36, %v1160_v38  ;;  %v9061_v50 = vcombine.high %v1157_v40, %v1161_v41 }
 0x1cc   : > { %v893_v15 = vpop.f32.mrb[20].mxu1  ;;  %v902_v38 = vmax.f32 %v648_v24, 0.0 }
 0x1cd   : > { %v10860_v16 = vadd.f32 %v893_v15, %v458_v61  ;;  %v895_v18 = vpop.f32.mrb[21].mxu1  ;;  %v9060_v61 = vcombine.low %v1157_v40, %v1161_v41 }
 0x1ce   : > { %7176 = vmatpush1.bf16.msra.mxu0 %v9026_v62  ;;  %7504 = vmatpush1.bf16.msra.mxu1 %v9028_v1  ;;  %v10862_v19 = vadd.f32 %v895_v18, %v462_v7  ;;  %v897_v20 = vpop.f32.mrb[22].mxu1  ;;  %v9067_v62 = vcombine.high %v1164_v52, %v1168_v56  ;;  %v9069_v1 = vcombine.high %v1165_v57, %v1169_v58  ;;  %v1172_v7 = vld [vmem:[%s10614_s15 + $0x780] sm:$0xff]  ;;  %v1201_v52 = vld [vmem:[%s10614_s15 + $0x868] sm:$0xff] }
 0x1cf   : > { %7177 = vmatprep.subr.bf16.mxu0 %v9035_v8  ;;  %7505 = vmatprep.subr.bf16.mxu1 %v9037_v10  ;;  %v898_v26 = vpop.f32.mrb[23].mxu1  ;;  %v1176_v8 = vld [vmem:[%s10614_s15 + $0x7a0] sm:$0xff]  ;;  %v1173_v10 = vld [vmem:[%s10614_s15 + $0x788] sm:$0xff]  ;;  %v10898_v57 = vpack.c.bf16 %v902_v38, %v902_v38 }
 0x1d0   : > { %v9075_v15 = vcombine.high %v1172_v7, %v1176_v8  ;;  %v9077_v18 = vcombine.high %v1173_v10, %v1177_v11  ;;  %v1181_v20 = vld [vmem:[%s10614_s15 + $0x7c8] sm:$0xff]  ;;  %v9074_v26 = vcombine.low %v1172_v7, %v1176_v8  ;;  %v9076_v27 = vcombine.low %v1173_v10, %v1177_v11  ;;  %v1232_v38 = vld [vmem:[%s10614_s15 + $0x960] sm:$0xff] }
 0x1d1   : > { %v1205_v7 = vld [vmem:[%s10614_s15 + $0x888] sm:$0xff] }
 0x1d2   : > { %7178 = vmatpush1.bf16.msra.mxu0 %v9034_v0  ;;  %7506 = vmatpush1.bf16.msra.mxu1 %v9036_v54  ;;  %v1180_v0 = vld [vmem:[%s10614_s15 + $0x7c0] sm:$0xff]  ;;  %v1209_v8 = vld [vmem:[%s10614_s15 + $0x8a8] sm:$0xff] }
 0x1d3   : > { %7179 = vmatprep.subr.bf16.mxu0 %v9043_v21  ;;  %7507 = vmatprep.subr.bf16.mxu1 %v9045_v23  ;;  %v1184_v54 = vld [vmem:[%s10614_s15 + $0x7e0] sm:$0xff]  ;;  %v1185_v21 = vld [vmem:[%s10614_s15 + $0x7e8] sm:$0xff]  ;;  %v422_v23 = vrot.slane %v10743_v46, %v10811_v3 }
 0x1d4   : > { %v9083_v12 = vcombine.high %v1180_v0, %v1184_v54  ;;  %v9085_v29 = vcombine.high %v1181_v20, %v1185_v21  ;;  %v9082_v9 = vcombine.low %v1180_v0, %v1184_v54  ;;  %v9084_v40 = vcombine.low %v1181_v20, %v1185_v21  ;;  %v1213_v0 = vld [vmem:[%s10614_s15 + $0x8c8] sm:$0xff] }
 0x1d5   : > { %v691_v36 = vadd.f32 %v10791_v33, %v422_v23  ;;  %v1217_v54 = vld [vmem:[%s10614_s15 + $0x8e8] sm:$0xff]  ;;  %v9108_v21 = vcombine.low %v1205_v7, %v1209_v8 }
 0x1d6   : > { %7180 = vmatpush1.bf16.msra.mxu0 %v9042_v30  ;;  %7508 = vmatpush1.bf16.msra.mxu1 %v9044_v31  ;;  %v1188_v30 = vld [vmem:[%s10614_s15 + $0x800] sm:$0xff]  ;;  %v9117_v24 = vcombine.high %v1213_v0, %v1217_v54 }
 0x1d7   : > { %7181 = vmatprep.subr.bf16.mxu0 %v9051_v34  ;;  %7509 = vmatprep.subr.bf16.mxu1 %v9053_v35  ;;  %v1192_v31 = vld [vmem:[%s10614_s15 + $0x820] sm:$0xff]  ;;  %v1189_v34 = vld [vmem:[%s10614_s15 + $0x808] sm:$0xff]  ;;  %v905_v56 = vmax.f32 %v691_v36, 0.0 }
 0x1d8   : > { %v1193_v35 = vld [vmem:[%s10614_s15 + $0x828] sm:$0xff]  ;;  %v9091_v41 = vcombine.high %v1188_v30, %v1192_v31  ;;  %v9090_v33 = vcombine.low %v1188_v30, %v1192_v31  ;;  %v9116_v31 = vcombine.low %v1213_v0, %v1217_v54  ;;  %v1228_v36 = vld [vmem:[%s10614_s15 + $0x940] sm:$0xff] }
 0x1d9   : > { %v9092_v58 = vcombine.low %v1189_v34, %v1193_v35  ;;  %v10904_v10 = vpack.c.bf16 %v905_v56, %v905_v56  ;;  %v1237_v56 = vld [vmem:[%s10614_s15 + $0x988] sm:$0xff]  ;;  %v1256_v0 = vld [vmem:[%s10614_s15 + $0xa20] sm:$0xff] }
 0x1da   : > { %7182 = vmatpush1.bf16.msra.mxu0 %v9050_v42  ;;  %7510 = vmatpush1.bf16.msra.mxu1 %v9052_v48  ;;  %v9093_v42 = vcombine.high %v1189_v34, %v1193_v35  ;;  %v1196_v48 = vld [vmem:[%s10614_s15 + $0x840] sm:$0xff]  ;;  %v1253_v54 = vld [vmem:[%s10614_s15 + $0xa08] sm:$0xff] }
 0x1db   : > { %7183 = vmatprep.subr.bf16.mxu0 %v9059_v49  ;;  %7511 = vmatprep.subr.bf16.mxu1 %v9061_v50  ;;  %v1200_v49 = vld [vmem:[%s10614_s15 + $0x860] sm:$0xff]  ;;  %v1197_v50 = vld [vmem:[%s10614_s15 + $0x848] sm:$0xff] }
 0x1dc   : > { %v9098_v11 = vcombine.low %v1196_v48, %v1200_v49  ;;  %v9100_v13 = vcombine.low %v1197_v50, %v1201_v52 }
 0x1de   : > { %7184 = vmatpush1.bf16.msra.mxu0 %v9058_v59  ;;  %7512 = vmatpush1.bf16.msra.mxu1 %v9060_v61  ;;  %v9099_v59 = vcombine.high %v1196_v48, %v1200_v49  ;;  %v9101_v61 = vcombine.high %v1197_v50, %v1201_v52  ;;  %v9131_v48 = vcombine.high %v1228_v36, %v1232_v38  ;;  %v1236_v50 = vld [vmem:[%s10614_s15 + $0x980] sm:$0xff] }
 0x1df   : > { %7185 = vmatprep.subr.bf16.mxu0 %v9067_v62  ;;  %7513 = vmatprep.subr.bf16.mxu1 %v9069_v1  ;;  %v1204_v62 = vld [vmem:[%s10614_s15 + $0x880] sm:$0xff] }
 0x1e0   : > { %v1208_v1 = vld [vmem:[%s10614_s15 + $0x8a0] sm:$0xff] }
 0x1e1   : > { %v9106_v20 = vcombine.low %v1204_v62, %v1208_v1  ;;  %v1240_v52 = vld [vmem:[%s10614_s15 + $0x9a0] sm:$0xff] }
 0x1e2   : > { %7186 = vmatpush1.bf16.msra.mxu0 %v9066_v14  ;;  %7514 = vmatpush1.bf16.msra.mxu1 %v9068_v44  ;;  %v9107_v14 = vcombine.high %v1204_v62, %v1208_v1  ;;  %v9109_v44 = vcombine.high %v1205_v7, %v1209_v8  ;;  %v1244_v1 = vld [vmem:[%s10614_s15 + $0x9c0] sm:$0xff]  ;;  %v1245_v8 = vld [vmem:[%s10614_s15 + $0x9c8] sm:$0xff] }
 0x1e3   : > { %7187 = vmatprep.subr.bf16.mxu0 %v9075_v15  ;;  %7515 = vmatprep.subr.bf16.mxu1 %v9077_v18  ;;  %v1212_v15 = vld [vmem:[%s10614_s15 + $0x8c0] sm:$0xff] }
 0x1e4   : > { %v1216_v18 = vld [vmem:[%s10614_s15 + $0x8e0] sm:$0xff] }
 0x1e5   : > { %v9115_v23 = vcombine.high %v1212_v15, %v1216_v18  ;;  %v9114_v30 = vcombine.low %v1212_v15, %v1216_v18  ;;  %v1248_v7 = vld [vmem:[%s10614_s15 + $0x9e0] sm:$0xff] }
 0x1e6   : > { %7188 = vmatpush1.bf16.msra.mxu0 %v9074_v26  ;;  %7516 = vmatpush1.bf16.msra.mxu1 %v9076_v27  ;;  %v1220_v26 = vld [vmem:[%s10614_s15 + $0x900] sm:$0xff] }
 0x1e7   : > { %7189 = vmatprep.subr.bf16.mxu0 %v9083_v12  ;;  %7517 = vmatprep.subr.bf16.mxu1 %v9085_v29  ;;  %v1224_v27 = vld [vmem:[%s10614_s15 + $0x920] sm:$0xff]  ;;  %v1221_v12 = vld [vmem:[%s10614_s15 + $0x908] sm:$0xff] }
 0x1e8   : > { %v1225_v29 = vld [vmem:[%s10614_s15 + $0x928] sm:$0xff]  ;;  %v9123_v34 = vcombine.high %v1220_v26, %v1224_v27  ;;  %v1252_v18 = vld [vmem:[%s10614_s15 + $0xa00] sm:$0xff] }
 0x1e9   : > { %v9125_v35 = vcombine.high %v1221_v12, %v1225_v29 }
 0x1ea   : > { %7190 = vmatpush1.bf16.msra.mxu0 %v9082_v9  ;;  %7518 = vmatpush1.bf16.msra.mxu1 %v9084_v40  ;;  %v1229_v9 = vld [vmem:[%s10614_s15 + $0x948] sm:$0xff] }
 0x1eb   : > { %7200 = vmatprep.subr.bf16.mxu0 %v9091_v41  ;;  %7528 = vmatprep.subr.bf16.mxu1 %v9093_v42  ;;  %v1233_v40 = vld [vmem:[%s10614_s15 + $0x968] sm:$0xff]  ;;  %v9122_v41 = vcombine.low %v1220_v26, %v1224_v27  ;;  %v9124_v42 = vcombine.low %v1221_v12, %v1225_v29  ;;  %v1260_v27 = vld [vmem:[%s10614_s15 + $0xa40] sm:$0xff] }
 0x1ec   : > { %v9133_v49 = vcombine.high %v1229_v9, %v1233_v40  ;;  %v1264_v12 = vld [vmem:[%s10614_s15 + $0xa60] sm:$0xff]  ;;  %v1261_v29 = vld [vmem:[%s10614_s15 + $0xa48] sm:$0xff] }
 0x1ed   : > { %7192 = vmatmul.mubr.bf16.vlgmr.msra.gmra.mrb[8].mxu0 %v10898_v57  ;;  %7520 = vmatmul.mubr.bf16.vlgmr.msra.gmra.mrb[24].mxu1 %v10898_v57 }
 0x1ee   : > { %7201 = vmatpush1.bf16.msra.mxu0 %v9090_v33  ;;  %7529 = vmatpush1.bf16.msra.mxu1 %v9092_v58  ;;  %v1241_v33 = vld [vmem:[%s10614_s15 + $0x9a8] sm:$0xff]  ;;  %v9130_v58 = vcombine.low %v1228_v36, %v1232_v38  ;;  %v1268_v38 = vld [vmem:[%s10614_s15 + $0xa80] sm:$0xff] }
 0x1ef   : > { %7202 = vmatprep.subr.bf16.mxu0 %v9099_v59  ;;  %7530 = vmatprep.subr.bf16.mxu1 %v9101_v61  ;;  %v9132_v59 = vcombine.low %v1229_v9, %v1233_v40  ;;  %v9139_v61 = vcombine.high %v1236_v50, %v1240_v52  ;;  %v9141_v62 = vcombine.high %v1237_v56, %v1241_v33  ;;  %v1272_v9 = vld [vmem:[%s10614_s15 + $0xaa0] sm:$0xff]  ;;  %v1269_v40 = vld [vmem:[%s10614_s15 + $0xa88] sm:$0xff] }
 0x1f0   : > { %7232 = vmatprep.mubr.bf16.mxu0 %v10904_v10  ;;  %7560 = vmatprep.mubr.bf16.mxu1 %v10904_v10 }
 0x1f2   : > { %7203 = vmatpush1.bf16.msra.mxu0 %v9098_v11  ;;  %7531 = vmatpush1.bf16.msra.mxu1 %v9100_v13  ;;  %v1249_v11 = vld [vmem:[%s10614_s15 + $0x9e8] sm:$0xff]  ;;  %v9138_v13 = vcombine.low %v1236_v50, %v1240_v52  ;;  %v1276_v52 = vld [vmem:[%s10614_s15 + $0xac0] sm:$0xff] }
 0x1f3   : > { %7204 = vmatprep.subr.bf16.mxu0 %v9107_v14  ;;  %7532 = vmatprep.subr.bf16.mxu1 %v9109_v44  ;;  %v9140_v14 = vcombine.low %v1237_v56, %v1241_v33  ;;  %v9147_v44 = vcombine.high %v1244_v1, %v1248_v7  ;;  %v9149_v15 = vcombine.high %v1245_v8, %v1249_v11  ;;  %v1280_v56 = vld [vmem:[%s10614_s15 + $0xae0] sm:$0xff]  ;;  %v1277_v33 = vld [vmem:[%s10614_s15 + $0xac8] sm:$0xff] }
 0x1f6   : > { %7205 = vmatpush1.bf16.msra.mxu0 %v9106_v20  ;;  %7533 = vmatpush1.bf16.msra.mxu1 %v9108_v21  ;;  %v1257_v20 = vld [vmem:[%s10614_s15 + $0xa28] sm:$0xff]  ;;  %v9146_v21 = vcombine.low %v1244_v1, %v1248_v7  ;;  %v1284_v7 = vld [vmem:[%s10614_s15 + $0xb00] sm:$0xff] }
 0x1f7   : > { %7206 = vmatprep.subr.bf16.mxu0 %v9115_v23  ;;  %7534 = vmatprep.subr.bf16.mxu1 %v9117_v24  ;;  %v9148_v23 = vcombine.low %v1245_v8, %v1249_v11  ;;  %v9155_v24 = vcombine.high %v1252_v18, %v1256_v0  ;;  %v9157_v26 = vcombine.high %v1253_v54, %v1257_v20  ;;  %v1288_v8 = vld [vmem:[%s10614_s15 + $0xb20] sm:$0xff]  ;;  %v1285_v11 = vld [vmem:[%s10614_s15 + $0xb08] sm:$0xff] }
 0x1fa   : > { %7207 = vmatpush1.bf16.msra.mxu0 %v9114_v30  ;;  %7535 = vmatpush1.bf16.msra.mxu1 %v9116_v31  ;;  %v1265_v30 = vld [vmem:[%s10614_s15 + $0xa68] sm:$0xff]  ;;  %v9154_v31 = vcombine.low %v1252_v18, %v1256_v0  ;;  %v1292_v0 = vld [vmem:[%s10614_s15 + $0xb40] sm:$0xff] }
 0x1fb   : > { %7208 = vmatprep.subr.bf16.mxu0 %v9123_v34  ;;  %7536 = vmatprep.subr.bf16.mxu1 %v9125_v35  ;;  %v9156_v34 = vcombine.low %v1253_v54, %v1257_v20  ;;  %v9163_v35 = vcombine.high %v1260_v27, %v1264_v12  ;;  %v9165_v36 = vcombine.high %v1261_v29, %v1265_v30  ;;  %v1296_v54 = vld [vmem:[%s10614_s15 + $0xb60] sm:$0xff]  ;;  %v1293_v20 = vld [vmem:[%s10614_s15 + $0xb48] sm:$0xff] }
 0x1fe   : > { %7209 = vmatpush1.bf16.msra.mxu0 %v9122_v41  ;;  %7537 = vmatpush1.bf16.msra.mxu1 %v9124_v42  ;;  %v1273_v41 = vld [vmem:[%s10614_s15 + $0xaa8] sm:$0xff]  ;;  %v9162_v42 = vcombine.low %v1260_v27, %v1264_v12  ;;  %v1300_v12 = vld [vmem:[%s10614_s15 + $0xb80] sm:$0xff] }
 0x1ff   : > { %7210 = vmatprep.subr.bf16.mxu0 %v9131_v48  ;;  %7538 = vmatprep.subr.bf16.mxu1 %v9133_v49  ;;  %v9164_v48 = vcombine.low %v1261_v29, %v1265_v30  ;;  %v9171_v49 = vcombine.high %v1268_v38, %v1272_v9  ;;  %v9173_v50 = vcombine.high %v1269_v40, %v1273_v41  ;;  %v1304_v29 = vld [vmem:[%s10614_s15 + $0xba0] sm:$0xff]  ;;  %v1301_v30 = vld [vmem:[%s10614_s15 + $0xb88] sm:$0xff] }
 0x202   : > { %7211 = vmatpush1.bf16.msra.mxu0 %v9130_v58  ;;  %7539 = vmatpush1.bf16.msra.mxu1 %v9132_v59  ;;  %v1281_v58 = vld [vmem:[%s10614_s15 + $0xae8] sm:$0xff]  ;;  %v9170_v59 = vcombine.low %v1268_v38, %v1272_v9  ;;  %v9203_v38 = vcombine.high %v1300_v12, %v1304_v29 }
 0x203   : > { %7212 = vmatprep.subr.bf16.mxu0 %v9139_v61  ;;  %7540 = vmatprep.subr.bf16.mxu1 %v9141_v62  ;;  %v9172_v61 = vcombine.low %v1269_v40, %v1273_v41  ;;  %v9179_v62 = vcombine.high %v1276_v52, %v1280_v56  ;;  %v9181_v1 = vcombine.high %v1277_v33, %v1281_v58  ;;  %v1308_v40 = vld [vmem:[%s10614_s15 + $0xbc0] sm:$0xff] }
 0x204   : > { %v1312_v41 = vld [vmem:[%s10614_s15 + $0xbe0] sm:$0xff] }
 0x206   : > { %7213 = vmatpush1.bf16.msra.mxu0 %v9138_v13  ;;  %7541 = vmatpush1.bf16.msra.mxu1 %v9140_v14  ;;  %v1289_v13 = vld [vmem:[%s10614_s15 + $0xb28] sm:$0xff]  ;;  %v9178_v14 = vcombine.low %v1276_v52, %v1280_v56  ;;  %v9202_v52 = vcombine.low %v1300_v12, %v1304_v29 }
 0x207   : > { %7214 = vmatprep.subr.bf16.mxu0 %v9147_v44  ;;  %7542 = vmatprep.subr.bf16.mxu1 %v9149_v15  ;;  %v9180_v44 = vcombine.low %v1277_v33, %v1281_v58  ;;  %v9187_v15 = vcombine.high %v1284_v7, %v1288_v8  ;;  %v9189_v18 = vcombine.high %v1285_v11, %v1289_v13  ;;  %v1337_v12 = vld [vmem:[%s10614_s15 + $0xca8] sm:$0xff] }
 0x208   : > { %v9211_v33 = vcombine.high %v1308_v40, %v1312_v41 }
 0x20a   : > { %7215 = vmatpush1.bf16.msra.mxu0 %v9146_v21  ;;  %7543 = vmatpush1.bf16.msra.mxu1 %v9148_v23  ;;  %v1297_v21 = vld [vmem:[%s10614_s15 + $0xb68] sm:$0xff]  ;;  %v9186_v23 = vcombine.low %v1284_v7, %v1288_v8 }
 0x20b   : > { %7216 = vmatprep.subr.bf16.mxu0 %v9155_v24  ;;  %7544 = vmatprep.subr.bf16.mxu1 %v9157_v26  ;;  %v9188_v24 = vcombine.low %v1285_v11, %v1289_v13  ;;  %v9195_v26 = vcombine.high %v1292_v0, %v1296_v54  ;;  %v9197_v27 = vcombine.high %v1293_v20, %v1297_v21 }
 0x20e   : > { %7217 = vmatpush1.bf16.msra.mxu0 %v9154_v31  ;;  %7545 = vmatpush1.bf16.msra.mxu1 %v9156_v34  ;;  %v1305_v31 = vld [vmem:[%s10614_s15 + $0xba8] sm:$0xff]  ;;  %v418_v34 = vrot.slane %v10743_v46, %v10800_v51 }
 0x20f   : > { %7218 = vmatprep.subr.bf16.mxu0 %v9163_v35  ;;  %7546 = vmatprep.subr.bf16.mxu1 %v9165_v36  ;;  %v9194_v35 = vcombine.low %v1292_v0, %v1296_v54  ;;  %v9196_v36 = vcombine.low %v1293_v20, %v1297_v21  ;;  %v9205_v9 = vcombine.high %v1301_v30, %v1305_v31 }
 0x210   : > { %v9204_v56 = vcombine.low %v1301_v30, %v1305_v31 }
 0x212   : > { %7219 = vmatpush1.bf16.msra.mxu0 %v9162_v42  ;;  %7547 = vmatpush1.bf16.msra.mxu1 %v9164_v48  ;;  %v1309_v42 = vld [vmem:[%s10614_s15 + $0xbc8] sm:$0xff] }
 0x213   : > { %7220 = vmatprep.subr.bf16.mxu0 %v9171_v49  ;;  %7548 = vmatprep.subr.bf16.mxu1 %v9173_v50  ;;  %v1313_v48 = vld [vmem:[%s10614_s15 + $0xbe8] sm:$0xff]  ;;  %v430_v49 = vrot.slane %v10743_v46, %v10850_v60  ;;  %v689_v50 = vadd.f32 %v10789_v32, %v418_v34  ;;  %v9210_v32 = vcombine.low %v1308_v40, %v1312_v41 }
 0x214   : > { %v9213_v58 = vcombine.high %v1309_v42, %v1313_v48  ;;  %v9212_v8 = vcombine.low %v1309_v42, %v1313_v48  ;;  %v1345_v40 = vld [vmem:[%s10614_s15 + $0xce8] sm:$0xff] }
 0x215   : > { %v732_v46 = vadd.f32 %v10815_v5, %v430_v49  ;;  %v904_v7 = vmax.f32 %v689_v50, 0.0  ;;  %v1348_v50 = vld [vmem:[%s10614_s15 + $0xd00] sm:$0xff] }
 0x216   : > { %7221 = vmatpush1.bf16.msra.mxu0 %v9170_v59  ;;  %7549 = vmatpush1.bf16.msra.mxu1 %v9172_v61  ;;  %v1316_v59 = vld [vmem:[%s10614_s15 + $0xc00] sm:$0xff] }
 0x217   : > { %7222 = vmatprep.subr.bf16.mxu0 %v9179_v62  ;;  %7550 = vmatprep.subr.bf16.mxu1 %v9181_v1  ;;  %v1320_v61 = vld [vmem:[%s10614_s15 + $0xc20] sm:$0xff]  ;;  %v1317_v62 = vld [vmem:[%s10614_s15 + $0xc08] sm:$0xff]  ;;  %v907_v0 = vmax.f32 %v732_v46, 0.0  ;;  %v10976_v54 = vpack.c.bf16 %v904_v7, %v904_v7 }
 0x218   : > { %v1321_v1 = vld [vmem:[%s10614_s15 + $0xc28] sm:$0xff]  ;;  %v9219_v11 = vcombine.high %v1316_v59, %v1320_v61  ;;  %v9218_v5 = vcombine.low %v1316_v59, %v1320_v61  ;;  %v1360_v46 = vld [vmem:[%s10614_s15 + $0xd60] sm:$0xff] }
 0x219   : > { %v9221_v13 = vcombine.high %v1317_v62, %v1321_v1  ;;  %v9220_v20 = vcombine.low %v1317_v62, %v1321_v1  ;;  %v10982_v29 = vpack.c.bf16 %v907_v0, %v907_v0  ;;  %v1356_v1 = vld [vmem:[%s10614_s15 + $0xd40] sm:$0xff]  ;;  %v1357_v7 = vld [vmem:[%s10614_s15 + $0xd48] sm:$0xff] }
 0x21a   : > { %7223 = vmatpush1.bf16.msra.mxu0 %v9178_v14  ;;  %7551 = vmatpush1.bf16.msra.mxu1 %v9180_v44  ;;  %v1324_v14 = vld [vmem:[%s10614_s15 + $0xc40] sm:$0xff]  ;;  %v1369_v0 = vld [vmem:[%s10614_s15 + $0xda8] sm:$0xff] }
 0x21b   : > { %7224 = vmatprep.subr.bf16.mxu0 %v9187_v15  ;;  %7552 = vmatprep.subr.bf16.mxu1 %v9189_v18  ;;  %v1328_v44 = vld [vmem:[%s10614_s15 + $0xc60] sm:$0xff]  ;;  %v1325_v15 = vld [vmem:[%s10614_s15 + $0xc48] sm:$0xff] }
 0x21c   : > { %v1329_v18 = vld [vmem:[%s10614_s15 + $0xc68] sm:$0xff]  ;;  %v9227_v21 = vcombine.high %v1324_v14, %v1328_v44  ;;  %v9226_v30 = vcombine.low %v1324_v14, %v1328_v44  ;;  %v1364_v44 = vld [vmem:[%s10614_s15 + $0xd80] sm:$0xff] }
 0x21d   : > { %v9228_v31 = vcombine.low %v1325_v15, %v1329_v18 }
 0x21e   : > { %7225 = vmatpush1.bf16.msra.mxu0 %v9186_v23  ;;  %7553 = vmatpush1.bf16.msra.mxu1 %v9188_v24  ;;  %v9229_v23 = vcombine.high %v1325_v15, %v1329_v18  ;;  %v1332_v24 = vld [vmem:[%s10614_s15 + $0xc80] sm:$0xff]  ;;  %v1365_v18 = vld [vmem:[%s10614_s15 + $0xd88] sm:$0xff] }
 0x21f   : > { %7226 = vmatprep.subr.bf16.mxu0 %v9195_v26  ;;  %7554 = vmatprep.subr.bf16.mxu1 %v9197_v27  ;;  %v1336_v26 = vld [vmem:[%s10614_s15 + $0xca0] sm:$0xff]  ;;  %v1333_v27 = vld [vmem:[%s10614_s15 + $0xc88] sm:$0xff] }
 0x220   : > { %v9235_v34 = vcombine.high %v1332_v24, %v1336_v26  ;;  %v9234_v41 = vcombine.low %v1332_v24, %v1336_v26  ;;  %v9236_v42 = vcombine.low %v1333_v27, %v1337_v12  ;;  %v1368_v15 = vld [vmem:[%s10614_s15 + $0xda0] sm:$0xff] }
 0x221   : > { %v1372_v24 = vld [vmem:[%s10614_s15 + $0xdc0] sm:$0xff] }
 0x222   : > { %7227 = vmatpush1.bf16.msra.mxu0 %v9194_v35  ;;  %7555 = vmatpush1.bf16.msra.mxu1 %v9196_v36  ;;  %v9237_v35 = vcombine.high %v1333_v27, %v1337_v12  ;;  %v1340_v36 = vld [vmem:[%s10614_s15 + $0xcc0] sm:$0xff]  ;;  %v1373_v27 = vld [vmem:[%s10614_s15 + $0xdc8] sm:$0xff] }
 0x223   : > { %7228 = vmatprep.subr.bf16.mxu0 %v9203_v38  ;;  %7556 = vmatprep.subr.bf16.mxu1 %v9205_v9  ;;  %v1344_v38 = vld [vmem:[%s10614_s15 + $0xce0] sm:$0xff]  ;;  %v1341_v9 = vld [vmem:[%s10614_s15 + $0xcc8] sm:$0xff] }
 0x224   : > { %v9243_v48 = vcombine.high %v1340_v36, %v1344_v38  ;;  %v9245_v49 = vcombine.high %v1341_v9, %v1345_v40  ;;  %v9244_v59 = vcombine.low %v1341_v9, %v1345_v40  ;;  %v1376_v26 = vld [vmem:[%s10614_s15 + $0xde0] sm:$0xff]  ;;  %v1377_v12 = vld [vmem:[%s10614_s15 + $0xde8] sm:$0xff] }
 0x225   : > { %v1381_v9 = vld [vmem:[%s10614_s15 + $0xe08] sm:$0xff] }
 0x226   : > { %7229 = vmatpush1.bf16.msra.mxu0 %v9202_v52  ;;  %7557 = vmatpush1.bf16.msra.mxu1 %v9204_v56  ;;  %v1352_v52 = vld [vmem:[%s10614_s15 + $0xd20] sm:$0xff]  ;;  %v1349_v56 = vld [vmem:[%s10614_s15 + $0xd08] sm:$0xff] }
 0x227   : > { %7230 = vmatprep.subr.bf16.mxu0 %v9211_v33  ;;  %7558 = vmatprep.subr.bf16.mxu1 %v9213_v58  ;;  %v1353_v33 = vld [vmem:[%s10614_s15 + $0xd28] sm:$0xff]  ;;  %v9242_v58 = vcombine.low %v1340_v36, %v1344_v38  ;;  %v9251_v61 = vcombine.high %v1348_v50, %v1352_v52  ;;  %v1380_v36 = vld [vmem:[%s10614_s15 + $0xe00] sm:$0xff] }
 0x228   : > { %v9253_v62 = vcombine.high %v1349_v56, %v1353_v33  ;;  %v1384_v38 = vld [vmem:[%s10614_s15 + $0xe20] sm:$0xff]  ;;  %v1385_v40 = vld [vmem:[%s10614_s15 + $0xe28] sm:$0xff] }
 0x22a   : > { %7231 = vmatpush1.bf16.msra.mxu0 %v9210_v32  ;;  %7559 = vmatpush1.bf16.msra.mxu1 %v9212_v8  ;;  %v1361_v32 = vld [vmem:[%s10614_s15 + $0xd68] sm:$0xff]  ;;  %v9250_v8 = vcombine.low %v1348_v50, %v1352_v52  ;;  %v1388_v50 = vld [vmem:[%s10614_s15 + $0xe40] sm:$0xff] }
 0x22b   : > { %7241 = vmatprep.subr.bf16.mxu0 %v9219_v11  ;;  %7569 = vmatprep.subr.bf16.mxu1 %v9221_v13  ;;  %v9252_v11 = vcombine.low %v1349_v56, %v1353_v33  ;;  %v9259_v13 = vcombine.high %v1356_v1, %v1360_v46  ;;  %v9261_v14 = vcombine.high %v1357_v7, %v1361_v32  ;;  %v1392_v52 = vld [vmem:[%s10614_s15 + $0xe60] sm:$0xff]  ;;  %v1389_v56 = vld [vmem:[%s10614_s15 + $0xe48] sm:$0xff] }
 0x22c   : > { %v1393_v33 = vld [vmem:[%s10614_s15 + $0xe68] sm:$0xff] }
 0x22d   : > { %7233 = vmatmul.mubr.bf16.vlgmr.msra.gmra.mrb[8].mxu0 %v10976_v54  ;;  %7561 = vmatmul.mubr.bf16.vlgmr.msra.gmra.mrb[24].mxu1 %v10976_v54 }
 0x22e   : > { %7242 = vmatpush1.bf16.msra.mxu0 %v9218_v5  ;;  %7570 = vmatpush1.bf16.msra.mxu1 %v9220_v20  ;;  %v9258_v5 = vcombine.low %v1356_v1, %v1360_v46  ;;  %v9260_v20 = vcombine.low %v1357_v7, %v1361_v32  ;;  %v1396_v1 = vld [vmem:[%s10614_s15 + $0xe80] sm:$0xff]  ;;  %v1397_v7 = vld [vmem:[%s10614_s15 + $0xe88] sm:$0xff] }
 0x22f   : > { %7243 = vmatprep.subr.bf16.mxu0 %v9227_v21  ;;  %7571 = vmatprep.subr.bf16.mxu1 %v9229_v23  ;;  %v9267_v21 = vcombine.high %v1364_v44, %v1368_v15  ;;  %v9269_v23 = vcombine.high %v1365_v18, %v1369_v0  ;;  %v1400_v46 = vld [vmem:[%s10614_s15 + $0xea0] sm:$0xff]  ;;  %v1401_v32 = vld [vmem:[%s10614_s15 + $0xea8] sm:$0xff] }
 0x230   : > { %7273 = vmatprep.mubr.bf16.mxu0 %v10982_v29  ;;  %7601 = vmatprep.mubr.bf16.mxu1 %v10982_v29 }
 0x232   : > { %7244 = vmatpush1.bf16.msra.mxu0 %v9226_v30  ;;  %7572 = vmatpush1.bf16.msra.mxu1 %v9228_v31  ;;  %v9266_v30 = vcombine.low %v1364_v44, %v1368_v15  ;;  %v9268_v31 = vcombine.low %v1365_v18, %v1369_v0  ;;  %v1404_v44 = vld [vmem:[%s10614_s15 + $0xec0] sm:$0xff]  ;;  %v1405_v18 = vld [vmem:[%s10614_s15 + $0xec8] sm:$0xff] }
 0x233   : > { %7245 = vmatprep.subr.bf16.mxu0 %v9235_v34  ;;  %7573 = vmatprep.subr.bf16.mxu1 %v9237_v35  ;;  %v9275_v34 = vcombine.high %v1372_v24, %v1376_v26  ;;  %v9277_v35 = vcombine.high %v1373_v27, %v1377_v12  ;;  %v1408_v15 = vld [vmem:[%s10614_s15 + $0xee0] sm:$0xff]  ;;  %v1409_v0 = vld [vmem:[%s10614_s15 + $0xee8] sm:$0xff] }
 0x236   : > { %7246 = vmatpush1.bf16.msra.mxu0 %v9234_v41  ;;  %7574 = vmatpush1.bf16.msra.mxu1 %v9236_v42  ;;  %v9274_v41 = vcombine.low %v1372_v24, %v1376_v26  ;;  %v9276_v42 = vcombine.low %v1373_v27, %v1377_v12  ;;  %v1412_v24 = vld [vmem:[%s10614_s15 + $0xf00] sm:$0xff]  ;;  %v1413_v27 = vld [vmem:[%s10614_s15 + $0xf08] sm:$0xff] }
 0x237   : > { %7247 = vmatprep.subr.bf16.mxu0 %v9243_v48  ;;  %7575 = vmatprep.subr.bf16.mxu1 %v9245_v49  ;;  %v9283_v48 = vcombine.high %v1380_v36, %v1384_v38  ;;  %v9285_v49 = vcombine.high %v1381_v9, %v1385_v40  ;;  %v1416_v26 = vld [vmem:[%s10614_s15 + $0xf20] sm:$0xff]  ;;  %v1417_v12 = vld [vmem:[%s10614_s15 + $0xf28] sm:$0xff] }
 0x23a   : > { %7248 = vmatpush1.bf16.msra.mxu0 %v9242_v58  ;;  %7576 = vmatpush1.bf16.msra.mxu1 %v9244_v59  ;;  %v9282_v58 = vcombine.low %v1380_v36, %v1384_v38  ;;  %v9284_v59 = vcombine.low %v1381_v9, %v1385_v40  ;;  %v1420_v36 = vld [vmem:[%s10614_s15 + $0xf40] sm:$0xff]  ;;  %v1421_v9 = vld [vmem:[%s10614_s15 + $0xf48] sm:$0xff] }
 0x23b   : > { %7249 = vmatprep.subr.bf16.mxu0 %v9251_v61  ;;  %7577 = vmatprep.subr.bf16.mxu1 %v9253_v62  ;;  %v9291_v61 = vcombine.high %v1388_v50, %v1392_v52  ;;  %v9293_v62 = vcombine.high %v1389_v56, %v1393_v33  ;;  %v1424_v38 = vld [vmem:[%s10614_s15 + $0xf60] sm:$0xff]  ;;  %v1425_v40 = vld [vmem:[%s10614_s15 + $0xf68] sm:$0xff] }
 0x23e   : > { %7250 = vmatpush1.bf16.msra.mxu0 %v9250_v8  ;;  %7578 = vmatpush1.bf16.msra.mxu1 %v9252_v11  ;;  %v9290_v8 = vcombine.low %v1388_v50, %v1392_v52  ;;  %v9292_v11 = vcombine.low %v1389_v56, %v1393_v33  ;;  %v1428_v50 = vld [vmem:[%s10614_s15 + $0xf80] sm:$0xff]  ;;  %v1429_v56 = vld [vmem:[%s10614_s15 + $0xf88] sm:$0xff] }
 0x23f   : > { %7251 = vmatprep.subr.bf16.mxu0 %v9259_v13  ;;  %7579 = vmatprep.subr.bf16.mxu1 %v9261_v14  ;;  %v9299_v13 = vcombine.high %v1396_v1, %v1400_v46  ;;  %v9301_v14 = vcombine.high %v1397_v7, %v1401_v32  ;;  %v1432_v52 = vld [vmem:[%s10614_s15 + $0xfa0] sm:$0xff]  ;;  %v1433_v33 = vld [vmem:[%s10614_s15 + $0xfa8] sm:$0xff] }
 0x242   : > { %7252 = vmatpush1.bf16.msra.mxu0 %v9258_v5  ;;  %7580 = vmatpush1.bf16.msra.mxu1 %v9260_v20  ;;  %v9298_v5 = vcombine.low %v1396_v1, %v1400_v46  ;;  %v9300_v20 = vcombine.low %v1397_v7, %v1401_v32  ;;  %v9331_v1 = vcombine.high %v1428_v50, %v1432_v52  ;;  %v1436_v7 = vld [vmem:[%s10614_s15 + $0xfc0] sm:$0xff]  ;;  %v11038_v32 = vld [vmem:[#allocation6 + $0x8] sm:$0xff] }
 0x243   : > { %7253 = vmatprep.subr.bf16.mxu0 %v9267_v21  ;;  %7581 = vmatprep.subr.bf16.mxu1 %v9269_v23  ;;  %v9307_v21 = vcombine.high %v1404_v44, %v1408_v15  ;;  %v9309_v23 = vcombine.high %v1405_v18, %v1409_v0  ;;  %v9333_v46 = vcombine.high %v1429_v56, %v1433_v33 }
 0x246   : > { %7254 = vmatpush1.bf16.msra.mxu0 %v9266_v30  ;;  %7582 = vmatpush1.bf16.msra.mxu1 %v9268_v31  ;;  %v9306_v30 = vcombine.low %v1404_v44, %v1408_v15  ;;  %v9308_v31 = vcombine.low %v1405_v18, %v1409_v0  ;;  %v9330_v44 = vcombine.low %v1428_v50, %v1432_v52  ;;  %v1460_v50 = vld [vmem:[%s10614_s15 + $0x1080] sm:$0xff] }
 0x247   : > { %7255 = vmatprep.subr.bf16.mxu0 %v9275_v34  ;;  %7583 = vmatprep.subr.bf16.mxu1 %v9277_v35  ;;  %v9315_v34 = vcombine.high %v1412_v24, %v1416_v26  ;;  %v9317_v35 = vcombine.high %v1413_v27, %v1417_v12  ;;  %v9332_v15 = vcombine.low %v1429_v56, %v1433_v33  ;;  %v1464_v52 = vld [vmem:[%s10614_s15 + $0x10a0] sm:$0xff]  ;;  %v1461_v56 = vld [vmem:[%s10614_s15 + $0x1088] sm:$0xff] }
 0x248   : > { %v1465_v33 = vld [vmem:[%s10614_s15 + $0x10a8] sm:$0xff] }
 0x24a   : > { %7256 = vmatpush1.bf16.msra.mxu0 %v9274_v41  ;;  %7584 = vmatpush1.bf16.msra.mxu1 %v9276_v42  ;;  %v9314_v41 = vcombine.low %v1412_v24, %v1416_v26  ;;  %v9316_v42 = vcombine.low %v1413_v27, %v1417_v12  ;;  %v1445_v24 = vld [vmem:[%s10614_s15 + $0x1008] sm:$0xff] }
 0x24b   : > { %7257 = vmatprep.subr.bf16.mxu0 %v9283_v48  ;;  %7585 = vmatprep.subr.bf16.mxu1 %v9285_v49  ;;  %v9323_v48 = vcombine.high %v1420_v36, %v1424_v38  ;;  %v9325_v49 = vcombine.high %v1421_v9, %v1425_v40  ;;  %v1449_v26 = vld [vmem:[%s10614_s15 + $0x1028] sm:$0xff] }
 0x24e   : > { %7258 = vmatpush1.bf16.msra.mxu0 %v9282_v58  ;;  %7586 = vmatpush1.bf16.msra.mxu1 %v9284_v59  ;;  %v9322_v58 = vcombine.low %v1420_v36, %v1424_v38  ;;  %v9324_v59 = vcombine.low %v1421_v9, %v1425_v40  ;;  %v1456_v36 = vld [vmem:[%s10614_s15 + $0x1060] sm:$0xff]  ;;  %v1457_v38 = vld [vmem:[%s10614_s15 + $0x1068] sm:$0xff] }
 0x24f   : > { %7259 = vmatprep.subr.bf16.mxu0 %v9291_v61  ;;  %7587 = vmatprep.subr.bf16.mxu1 %v9293_v62  ;;  %v10111_v61 = vld [vmem:[#allocation6] sm:$0xff] }
 0x250   : > { %v426_v62 = vrot.slane %v10111_v61, %v10844_v53  ;;  %v9363_v61 = vcombine.high %v1460_v50, %v1464_v52 }
 0x252   : > { %7260 = vmatpush1.bf16.msra.mxu0 %v9290_v8  ;;  %7588 = vmatpush1.bf16.msra.mxu1 %v9292_v11  ;;  %v438_v8 = vrot.slane %v11038_v32, %v10746_v47  ;;  %v1440_v11 = vld [vmem:[%s10614_s15 + $0xfe0] sm:$0xff]  ;;  %v730_v18 = vadd.f32 %v10813_v4, %v426_v62  ;;  %v9365_v62 = vcombine.high %v1461_v56, %v1465_v33 }
 0x253   : > { %7261 = vmatprep.subr.bf16.mxu0 %v9299_v13  ;;  %7589 = vmatprep.subr.bf16.mxu1 %v9301_v14  ;;  %v1437_v13 = vld [vmem:[%s10614_s15 + $0xfc8] sm:$0xff]  ;;  %v9339_v0 = vcombine.high %v1436_v7, %v1440_v11  ;;  %v9338_v27 = vcombine.low %v1436_v7, %v1440_v11  ;;  %v9362_v11 = vcombine.low %v1460_v50, %v1464_v52  ;;  %v1500_v52 = vld [vmem:[%s10614_s15 + $0x11c0] sm:$0xff] }
 0x254   : > { %v1441_v14 = vld [vmem:[%s10614_s15 + $0xfe8] sm:$0xff] }
 0x255   : > { %v9340_v12 = vcombine.low %v1437_v13, %v1441_v14  ;;  %v1469_v7 = vld [vmem:[%s10614_s15 + $0x10c8] sm:$0xff] }
 0x256   : > { %7262 = vmatpush1.bf16.msra.mxu0 %v9298_v5  ;;  %7590 = vmatpush1.bf16.msra.mxu1 %v9300_v20  ;;  %v9341_v5 = vcombine.high %v1437_v13, %v1441_v14  ;;  %v1444_v20 = vld [vmem:[%s10614_s15 + $0x1000] sm:$0xff]  ;;  %v9364_v13 = vcombine.low %v1461_v56, %v1465_v33  ;;  %v1501_v33 = vld [vmem:[%s10614_s15 + $0x11c8] sm:$0xff] }
 0x257   : > { %7263 = vmatprep.subr.bf16.mxu0 %v9307_v21  ;;  %7591 = vmatprep.subr.bf16.mxu1 %v9309_v23  ;;  %v773_v21 = vadd.f32 %v10793_v37, %v438_v8  ;;  %v1448_v23 = vld [vmem:[%s10614_s15 + $0x1020] sm:$0xff]  ;;  %v1453_v37 = vld [vmem:[%s10614_s15 + $0x1048] sm:$0xff] }
 0x258   : > { %v9347_v4 = vcombine.high %v1444_v20, %v1448_v23  ;;  %v9346_v9 = vcombine.low %v1444_v20, %v1448_v23  ;;  %v1473_v8 = vld [vmem:[%s10614_s15 + $0x10e8] sm:$0xff]  ;;  %v1504_v56 = vld [vmem:[%s10614_s15 + $0x11e0] sm:$0xff] }
 0x25a   : > { %7264 = vmatpush1.bf16.msra.mxu0 %v9306_v30  ;;  %7592 = vmatpush1.bf16.msra.mxu1 %v9308_v31  ;;  %v906_v30 = vmax.f32 %v730_v18, 0.0  ;;  %v9349_v31 = vcombine.high %v1445_v24, %v1449_v26  ;;  %v1480_v18 = vld [vmem:[%s10614_s15 + $0x1120] sm:$0xff] }
 0x25b   : > { %7265 = vmatprep.subr.bf16.mxu0 %v9315_v34  ;;  %7593 = vmatprep.subr.bf16.mxu1 %v9317_v35  ;;  %v909_v34 = vmax.f32 %v773_v21, 0.0  ;;  %v1452_v35 = vld [vmem:[%s10614_s15 + $0x1040] sm:$0xff]  ;;  %v9372_v21 = vcombine.low %v1469_v7, %v1473_v8 }
 0x25c   : > { %v11055_v40 = vpack.c.bf16 %v906_v30, %v906_v30  ;;  %v1489_v30 = vld [vmem:[%s10614_s15 + $0x1168] sm:$0xff] }
 0x25e   : > { %7266 = vmatpush1.bf16.msra.mxu0 %v9314_v41  ;;  %7594 = vmatpush1.bf16.msra.mxu1 %v9316_v42  ;;  %v9348_v41 = vcombine.low %v1445_v24, %v1449_v26  ;;  %v11057_v42 = vpack.c.bf16 %v909_v34, %v909_v34  ;;  %v1484_v26 = vld [vmem:[%s10614_s15 + $0x1140] sm:$0xff] }
 0x25f   : > { %7267 = vmatprep.subr.bf16.mxu0 %v9323_v48  ;;  %7595 = vmatprep.subr.bf16.mxu1 %v9325_v49  ;;  %v9355_v48 = vcombine.high %v1452_v35, %v1456_v36  ;;  %v9357_v49 = vcombine.high %v1453_v37, %v1457_v38 }
 0x262   : > { %7268 = vmatpush1.bf16.msra.mxu0 %v9322_v58  ;;  %7596 = vmatpush1.bf16.msra.mxu1 %v9324_v59  ;;  %v9354_v58 = vcombine.low %v1452_v35, %v1456_v36  ;;  %v9356_v59 = vcombine.low %v1453_v37, %v1457_v38  ;;  %v1492_v36 = vld [vmem:[%s10614_s15 + $0x1180] sm:$0xff]  ;;  %v1493_v38 = vld [vmem:[%s10614_s15 + $0x1188] sm:$0xff] }
 0x263   : > { %7269 = vmatprep.subr.bf16.mxu0 %v9331_v1  ;;  %7597 = vmatprep.subr.bf16.mxu1 %v9333_v46  ;;  %v1468_v1 = vld [vmem:[%s10614_s15 + $0x10c0] sm:$0xff] }
 0x264   : > { %v1472_v46 = vld [vmem:[%s10614_s15 + $0x10e0] sm:$0xff] }
 0x265   : > { %v9371_v14 = vcombine.high %v1468_v1, %v1472_v46  ;;  %v9370_v20 = vcombine.low %v1468_v1, %v1472_v46  ;;  %v1496_v37 = vld [vmem:[%s10614_s15 + $0x11a0] sm:$0xff] }
 0x266   : > { %7270 = vmatpush1.bf16.msra.mxu0 %v9330_v44  ;;  %7598 = vmatpush1.bf16.msra.mxu1 %v9332_v15  ;;  %v9373_v44 = vcombine.high %v1469_v7, %v1473_v8  ;;  %v1476_v15 = vld [vmem:[%s10614_s15 + $0x1100] sm:$0xff]  ;;  %v1509_v8 = vld [vmem:[%s10614_s15 + $0x1208] sm:$0xff] }
 0x267   : > { %7271 = vmatprep.subr.bf16.mxu0 %v9339_v0  ;;  %7599 = vmatprep.subr.bf16.mxu1 %v9341_v5  ;;  %v1477_v0 = vld [vmem:[%s10614_s15 + $0x1108] sm:$0xff]  ;;  %v9379_v23 = vcombine.high %v1476_v15, %v1480_v18  ;;  %v1508_v46 = vld [vmem:[%s10614_s15 + $0x1200] sm:$0xff] }
 0x268   : > { %v1481_v5 = vld [vmem:[%s10614_s15 + $0x1128] sm:$0xff]  ;;  %v1512_v7 = vld [vmem:[%s10614_s15 + $0x1220] sm:$0xff] }
 0x269   : > { %v9381_v24 = vcombine.high %v1477_v0, %v1481_v5 }
 0x26a   : > { %7272 = vmatpush1.bf16.msra.mxu0 %v9338_v27  ;;  %7600 = vmatpush1.bf16.msra.mxu1 %v9340_v12  ;;  %v1488_v27 = vld [vmem:[%s10614_s15 + $0x1160] sm:$0xff]  ;;  %v1485_v12 = vld [vmem:[%s10614_s15 + $0x1148] sm:$0xff] }
 0x26b   : > { %7282 = vmatprep.subr.bf16.mxu0 %v9347_v4  ;;  %7610 = vmatprep.subr.bf16.mxu1 %v9349_v31  ;;  %v9378_v4 = vcombine.low %v1476_v15, %v1480_v18  ;;  %v9380_v31 = vcombine.low %v1477_v0, %v1481_v5  ;;  %v9387_v34 = vcombine.high %v1484_v26, %v1488_v27  ;;  %v1516_v18 = vld [vmem:[%s10614_s15 + $0x1240] sm:$0xff]  ;;  %v1517_v5 = vld [vmem:[%s10614_s15 + $0x1248] sm:$0xff] }
 0x26c   : > { %v9389_v35 = vcombine.high %v1485_v12, %v1489_v30  ;;  %v1520_v0 = vld [vmem:[%s10614_s15 + $0x1260] sm:$0xff] }
 0x26d   : > { %7274 = vmatmul.mubr.bf16.vlgmr.msra.gmra.mrb[8].mxu0 %v11055_v40  ;;  %7602 = vmatmul.mubr.bf16.vlgmr.msra.gmra.mrb[24].mxu1 %v11055_v40 }
 0x26e   : > { %7283 = vmatpush1.bf16.msra.mxu0 %v9346_v9  ;;  %7314 = vmatprep.mubr.bf16.mxu0 %v11057_v42  ;;  %v1497_v9 = vld [vmem:[%s10614_s15 + $0x11a8] sm:$0xff] }
 0x26f   : > { %7611 = vmatpush1.bf16.msra.mxu1 %v9348_v41  ;;  %7642 = vmatprep.mubr.bf16.mxu1 %v11057_v42  ;;  %v9386_v41 = vcombine.low %v1484_v26, %v1488_v27  ;;  %v9397_v50 = vcombine.high %v1493_v38, %v1497_v9  ;;  %v1524_v27 = vld [vmem:[%s10614_s15 + $0x1280] sm:$0xff] }
 0x270   : > { %7284 = vmatprep.subr.bf16.mxu0 %v9355_v48  ;;  %7612 = vmatprep.subr.bf16.mxu1 %v9357_v49  ;;  %v9388_v48 = vcombine.low %v1485_v12, %v1489_v30  ;;  %v9395_v49 = vcombine.high %v1492_v36, %v1496_v37  ;;  %v1528_v12 = vld [vmem:[%s10614_s15 + $0x12a0] sm:$0xff]  ;;  %v1525_v30 = vld [vmem:[%s10614_s15 + $0x1288] sm:$0xff] }
 0x272   : > { %7285 = vmatpush1.bf16.msra.mxu0 %v9354_v58  ;;  %v1505_v58 = vld [vmem:[%s10614_s15 + $0x11e8] sm:$0xff] }
 0x273   : > { %7613 = vmatpush1.bf16.msra.mxu1 %v9356_v59  ;;  %7286 = vmatprep.subr.bf16.mxu0 %v9363_v61  ;;  %v9394_v59 = vcombine.low %v1492_v36, %v1496_v37  ;;  %v9396_v61 = vcombine.low %v1493_v38, %v1497_v9  ;;  %v9405_v1 = vcombine.high %v1501_v33, %v1505_v58  ;;  %v1532_v37 = vld [vmem:[%s10614_s15 + $0x12c0] sm:$0xff]  ;;  %v1533_v9 = vld [vmem:[%s10614_s15 + $0x12c8] sm:$0xff] }
 0x274   : > { %7614 = vmatprep.subr.bf16.mxu1 %v9365_v62  ;;  %v9403_v62 = vcombine.high %v1500_v52, %v1504_v56  ;;  %v1536_v38 = vld [vmem:[%s10614_s15 + $0x12e0] sm:$0xff] }
 0x276   : > { %7287 = vmatpush1.bf16.msra.mxu0 %v9362_v11  ;;  %v1513_v11 = vld [vmem:[%s10614_s15 + $0x1228] sm:$0xff] }
 0x277   : > { %7615 = vmatpush1.bf16.msra.mxu1 %v9364_v13  ;;  %7288 = vmatprep.subr.bf16.mxu0 %v9371_v14  ;;  %v9402_v13 = vcombine.low %v1500_v52, %v1504_v56  ;;  %v9404_v14 = vcombine.low %v1501_v33, %v1505_v58  ;;  %v9413_v15 = vcombine.high %v1509_v8, %v1513_v11  ;;  %v1540_v56 = vld [vmem:[%s10614_s15 + $0x1300] sm:$0xff]  ;;  %v1541_v58 = vld [vmem:[%s10614_s15 + $0x1308] sm:$0xff] }
 0x278   : > { %7616 = vmatprep.subr.bf16.mxu1 %v9373_v44  ;;  %v9411_v44 = vcombine.high %v1508_v46, %v1512_v7  ;;  %v1544_v33 = vld [vmem:[%s10614_s15 + $0x1320] sm:$0xff] }
 0x27a   : > { %7289 = vmatpush1.bf16.msra.mxu0 %v9370_v20  ;;  %v1521_v20 = vld [vmem:[%s10614_s15 + $0x1268] sm:$0xff] }
 0x27b   : > { %7617 = vmatpush1.bf16.msra.mxu1 %v9372_v21  ;;  %7290 = vmatprep.subr.bf16.mxu0 %v9379_v23  ;;  %v9410_v21 = vcombine.low %v1508_v46, %v1512_v7  ;;  %v9412_v23 = vcombine.low %v1509_v8, %v1513_v11  ;;  %v9421_v26 = vcombine.high %v1517_v5, %v1521_v20  ;;  %v1548_v7 = vld [vmem:[%s10614_s15 + $0x1340] sm:$0xff]  ;;  %v1549_v11 = vld [vmem:[%s10614_s15 + $0x1348] sm:$0xff] }
 0x27c   : > { %7618 = vmatprep.subr.bf16.mxu1 %v9381_v24  ;;  %v9419_v24 = vcombine.high %v1516_v18, %v1520_v0  ;;  %v1552_v8 = vld [vmem:[%s10614_s15 + $0x1360] sm:$0xff] }
 0x27e   : > { %7291 = vmatpush1.bf16.msra.mxu0 %v9378_v4  ;;  %v1529_v4 = vld [vmem:[%s10614_s15 + $0x12a8] sm:$0xff] }
 0x27f   : > { %7619 = vmatpush1.bf16.msra.mxu1 %v9380_v31  ;;  %7292 = vmatprep.subr.bf16.mxu0 %v9387_v34  ;;  %v9418_v31 = vcombine.low %v1516_v18, %v1520_v0  ;;  %v9420_v34 = vcombine.low %v1517_v5, %v1521_v20  ;;  %v9429_v36 = vcombine.high %v1525_v30, %v1529_v4  ;;  %v1556_v0 = vld [vmem:[%s10614_s15 + $0x1380] sm:$0xff]  ;;  %v1557_v20 = vld [vmem:[%s10614_s15 + $0x1388] sm:$0xff] }
 0x280   : > { %7620 = vmatprep.subr.bf16.mxu1 %v9389_v35  ;;  %v9427_v35 = vcombine.high %v1524_v27, %v1528_v12  ;;  %v1560_v5 = vld [vmem:[%s10614_s15 + $0x13a0] sm:$0xff] }
 0x282   : > { %7293 = vmatpush1.bf16.msra.mxu0 %v9386_v41  ;;  %v1537_v41 = vld [vmem:[%s10614_s15 + $0x12e8] sm:$0xff] }
 0x283   : > { %7621 = vmatpush1.bf16.msra.mxu1 %v9388_v48  ;;  %7294 = vmatprep.subr.bf16.mxu0 %v9395_v49  ;;  %v9426_v48 = vcombine.low %v1524_v27, %v1528_v12  ;;  %v9428_v49 = vcombine.low %v1525_v30, %v1529_v4  ;;  %v9437_v52 = vcombine.high %v1533_v9, %v1537_v41  ;;  %v1564_v30 = vld [vmem:[%s10614_s15 + $0x13c0] sm:$0xff] }
 0x284   : > { %7622 = vmatprep.subr.bf16.mxu1 %v9397_v50  ;;  %v9435_v50 = vcombine.high %v1532_v37, %v1536_v38  ;;  %v9459_v27 = vcombine.high %v1556_v0, %v1560_v5  ;;  %v1568_v4 = vld [vmem:[%s10614_s15 + $0x13e0] sm:$0xff] }
 0x286   : > { %7295 = vmatpush1.bf16.msra.mxu0 %v9394_v59  ;;  %v1545_v59 = vld [vmem:[%s10614_s15 + $0x1328] sm:$0xff] }
 0x287   : > { %7623 = vmatpush1.bf16.msra.mxu1 %v9396_v61  ;;  %7296 = vmatprep.subr.bf16.mxu0 %v9403_v62  ;;  %v9434_v61 = vcombine.low %v1532_v37, %v1536_v38  ;;  %v9436_v62 = vcombine.low %v1533_v9, %v1537_v41  ;;  %v9445_v46 = vcombine.high %v1541_v58, %v1545_v59  ;;  %v1572_v9 = vld [vmem:[%s10614_s15 + $0x1400] sm:$0xff] }
 0x288   : > { %7624 = vmatprep.subr.bf16.mxu1 %v9405_v1  ;;  %v9443_v1 = vcombine.high %v1540_v56, %v1544_v33  ;;  %v9467_v37 = vcombine.high %v1564_v30, %v1568_v4  ;;  %v1576_v41 = vld [vmem:[%s10614_s15 + $0x1420] sm:$0xff] }
 0x28a   : > { %7297 = vmatpush1.bf16.msra.mxu0 %v9402_v13  ;;  %v1553_v13 = vld [vmem:[%s10614_s15 + $0x1368] sm:$0xff] }
 0x28b   : > { %7625 = vmatpush1.bf16.msra.mxu1 %v9404_v14  ;;  %7298 = vmatprep.subr.bf16.mxu0 %v9411_v44  ;;  %v9442_v14 = vcombine.low %v1540_v56, %v1544_v33  ;;  %v9444_v44 = vcombine.low %v1541_v58, %v1545_v59  ;;  %v9453_v18 = vcombine.high %v1549_v11, %v1553_v13  ;;  %v911_v58 = vmax.f32 %v10840_v43, 0.0  ;;  %v1580_v59 = vld [vmem:[%s10614_s15 + $0x1440] sm:$0xff] }
 0x28c   : > { %7626 = vmatprep.subr.bf16.mxu1 %v9413_v15  ;;  %v9451_v15 = vcombine.high %v1548_v7, %v1552_v8  ;;  %v9475_v56 = vcombine.high %v1572_v9, %v1576_v41 }
 0x28e   : > { %7299 = vmatpush1.bf16.msra.mxu0 %v9410_v21  ;;  %v1561_v21 = vld [vmem:[%s10614_s15 + $0x13a8] sm:$0xff] }
 0x28f   : > { %7627 = vmatpush1.bf16.msra.mxu1 %v9412_v23  ;;  %7300 = vmatprep.subr.bf16.mxu0 %v9419_v24  ;;  %v9450_v23 = vcombine.low %v1548_v7, %v1552_v8  ;;  %v434_v24 = vrot.slane %v11038_v32, %v10741_v45  ;;  %v9461_v12 = vcombine.high %v1557_v20, %v1561_v21 }
 0x290   : > { %7628 = vmatprep.subr.bf16.mxu1 %v9421_v26  ;;  %v9452_v26 = vcombine.low %v1549_v11, %v1553_v13  ;;  %v9460_v32 = vcombine.low %v1557_v20, %v1561_v21  ;;  %v1588_v13 = vld [vmem:[%s10614_s15 + $0x1480] sm:$0xff] }
 0x292   : > { %7301 = vmatpush1.bf16.msra.mxu0 %v9418_v31  ;;  %v1565_v31 = vld [vmem:[%s10614_s15 + $0x13c8] sm:$0xff] }
 0x293   : > { %7629 = vmatpush1.bf16.msra.mxu1 %v9420_v34  ;;  %7302 = vmatprep.subr.bf16.mxu0 %v9427_v35  ;;  %v1569_v34 = vld [vmem:[%s10614_s15 + $0x13e8] sm:$0xff]  ;;  %v9458_v35 = vcombine.low %v1556_v0, %v1560_v5 }
 0x294   : > { %7630 = vmatprep.subr.bf16.mxu1 %v9429_v36  ;;  %v771_v36 = vadd.f32 %v10782_v28, %v434_v24  ;;  %v9469_v38 = vcombine.high %v1565_v31, %v1569_v34  ;;  %v9468_v28 = vcombine.low %v1565_v31, %v1569_v34  ;;  %v1600_v24 = vld [vmem:[%s10614_s15 + $0x14e0] sm:$0xff] }
 0x295   : > { %v1604_v34 = vld [vmem:[%s10614_s15 + $0x1500] sm:$0xff] }
 0x296   : > { %7303 = vmatpush1.bf16.msra.mxu0 %v9426_v48  ;;  %v1573_v48 = vld [vmem:[%s10614_s15 + $0x1408] sm:$0xff] }
 0x297   : > { %7631 = vmatpush1.bf16.msra.mxu1 %v9428_v49  ;;  %7304 = vmatprep.subr.bf16.mxu0 %v9435_v50  ;;  %v1577_v49 = vld [vmem:[%s10614_s15 + $0x1428] sm:$0xff]  ;;  %v9466_v50 = vcombine.low %v1564_v30, %v1568_v4 }
 0x298   : > { %7632 = vmatprep.subr.bf16.mxu1 %v9437_v52  ;;  %v908_v52 = vmax.f32 %v771_v36, 0.0  ;;  %v9477_v33 = vcombine.high %v1573_v48, %v1577_v49  ;;  %v9476_v8 = vcombine.low %v1573_v48, %v1577_v49  ;;  %v1605_v36 = vld [vmem:[%s10614_s15 + $0x1508] sm:$0xff]  ;;  %v1612_v48 = vld [vmem:[%s10614_s15 + $0x1540] sm:$0xff] }
 0x299   : > { %v1616_v49 = vld [vmem:[%s10614_s15 + $0x1560] sm:$0xff] }
 0x29a   : > { %7305 = vmatpush1.bf16.msra.mxu0 %v9434_v61  ;;  %v1584_v61 = vld [vmem:[%s10614_s15 + $0x1460] sm:$0xff]  ;;  %v11131_v7 = vpack.c.bf16 %v908_v52, %v908_v52  ;;  %v1617_v52 = vld [vmem:[%s10614_s15 + $0x1568] sm:$0xff] }
 0x29b   : > { %7633 = vmatpush1.bf16.msra.mxu1 %v9436_v62  ;;  %7306 = vmatprep.subr.bf16.mxu0 %v9443_v1  ;;  %v9474_v62 = vcombine.low %v1572_v9, %v1576_v41  ;;  %v1581_v1 = vld [vmem:[%s10614_s15 + $0x1448] sm:$0xff]  ;;  %v9483_v11 = vcombine.high %v1580_v59, %v1584_v61  ;;  %v9482_v0 = vcombine.low %v1580_v59, %v1584_v61  ;;  %v1620_v59 = vld [vmem:[%s10614_s15 + $0x1580] sm:$0xff] }
 0x29c   : > { %7634 = vmatprep.subr.bf16.mxu1 %v9445_v46  ;;  %v1585_v46 = vld [vmem:[%s10614_s15 + $0x1468] sm:$0xff]  ;;  %v1624_v61 = vld [vmem:[%s10614_s15 + $0x15a0] sm:$0xff] }
 0x29d   : > { %v9485_v43 = vcombine.high %v1581_v1, %v1585_v46  ;;  %v9484_v5 = vcombine.low %v1581_v1, %v1585_v46  ;;  %v1625_v1 = vld [vmem:[%s10614_s15 + $0x15a8] sm:$0xff]  ;;  %v9514_v46 = vcombine.low %v1612_v48, %v1616_v49 }
 0x29e   : > { %7307 = vmatpush1.bf16.msra.mxu0 %v9442_v14  ;;  %v1592_v14 = vld [vmem:[%s10614_s15 + $0x14a0] sm:$0xff] }
 0x29f   : > { %7635 = vmatpush1.bf16.msra.mxu1 %v9444_v44  ;;  %7308 = vmatprep.subr.bf16.mxu0 %v9451_v15  ;;  %v11135_v44 = vpack.c.bf16 %v911_v58, %v911_v58  ;;  %v1589_v15 = vld [vmem:[%s10614_s15 + $0x1488] sm:$0xff]  ;;  %v9491_v20 = vcombine.high %v1588_v13, %v1592_v14 }
 0x2a0   : > { %7636 = vmatprep.subr.bf16.mxu1 %v9453_v18  ;;  %v1593_v18 = vld [vmem:[%s10614_s15 + $0x14a8] sm:$0xff] }
 0x2a1   : > { %v9493_v21 = vcombine.high %v1589_v15, %v1593_v18  ;;  %v9492_v30 = vcombine.low %v1589_v15, %v1593_v18  ;;  %v1629_v15 = vld [vmem:[%s10614_s15 + $0x15c8] sm:$0xff] }
 0x2a2   : > { %7309 = vmatpush1.bf16.msra.mxu0 %v9450_v23  ;;  %v1596_v23 = vld [vmem:[%s10614_s15 + $0x14c0] sm:$0xff]  ;;  %v1633_v18 = vld [vmem:[%s10614_s15 + $0x15e8] sm:$0xff] }
 0x2a3   : > { %7637 = vmatpush1.bf16.msra.mxu1 %v9452_v26  ;;  %7310 = vmatprep.subr.bf16.mxu0 %v9459_v27  ;;  %v1597_v26 = vld [vmem:[%s10614_s15 + $0x14c8] sm:$0xff]  ;;  %v9499_v4 = vcombine.high %v1596_v23, %v1600_v24 }
 0x2a4   : > { %7638 = vmatprep.subr.bf16.mxu1 %v9461_v12  ;;  %v1601_v27 = vld [vmem:[%s10614_s15 + $0x14e8] sm:$0xff]  ;;  %v9490_v12 = vcombine.low %v1588_v13, %v1592_v14  ;;  %v1628_v14 = vld [vmem:[%s10614_s15 + $0x15c0] sm:$0xff] }
 0x2a5   : > { %v9501_v31 = vcombine.high %v1597_v26, %v1601_v27 }
 0x2a6   : > { %7311 = vmatpush1.bf16.msra.mxu0 %v9458_v35  ;;  %v1608_v35 = vld [vmem:[%s10614_s15 + $0x1520] sm:$0xff] }
 0x2a7   : > { %7639 = vmatpush1.bf16.msra.mxu1 %v9460_v32  ;;  %7312 = vmatprep.subr.bf16.mxu0 %v9467_v37  ;;  %v1609_v32 = vld [vmem:[%s10614_s15 + $0x1528] sm:$0xff]  ;;  %v9498_v37 = vcombine.low %v1596_v23, %v1600_v24  ;;  %v9507_v9 = vcombine.high %v1604_v34, %v1608_v35  ;;  %v1636_v23 = vld [vmem:[%s10614_s15 + $0x1600] sm:$0xff] }
 0x2a8   : > { %7640 = vmatprep.subr.bf16.mxu1 %v9469_v38  ;;  %v9500_v38 = vcombine.low %v1597_v26, %v1601_v27  ;;  %v9509_v41 = vcombine.high %v1605_v36, %v1609_v32  ;;  %v1640_v24 = vld [vmem:[%s10614_s15 + $0x1620] sm:$0xff]  ;;  %v1637_v26 = vld [vmem:[%s10614_s15 + $0x1608] sm:$0xff] }
 0x2a9   : > { %v1641_v27 = vld [vmem:[%s10614_s15 + $0x1628] sm:$0xff] }
 0x2aa   : > { %7313 = vmatpush1.bf16.msra.mxu0 %v9466_v50  ;;  %v1613_v50 = vld [vmem:[%s10614_s15 + $0x1548] sm:$0xff] }
 0x2ab   : > { %7641 = vmatpush1.bf16.msra.mxu1 %v9468_v28  ;;  %7323 = vmatprep.subr.bf16.mxu0 %v9475_v56  ;;  %v9506_v28 = vcombine.low %v1604_v34, %v1608_v35  ;;  %v9508_v56 = vcombine.low %v1605_v36, %v1609_v32  ;;  %v9517_v58 = vcombine.high %v1613_v50, %v1617_v52  ;;  %v1644_v34 = vld [vmem:[%s10614_s15 + $0x1640] sm:$0xff]  ;;  %v1645_v36 = vld [vmem:[%s10614_s15 + $0x1648] sm:$0xff] }
 0x2ac   : > { %7651 = vmatprep.subr.bf16.mxu1 %v9477_v33  ;;  %v9515_v33 = vcombine.high %v1612_v48, %v1616_v49  ;;  %v1648_v35 = vld [vmem:[%s10614_s15 + $0x1660] sm:$0xff]  ;;  %v1649_v32 = vld [vmem:[%s10614_s15 + $0x1668] sm:$0xff] }
 0x2ad   : > { %7315 = vmatmul.mubr.bf16.vlgmr.msra.gmra.mrb[8].mxu0 %v11131_v7  ;;  %v1652_v48 = vld [vmem:[%s10614_s15 + $0x1680] sm:$0xff] }
 0x2ae   : > { %7643 = vmatmul.mubr.bf16.vlgmr.msra.gmra.mrb[24].mxu1 %v11131_v7  ;;  %7324 = vmatpush1.bf16.msra.mxu0 %v9474_v62  ;;  %v1621_v62 = vld [vmem:[%s10614_s15 + $0x1588] sm:$0xff]  ;;  %v1656_v49 = vld [vmem:[%s10614_s15 + $0x16a0] sm:$0xff] }
 0x2af   : > { %7355 = vmatprep.mubr.bf16.mxu0 %v11135_v44  ;;  %7652 = vmatpush1.bf16.msra.mxu1 %v9476_v8  ;;  %v9516_v8 = vcombine.low %v1613_v50, %v1617_v52  ;;  %v9525_v13 = vcombine.high %v1621_v62, %v1625_v1  ;;  %v1653_v50 = vld [vmem:[%s10614_s15 + $0x1688] sm:$0xff] }
 0x2b0   : > { %7683 = vmatprep.mubr.bf16.mxu1 %v11135_v44  ;;  %7325 = vmatprep.subr.bf16.mxu0 %v9483_v11  ;;  %v9523_v11 = vcombine.high %v1620_v59, %v1624_v61  ;;  %v1657_v52 = vld [vmem:[%s10614_s15 + $0x16a8] sm:$0xff] }
 0x2b1   : > { %7653 = vmatprep.subr.bf16.mxu1 %v9485_v43  ;;  %v1632_v43 = vld [vmem:[%s10614_s15 + $0x15e0] sm:$0xff] }
 0x2b2   : > { %7326 = vmatpush1.bf16.msra.mxu0 %v9482_v0  ;;  %v9522_v0 = vcombine.low %v1620_v59, %v1624_v61  ;;  %v1660_v59 = vld [vmem:[%s10614_s15 + $0x16c0] sm:$0xff] }
 0x2b3   : > { %7654 = vmatpush1.bf16.msra.mxu1 %v9484_v5  ;;  %7327 = vmatprep.subr.bf16.mxu0 %v9491_v20  ;;  %v9524_v5 = vcombine.low %v1621_v62, %v1625_v1  ;;  %v9531_v20 = vcombine.high %v1628_v14, %v1632_v43  ;;  %v1664_v61 = vld [vmem:[%s10614_s15 + $0x16e0] sm:$0xff]  ;;  %v1661_v62 = vld [vmem:[%s10614_s15 + $0x16c8] sm:$0xff] }
 0x2b4   : > { %7655 = vmatprep.subr.bf16.mxu1 %v9493_v21  ;;  %v9533_v21 = vcombine.high %v1629_v15, %v1633_v18  ;;  %v1665_v1 = vld [vmem:[%s10614_s15 + $0x16e8] sm:$0xff] }
 0x2b6   : > { %7328 = vmatpush1.bf16.msra.mxu0 %v9490_v12  ;;  %v9530_v12 = vcombine.low %v1628_v14, %v1632_v43  ;;  %v1668_v14 = vld [vmem:[%s10614_s15 + $0x1700] sm:$0xff] }
 0x2b7   : > { %7656 = vmatpush1.bf16.msra.mxu1 %v9492_v30  ;;  %7329 = vmatprep.subr.bf16.mxu0 %v9499_v4  ;;  %v9532_v30 = vcombine.low %v1629_v15, %v1633_v18  ;;  %v9539_v4 = vcombine.high %v1636_v23, %v1640_v24  ;;  %v1672_v43 = vld [vmem:[%s10614_s15 + $0x1720] sm:$0xff]  ;;  %v1669_v15 = vld [vmem:[%s10614_s15 + $0x1708] sm:$0xff] }
 0x2b8   : > { %7657 = vmatprep.subr.bf16.mxu1 %v9501_v31  ;;  %v9541_v31 = vcombine.high %v1637_v26, %v1641_v27  ;;  %v1673_v18 = vld [vmem:[%s10614_s15 + $0x1728] sm:$0xff] }
 0x2ba   : > { %7330 = vmatpush1.bf16.msra.mxu0 %v9498_v37  ;;  %v9538_v37 = vcombine.low %v1636_v23, %v1640_v24  ;;  %v1676_v23 = vld [vmem:[%s10614_s15 + $0x1740] sm:$0xff] }
 0x2bb   : > { %7658 = vmatpush1.bf16.msra.mxu1 %v9500_v38  ;;  %7331 = vmatprep.subr.bf16.mxu0 %v9507_v9  ;;  %v9540_v38 = vcombine.low %v1637_v26, %v1641_v27  ;;  %v9547_v9 = vcombine.high %v1644_v34, %v1648_v35  ;;  %v1680_v24 = vld [vmem:[%s10614_s15 + $0x1760] sm:$0xff]  ;;  %v1677_v26 = vld [vmem:[%s10614_s15 + $0x1748] sm:$0xff] }
 0x2bc   : > { %7659 = vmatprep.subr.bf16.mxu1 %v9509_v41  ;;  %v9549_v41 = vcombine.high %v1645_v36, %v1649_v32  ;;  %v1681_v27 = vld [vmem:[%s10614_s15 + $0x1768] sm:$0xff] }
 0x2be   : > { %7332 = vmatpush1.bf16.msra.mxu0 %v9506_v28  ;;  %v9546_v28 = vcombine.low %v1644_v34, %v1648_v35  ;;  %v1684_v34 = vld [vmem:[%s10614_s15 + $0x1780] sm:$0xff] }
 0x2bf   : > { %7660 = vmatpush1.bf16.msra.mxu1 %v9508_v56  ;;  %7333 = vmatprep.subr.bf16.mxu0 %v9515_v33  ;;  %v9548_v56 = vcombine.low %v1645_v36, %v1649_v32  ;;  %v9555_v33 = vcombine.high %v1652_v48, %v1656_v49  ;;  %v1688_v35 = vld [vmem:[%s10614_s15 + $0x17a0] sm:$0xff]  ;;  %v1685_v36 = vld [vmem:[%s10614_s15 + $0x1788] sm:$0xff] }
 0x2c0   : > { %7661 = vmatprep.subr.bf16.mxu1 %v9517_v58  ;;  %v9557_v58 = vcombine.high %v1653_v50, %v1657_v52  ;;  %v1689_v32 = vld [vmem:[%s10614_s15 + $0x17a8] sm:$0xff] }
 0x2c2   : > { %7334 = vmatpush1.bf16.msra.mxu0 %v9514_v46  ;;  %v9554_v46 = vcombine.low %v1652_v48, %v1656_v49  ;;  %v1692_v48 = vld [vmem:[%s10614_s15 + $0x17c0] sm:$0xff] }
 0x2c3   : > { %7662 = vmatpush1.bf16.msra.mxu1 %v9516_v8  ;;  %7335 = vmatprep.subr.bf16.mxu0 %v9523_v11  ;;  %v9556_v8 = vcombine.low %v1653_v50, %v1657_v52  ;;  %v9563_v11 = vcombine.high %v1660_v59, %v1664_v61  ;;  %v1696_v49 = vld [vmem:[%s10614_s15 + $0x17e0] sm:$0xff]  ;;  %v1693_v50 = vld [vmem:[%s10614_s15 + $0x17c8] sm:$0xff] }
 0x2c4   : > { %7663 = vmatprep.subr.bf16.mxu1 %v9525_v13  ;;  %v9565_v13 = vcombine.high %v1661_v62, %v1665_v1  ;;  %v1697_v52 = vld [vmem:[%s10614_s15 + $0x17e8] sm:$0xff] }
 0x2c6   : > { %7336 = vmatpush1.bf16.msra.mxu0 %v9522_v0  ;;  %v9562_v0 = vcombine.low %v1660_v59, %v1664_v61  ;;  %v1700_v59 = vld [vmem:[%s10614_s15 + $0x1800] sm:$0xff] }
 0x2c7   : > { %7664 = vmatpush1.bf16.msra.mxu1 %v9524_v5  ;;  %7337 = vmatprep.subr.bf16.mxu0 %v9531_v20  ;;  %v9564_v5 = vcombine.low %v1661_v62, %v1665_v1  ;;  %v9571_v20 = vcombine.high %v1668_v14, %v1672_v43  ;;  %v1704_v61 = vld [vmem:[%s10614_s15 + $0x1820] sm:$0xff]  ;;  %v1701_v62 = vld [vmem:[%s10614_s15 + $0x1808] sm:$0xff] }
 0x2c8   : > { %7665 = vmatprep.subr.bf16.mxu1 %v9533_v21  ;;  %v9573_v21 = vcombine.high %v1669_v15, %v1673_v18  ;;  %v1705_v1 = vld [vmem:[%s10614_s15 + $0x1828] sm:$0xff] }
 0x2ca   : > { %7338 = vmatpush1.bf16.msra.mxu0 %v9530_v12  ;;  %v9570_v12 = vcombine.low %v1668_v14, %v1672_v43  ;;  %v9605_v14 = vcombine.high %v1701_v62, %v1705_v1  ;;  %v913_v43 = vmax.f32 %v10828_v22, 0.0 }
 0x2cb   : > { %7666 = vmatpush1.bf16.msra.mxu1 %v9532_v30  ;;  %7339 = vmatprep.subr.bf16.mxu0 %v9539_v4  ;;  %v9572_v30 = vcombine.low %v1669_v15, %v1673_v18  ;;  %v9579_v4 = vcombine.high %v1676_v23, %v1680_v24  ;;  %v1708_v15 = vld [vmem:[%s10614_s15 + $0x1840] sm:$0xff] }
 0x2cc   : > { %7667 = vmatprep.subr.bf16.mxu1 %v9541_v31  ;;  %v9581_v31 = vcombine.high %v1677_v26, %v1681_v27  ;;  %v1712_v18 = vld [vmem:[%s10614_s15 + $0x1860] sm:$0xff] }
 0x2ce   : > { %7340 = vmatpush1.bf16.msra.mxu0 %v9538_v37  ;;  %v9578_v37 = vcombine.low %v1676_v23, %v1680_v24  ;;  %v9611_v23 = vcombine.high %v1708_v15, %v1712_v18  ;;  %v1716_v24 = vld [vmem:[%s10614_s15 + $0x1880] sm:$0xff] }
 0x2cf   : > { %7668 = vmatpush1.bf16.msra.mxu1 %v9540_v38  ;;  %7341 = vmatprep.subr.bf16.mxu0 %v9547_v9  ;;  %v9580_v38 = vcombine.low %v1677_v26, %v1681_v27  ;;  %v9587_v9 = vcombine.high %v1684_v34, %v1688_v35  ;;  %v1720_v26 = vld [vmem:[%s10614_s15 + $0x18a0] sm:$0xff]  ;;  %v11209_v27 = vpack.c.bf16 %v913_v43, %v913_v43 }
 0x2d0   : > { %7669 = vmatprep.subr.bf16.mxu1 %v9549_v41  ;;  %v9589_v41 = vcombine.high %v1685_v36, %v1689_v32 }
 0x2d2   : > { %7342 = vmatpush1.bf16.msra.mxu0 %v9546_v28  ;;  %v9586_v28 = vcombine.low %v1684_v34, %v1688_v35  ;;  %v9619_v34 = vcombine.high %v1716_v24, %v1720_v26 }
 0x2d3   : > { %7670 = vmatpush1.bf16.msra.mxu1 %v9548_v56  ;;  %7343 = vmatprep.subr.bf16.mxu0 %v9555_v33  ;;  %v9588_v56 = vcombine.low %v1685_v36, %v1689_v32  ;;  %v9595_v33 = vcombine.high %v1692_v48, %v1696_v49  ;;  %v1724_v36 = vld [vmem:[%s10614_s15 + $0x18c0] sm:$0xff] }
 0x2d4   : > { %7671 = vmatprep.subr.bf16.mxu1 %v9557_v58  ;;  %v9597_v58 = vcombine.high %v1693_v50, %v1697_v52  ;;  %v1728_v32 = vld [vmem:[%s10614_s15 + $0x18e0] sm:$0xff] }
 0x2d6   : > { %7344 = vmatpush1.bf16.msra.mxu0 %v9554_v46  ;;  %v9594_v46 = vcombine.low %v1692_v48, %v1696_v49  ;;  %v9627_v48 = vcombine.high %v1724_v36, %v1728_v32 }
 0x2d7   : > { %7672 = vmatpush1.bf16.msra.mxu1 %v9556_v8  ;;  %7345 = vmatprep.subr.bf16.mxu0 %v9563_v11  ;;  %v910_v8 = vmax.f32 %v10838_v39, 0.0  ;;  %v9596_v11 = vcombine.low %v1693_v50, %v1697_v52  ;;  %v9604_v39 = vcombine.low %v1701_v62, %v1705_v1  ;;  %v1732_v50 = vld [vmem:[%s10614_s15 + $0x1900] sm:$0xff] }
 0x2d8   : > { %7673 = vmatprep.subr.bf16.mxu1 %v9565_v13  ;;  %v9603_v13 = vcombine.high %v1700_v59, %v1704_v61  ;;  %v1736_v52 = vld [vmem:[%s10614_s15 + $0x1920] sm:$0xff] }
 0x2d9   : > { %v1740_v62 = vld [vmem:[%s10614_s15 + $0x1940] sm:$0xff] }
 0x2da   : > { %7346 = vmatpush1.bf16.msra.mxu0 %v9562_v0  ;;  %v9602_v0 = vcombine.low %v1700_v59, %v1704_v61  ;;  %v9635_v59 = vcombine.high %v1732_v50, %v1736_v52  ;;  %v1744_v1 = vld [vmem:[%s10614_s15 + $0x1960] sm:$0xff] }
 0x2db   : > { %7674 = vmatpush1.bf16.msra.mxu1 %v9564_v5  ;;  %7347 = vmatprep.subr.bf16.mxu0 %v9571_v20  ;;  %v1709_v5 = vld [vmem:[%s10614_s15 + $0x1848] sm:$0xff] }
 0x2dc   : > { %7675 = vmatprep.subr.bf16.mxu1 %v9573_v21  ;;  %v1713_v20 = vld [vmem:[%s10614_s15 + $0x1868] sm:$0xff]  ;;  %v11205_v21 = vpack.c.bf16 %v910_v8, %v910_v8 }
 0x2dd   : > { %v9613_v22 = vcombine.high %v1709_v5, %v1713_v20  ;;  %v1745_v8 = vld [vmem:[%s10614_s15 + $0x1968] sm:$0xff] }
 0x2de   : > { %7348 = vmatpush1.bf16.msra.mxu0 %v9570_v12  ;;  %v1717_v12 = vld [vmem:[%s10614_s15 + $0x1888] sm:$0xff] }
 0x2df   : > { %7676 = vmatpush1.bf16.msra.mxu1 %v9572_v30  ;;  %7349 = vmatprep.subr.bf16.mxu0 %v9579_v4  ;;  %v1721_v30 = vld [vmem:[%s10614_s15 + $0x18a8] sm:$0xff]  ;;  %v9610_v4 = vcombine.low %v1708_v15, %v1712_v18  ;;  %v1748_v15 = vld [vmem:[%s10614_s15 + $0x1980] sm:$0xff] }
 0x2e0   : > { %7677 = vmatprep.subr.bf16.mxu1 %v9581_v31  ;;  %v9612_v31 = vcombine.low %v1709_v5, %v1713_v20  ;;  %v9621_v35 = vcombine.high %v1717_v12, %v1721_v30  ;;  %v1752_v18 = vld [vmem:[%s10614_s15 + $0x19a0] sm:$0xff]  ;;  %v1753_v5 = vld [vmem:[%s10614_s15 + $0x19a8] sm:$0xff]  ;;  %v9642_v20 = vcombine.low %v1740_v62, %v1744_v1 }
 0x2e2   : > { %7350 = vmatpush1.bf16.msra.mxu0 %v9578_v37  ;;  %v1725_v37 = vld [vmem:[%s10614_s15 + $0x18c8] sm:$0xff] }
 0x2e3   : > { %7678 = vmatpush1.bf16.msra.mxu1 %v9580_v38  ;;  %7351 = vmatprep.subr.bf16.mxu0 %v9587_v9  ;;  %v1729_v38 = vld [vmem:[%s10614_s15 + $0x18e8] sm:$0xff]  ;;  %v9618_v9 = vcombine.low %v1716_v24, %v1720_v26  ;;  %v1756_v26 = vld [vmem:[%s10614_s15 + $0x19c0] sm:$0xff] }
 0x2e4   : > { %7679 = vmatprep.subr.bf16.mxu1 %v9589_v41  ;;  %v9620_v41 = vcombine.low %v1717_v12, %v1721_v30  ;;  %v9629_v49 = vcombine.high %v1725_v37, %v1729_v38  ;;  %v1757_v12 = vld [vmem:[%s10614_s15 + $0x19c8] sm:$0xff] }
 0x2e5   : > { %v1761_v30 = vld [vmem:[%s10614_s15 + $0x19e8] sm:$0xff] }
 0x2e6   : > { %7352 = vmatpush1.bf16.msra.mxu0 %v9586_v28  ;;  %v1733_v28 = vld [vmem:[%s10614_s15 + $0x1908] sm:$0xff] }
 0x2e7   : > { %7680 = vmatpush1.bf16.msra.mxu1 %v9588_v56  ;;  %7353 = vmatprep.subr.bf16.mxu0 %v9595_v33  ;;  %v1737_v56 = vld [vmem:[%s10614_s15 + $0x1928] sm:$0xff]  ;;  %v9626_v33 = vcombine.low %v1724_v36, %v1728_v32  ;;  %v1764_v36 = vld [vmem:[%s10614_s15 + $0x1a00] sm:$0xff] }
 0x2e8   : > { %7681 = vmatprep.subr.bf16.mxu1 %v9597_v58  ;;  %v9628_v58 = vcombine.low %v1725_v37, %v1729_v38  ;;  %v9637_v61 = vcombine.high %v1733_v28, %v1737_v56  ;;  %v1768_v32 = vld [vmem:[%s10614_s15 + $0x1a20] sm:$0xff]  ;;  %v1765_v37 = vld [vmem:[%s10614_s15 + $0x1a08] sm:$0xff] }
 0x2e9   : > { %v1769_v38 = vld [vmem:[%s10614_s15 + $0x1a28] sm:$0xff] }
 0x2ea   : > { %7354 = vmatpush1.bf16.msra.mxu0 %v9594_v46  ;;  %v1741_v46 = vld [vmem:[%s10614_s15 + $0x1948] sm:$0xff] }
 0x2eb   : > { %7682 = vmatpush1.bf16.msra.mxu1 %v9596_v11  ;;  %7364 = vmatprep.subr.bf16.mxu0 %v9603_v13  ;;  %v9634_v11 = vcombine.low %v1732_v50, %v1736_v52  ;;  %v9636_v13 = vcombine.low %v1733_v28, %v1737_v56  ;;  %v9645_v43 = vcombine.high %v1741_v46, %v1745_v8  ;;  %v1772_v50 = vld [vmem:[%s10614_s15 + $0x1a40] sm:$0xff]  ;;  %v1773_v28 = vld [vmem:[%s10614_s15 + $0x1a48] sm:$0xff] }
 0x2ec   : > { %7692 = vmatprep.subr.bf16.mxu1 %v9605_v14  ;;  %v9643_v14 = vcombine.high %v1740_v62, %v1744_v1  ;;  %v1776_v52 = vld [vmem:[%s10614_s15 + $0x1a60] sm:$0xff]  ;;  %v1777_v56 = vld [vmem:[%s10614_s15 + $0x1a68] sm:$0xff] }
 0x2ed   : > { %7356 = vmatmul.mubr.bf16.vlgmr.msra.gmra.mrb[8].mxu0 %v11205_v21  ;;  %v1780_v62 = vld [vmem:[%s10614_s15 + $0x1a80] sm:$0xff] }
 0x2ee   : > { %7684 = vmatmul.mubr.bf16.vlgmr.msra.gmra.mrb[24].mxu1 %v11205_v21  ;;  %7365 = vmatpush1.bf16.msra.mxu0 %v9602_v0  ;;  %v1749_v0 = vld [vmem:[%s10614_s15 + $0x1988] sm:$0xff]  ;;  %v1784_v1 = vld [vmem:[%s10614_s15 + $0x1aa0] sm:$0xff] }
 0x2ef   : > { %7396 = vmatprep.mubr.bf16.mxu0 %v11209_v27  ;;  %7693 = vmatpush1.bf16.msra.mxu1 %v9604_v39  ;;  %v9644_v39 = vcombine.low %v1741_v46, %v1745_v8  ;;  %v9653_v24 = vcombine.high %v1749_v0, %v1753_v5  ;;  %v1781_v46 = vld [vmem:[%s10614_s15 + $0x1a88] sm:$0xff] }
 0x2f0   : > { %7724 = vmatprep.mubr.bf16.mxu1 %v11209_v27  ;;  %7366 = vmatprep.subr.bf16.mxu0 %v9611_v23  ;;  %v9651_v23 = vcombine.high %v1748_v15, %v1752_v18  ;;  %v1785_v8 = vld [vmem:[%s10614_s15 + $0x1aa8] sm:$0xff] }
 0x2f1   : > { %7694 = vmatprep.subr.bf16.mxu1 %v9613_v22  ;;  %v1760_v22 = vld [vmem:[%s10614_s15 + $0x19e0] sm:$0xff] }
 0x2f2   : > { %7367 = vmatpush1.bf16.msra.mxu0 %v9610_v4  ;;  %v9650_v4 = vcombine.low %v1748_v15, %v1752_v18  ;;  %v1788_v15 = vld [vmem:[%s10614_s15 + $0x1ac0] sm:$0xff] }
 0x2f3   : > { %7695 = vmatpush1.bf16.msra.mxu1 %v9612_v31  ;;  %7368 = vmatprep.subr.bf16.mxu0 %v9619_v34  ;;  %v9652_v31 = vcombine.low %v1749_v0, %v1753_v5  ;;  %v9659_v34 = vcombine.high %v1756_v26, %v1760_v22  ;;  %v1792_v18 = vld [vmem:[%s10614_s15 + $0x1ae0] sm:$0xff]  ;;  %v1789_v0 = vld [vmem:[%s10614_s15 + $0x1ac8] sm:$0xff] }
 0x2f4   : > { %7696 = vmatprep.subr.bf16.mxu1 %v9621_v35  ;;  %v9661_v35 = vcombine.high %v1757_v12, %v1761_v30  ;;  %v1793_v5 = vld [vmem:[%s10614_s15 + $0x1ae8] sm:$0xff] }
 0x2f6   : > { %7369 = vmatpush1.bf16.msra.mxu0 %v9618_v9  ;;  %v9658_v9 = vcombine.low %v1756_v26, %v1760_v22  ;;  %v1796_v26 = vld [vmem:[%s10614_s15 + $0x1b00] sm:$0xff] }
 0x2f7   : > { %7697 = vmatpush1.bf16.msra.mxu1 %v9620_v41  ;;  %7370 = vmatprep.subr.bf16.mxu0 %v9627_v48  ;;  %v9660_v41 = vcombine.low %v1757_v12, %v1761_v30  ;;  %v9667_v48 = vcombine.high %v1764_v36, %v1768_v32  ;;  %v1800_v22 = vld [vmem:[%s10614_s15 + $0x1b20] sm:$0xff]  ;;  %v1797_v12 = vld [vmem:[%s10614_s15 + $0x1b08] sm:$0xff] }
 0x2f8   : > { %7698 = vmatprep.subr.bf16.mxu1 %v9629_v49  ;;  %v9669_v49 = vcombine.high %v1765_v37, %v1769_v38  ;;  %v1801_v30 = vld [vmem:[%s10614_s15 + $0x1b28] sm:$0xff] }
 0x2fa   : > { %7371 = vmatpush1.bf16.msra.mxu0 %v9626_v33  ;;  %v9666_v33 = vcombine.low %v1764_v36, %v1768_v32  ;;  %v1804_v36 = vld [vmem:[%s10614_s15 + $0x1b40] sm:$0xff] }
 0x2fb   : > { %7699 = vmatpush1.bf16.msra.mxu1 %v9628_v58  ;;  %7372 = vmatprep.subr.bf16.mxu0 %v9635_v59  ;;  %v9668_v58 = vcombine.low %v1765_v37, %v1769_v38  ;;  %v9675_v59 = vcombine.high %v1772_v50, %v1776_v52  ;;  %v1808_v32 = vld [vmem:[%s10614_s15 + $0x1b60] sm:$0xff]  ;;  %v1805_v37 = vld [vmem:[%s10614_s15 + $0x1b48] sm:$0xff] }
 0x2fc   : > { %7700 = vmatprep.subr.bf16.mxu1 %v9637_v61  ;;  %v9677_v61 = vcombine.high %v1773_v28, %v1777_v56  ;;  %v1809_v38 = vld [vmem:[%s10614_s15 + $0x1b68] sm:$0xff] }
 0x2fe   : > { %7373 = vmatpush1.bf16.msra.mxu0 %v9634_v11  ;;  %v9674_v11 = vcombine.low %v1772_v50, %v1776_v52  ;;  %v1812_v50 = vld [vmem:[%s10614_s15 + $0x1b80] sm:$0xff] }
 0x2ff   : > { %7701 = vmatpush1.bf16.msra.mxu1 %v9636_v13  ;;  %7374 = vmatprep.subr.bf16.mxu0 %v9643_v14  ;;  %v9676_v13 = vcombine.low %v1773_v28, %v1777_v56  ;;  %v9683_v14 = vcombine.high %v1780_v62, %v1784_v1  ;;  %v1816_v52 = vld [vmem:[%s10614_s15 + $0x1ba0] sm:$0xff]  ;;  %v1813_v28 = vld [vmem:[%s10614_s15 + $0x1b88] sm:$0xff] }
 0x300   : > { %7702 = vmatprep.subr.bf16.mxu1 %v9645_v43  ;;  %v9685_v43 = vcombine.high %v1781_v46, %v1785_v8  ;;  %v1817_v56 = vld [vmem:[%s10614_s15 + $0x1ba8] sm:$0xff] }
 0x302   : > { %7375 = vmatpush1.bf16.msra.mxu0 %v9642_v20  ;;  %v9682_v20 = vcombine.low %v1780_v62, %v1784_v1  ;;  %v1820_v62 = vld [vmem:[%s10614_s15 + $0x1bc0] sm:$0xff] }
 0x303   : > { %7703 = vmatpush1.bf16.msra.mxu1 %v9644_v39  ;;  %7376 = vmatprep.subr.bf16.mxu0 %v9651_v23  ;;  %v9684_v39 = vcombine.low %v1781_v46, %v1785_v8  ;;  %v9691_v23 = vcombine.high %v1788_v15, %v1792_v18  ;;  %v1824_v1 = vld [vmem:[%s10614_s15 + $0x1be0] sm:$0xff]  ;;  %v1821_v46 = vld [vmem:[%s10614_s15 + $0x1bc8] sm:$0xff] }
 0x304   : > { %7704 = vmatprep.subr.bf16.mxu1 %v9653_v24  ;;  %v9693_v24 = vcombine.high %v1789_v0, %v1793_v5  ;;  %v1825_v8 = vld [vmem:[%s10614_s15 + $0x1be8] sm:$0xff] }
 0x306   : > { %7377 = vmatpush1.bf16.msra.mxu0 %v9650_v4  ;;  %v9690_v4 = vcombine.low %v1788_v15, %v1792_v18  ;;  %v1828_v15 = vld [vmem:[%s10614_s15 + $0x1c00] sm:$0xff] }
 0x307   : > { %7705 = vmatpush1.bf16.msra.mxu1 %v9652_v31  ;;  %7378 = vmatprep.subr.bf16.mxu0 %v9659_v34  ;;  %v9692_v31 = vcombine.low %v1789_v0, %v1793_v5  ;;  %v9699_v34 = vcombine.high %v1796_v26, %v1800_v22  ;;  %v1832_v18 = vld [vmem:[%s10614_s15 + $0x1c20] sm:$0xff]  ;;  %v1829_v0 = vld [vmem:[%s10614_s15 + $0x1c08] sm:$0xff] }
 0x308   : > { %7706 = vmatprep.subr.bf16.mxu1 %v9661_v35  ;;  %v9701_v35 = vcombine.high %v1797_v12, %v1801_v30  ;;  %v1833_v5 = vld [vmem:[%s10614_s15 + $0x1c28] sm:$0xff] }
 0x30a   : > { %7379 = vmatpush1.bf16.msra.mxu0 %v9658_v9  ;;  %v9698_v9 = vcombine.low %v1796_v26, %v1800_v22  ;;  %v9733_v26 = vcombine.high %v1829_v0, %v1833_v5  ;;  %v915_v22 = vmax.f32 %v10862_v19, 0.0 }
 0x30b   : > { %7707 = vmatpush1.bf16.msra.mxu1 %v9660_v41  ;;  %7380 = vmatprep.subr.bf16.mxu0 %v9667_v48  ;;  %v9700_v41 = vcombine.low %v1797_v12, %v1801_v30  ;;  %v9707_v48 = vcombine.high %v1804_v36, %v1808_v32  ;;  %v1836_v12 = vld [vmem:[%s10614_s15 + $0x1c40] sm:$0xff] }
 0x30c   : > { %7708 = vmatprep.subr.bf16.mxu1 %v9669_v49  ;;  %v9709_v49 = vcombine.high %v1805_v37, %v1809_v38  ;;  %v1840_v30 = vld [vmem:[%s10614_s15 + $0x1c60] sm:$0xff] }
 0x30e   : > { %7381 = vmatpush1.bf16.msra.mxu0 %v9666_v33  ;;  %v9706_v33 = vcombine.low %v1804_v36, %v1808_v32  ;;  %v9739_v36 = vcombine.high %v1836_v12, %v1840_v30  ;;  %v1844_v32 = vld [vmem:[%s10614_s15 + $0x1c80] sm:$0xff] }
 0x30f   : > { %7709 = vmatpush1.bf16.msra.mxu1 %v9668_v58  ;;  %7382 = vmatprep.subr.bf16.mxu0 %v9675_v59  ;;  %v9708_v58 = vcombine.low %v1805_v37, %v1809_v38  ;;  %v9715_v59 = vcombine.high %v1812_v50, %v1816_v52  ;;  %v1848_v37 = vld [vmem:[%s10614_s15 + $0x1ca0] sm:$0xff]  ;;  %v11283_v38 = vpack.c.bf16 %v915_v22, %v915_v22 }
 0x310   : > { %7710 = vmatprep.subr.bf16.mxu1 %v9677_v61  ;;  %v9717_v61 = vcombine.high %v1813_v28, %v1817_v56 }
 0x312   : > { %7383 = vmatpush1.bf16.msra.mxu0 %v9674_v11  ;;  %v9714_v11 = vcombine.low %v1812_v50, %v1816_v52  ;;  %v9747_v50 = vcombine.high %v1844_v32, %v1848_v37 }
 0x313   : > { %7711 = vmatpush1.bf16.msra.mxu1 %v9676_v13  ;;  %7384 = vmatprep.subr.bf16.mxu0 %v9683_v14  ;;  %v9716_v13 = vcombine.low %v1813_v28, %v1817_v56  ;;  %v9723_v14 = vcombine.high %v1820_v62, %v1824_v1  ;;  %v1852_v28 = vld [vmem:[%s10614_s15 + $0x1cc0] sm:$0xff] }
 0x314   : > { %7712 = vmatprep.subr.bf16.mxu1 %v9685_v43  ;;  %v9725_v43 = vcombine.high %v1821_v46, %v1825_v8  ;;  %v1856_v56 = vld [vmem:[%s10614_s15 + $0x1ce0] sm:$0xff] }
 0x316   : > { %7385 = vmatpush1.bf16.msra.mxu0 %v9682_v20  ;;  %v9722_v20 = vcombine.low %v1820_v62, %v1824_v1  ;;  %v9755_v62 = vcombine.high %v1852_v28, %v1856_v56 }
 0x317   : > { %7713 = vmatpush1.bf16.msra.mxu1 %v9684_v39  ;;  %7386 = vmatprep.subr.bf16.mxu0 %v9691_v23  ;;  %v912_v39 = vmax.f32 %v10817_v6, 0.0  ;;  %v9724_v23 = vcombine.low %v1821_v46, %v1825_v8  ;;  %v9732_v6 = vcombine.low %v1829_v0, %v1833_v5  ;;  %v1860_v46 = vld [vmem:[%s10614_s15 + $0x1d00] sm:$0xff] }
 0x318   : > { %7714 = vmatprep.subr.bf16.mxu1 %v9693_v24  ;;  %v9731_v24 = vcombine.high %v1828_v15, %v1832_v18  ;;  %v1864_v8 = vld [vmem:[%s10614_s15 + $0x1d20] sm:$0xff] }
 0x319   : > { %v1868_v0 = vld [vmem:[%s10614_s15 + $0x1d40] sm:$0xff] }
 0x31a   : > { %7387 = vmatpush1.bf16.msra.mxu0 %v9690_v4  ;;  %v9730_v4 = vcombine.low %v1828_v15, %v1832_v18  ;;  %v9763_v15 = vcombine.high %v1860_v46, %v1864_v8  ;;  %v1872_v5 = vld [vmem:[%s10614_s15 + $0x1d60] sm:$0xff] }
 0x31b   : > { %7715 = vmatpush1.bf16.msra.mxu1 %v9692_v31  ;;  %7388 = vmatprep.subr.bf16.mxu0 %v9699_v34  ;;  %v1837_v31 = vld [vmem:[%s10614_s15 + $0x1c48] sm:$0xff] }
 0x31c   : > { %7716 = vmatprep.subr.bf16.mxu1 %v9701_v35  ;;  %v1841_v34 = vld [vmem:[%s10614_s15 + $0x1c68] sm:$0xff]  ;;  %v11279_v35 = vpack.c.bf16 %v912_v39, %v912_v39 }
 0x31d   : > { %v9741_v19 = vcombine.high %v1837_v31, %v1841_v34  ;;  %v1873_v39 = vld [vmem:[%s10614_s15 + $0x1d68] sm:$0xff] }
 0x31e   : > { %7389 = vmatpush1.bf16.msra.mxu0 %v9698_v9  ;;  %v1845_v9 = vld [vmem:[%s10614_s15 + $0x1c88] sm:$0xff] }
 0x31f   : > { %7717 = vmatpush1.bf16.msra.mxu1 %v9700_v41  ;;  %7390 = vmatprep.subr.bf16.mxu0 %v9707_v48  ;;  %v1849_v41 = vld [vmem:[%s10614_s15 + $0x1ca8] sm:$0xff]  ;;  %v9738_v48 = vcombine.low %v1836_v12, %v1840_v30  ;;  %v1876_v12 = vld [vmem:[%s10614_s15 + $0x1d80] sm:$0xff] }
 0x320   : > { %7718 = vmatprep.subr.bf16.mxu1 %v9709_v49  ;;  %v9740_v49 = vcombine.low %v1837_v31, %v1841_v34  ;;  %v9749_v52 = vcombine.high %v1845_v9, %v1849_v41  ;;  %v1880_v30 = vld [vmem:[%s10614_s15 + $0x1da0] sm:$0xff]  ;;  %v1881_v31 = vld [vmem:[%s10614_s15 + $0x1da8] sm:$0xff]  ;;  %v9770_v34 = vcombine.low %v1868_v0, %v1872_v5 }
 0x322   : > { %7391 = vmatpush1.bf16.msra.mxu0 %v9706_v33  ;;  %v1853_v33 = vld [vmem:[%s10614_s15 + $0x1cc8] sm:$0xff] }
 0x323   : > { %7719 = vmatpush1.bf16.msra.mxu1 %v9708_v58  ;;  %7392 = vmatprep.subr.bf16.mxu0 %v9715_v59  ;;  %v1857_v58 = vld [vmem:[%s10614_s15 + $0x1ce8] sm:$0xff]  ;;  %v9746_v59 = vcombine.low %v1844_v32, %v1848_v37  ;;  %v1884_v37 = vld [vmem:[%s10614_s15 + $0x1dc0] sm:$0xff] }
 0x324   : > { %7720 = vmatprep.subr.bf16.mxu1 %v9717_v61  ;;  %v9748_v61 = vcombine.low %v1845_v9, %v1849_v41  ;;  %v9757_v1 = vcombine.high %v1853_v33, %v1857_v58  ;;  %v1885_v9 = vld [vmem:[%s10614_s15 + $0x1dc8] sm:$0xff] }
 0x325   : > { %v1889_v41 = vld [vmem:[%s10614_s15 + $0x1de8] sm:$0xff] }
 0x326   : > { %7393 = vmatpush1.bf16.msra.mxu0 %v9714_v11  ;;  %v1861_v11 = vld [vmem:[%s10614_s15 + $0x1d08] sm:$0xff] }
 0x327   : > { %7721 = vmatpush1.bf16.msra.mxu1 %v9716_v13  ;;  %7394 = vmatprep.subr.bf16.mxu0 %v9723_v14  ;;  %v1865_v13 = vld [vmem:[%s10614_s15 + $0x1d28] sm:$0xff]  ;;  %v9754_v14 = vcombine.low %v1852_v28, %v1856_v56  ;;  %v1892_v28 = vld [vmem:[%s10614_s15 + $0x1e00] sm:$0xff] }
 0x328   : > { %7722 = vmatprep.subr.bf16.mxu1 %v9725_v43  ;;  %v9756_v43 = vcombine.low %v1853_v33, %v1857_v58  ;;  %v9765_v18 = vcombine.high %v1861_v11, %v1865_v13  ;;  %v1896_v56 = vld [vmem:[%s10614_s15 + $0x1e20] sm:$0xff]  ;;  %v1893_v33 = vld [vmem:[%s10614_s15 + $0x1e08] sm:$0xff] }
 0x329   : > { %v1897_v58 = vld [vmem:[%s10614_s15 + $0x1e28] sm:$0xff] }
 0x32a   : > { %7395 = vmatpush1.bf16.msra.mxu0 %v9722_v20  ;;  %v1869_v20 = vld [vmem:[%s10614_s15 + $0x1d48] sm:$0xff] }
 0x32b   : > { %7723 = vmatpush1.bf16.msra.mxu1 %v9724_v23  ;;  %7405 = vmatprep.subr.bf16.mxu0 %v9731_v24  ;;  %v9762_v23 = vcombine.low %v1860_v46, %v1864_v8  ;;  %v9764_v24 = vcombine.low %v1861_v11, %v1865_v13  ;;  %v9773_v22 = vcombine.high %v1869_v20, %v1873_v39  ;;  %v1900_v46 = vld [vmem:[%s10614_s15 + $0x1e40] sm:$0xff]  ;;  %v1901_v11 = vld [vmem:[%s10614_s15 + $0x1e48] sm:$0xff] }
 0x32c   : > { %7733 = vmatprep.subr.bf16.mxu1 %v9733_v26  ;;  %v9771_v26 = vcombine.high %v1868_v0, %v1872_v5  ;;  %v1904_v8 = vld [vmem:[%s10614_s15 + $0x1e60] sm:$0xff]  ;;  %v1905_v13 = vld [vmem:[%s10614_s15 + $0x1e68] sm:$0xff] }
 0x32d   : > { %7397 = vmatmul.mubr.bf16.vlgmr.msra.gmra.mrb[8].mxu0 %v11279_v35  ;;  %v1908_v0 = vld [vmem:[%s10614_s15 + $0x1e80] sm:$0xff] }
 0x32e   : > { %7725 = vmatmul.mubr.bf16.vlgmr.msra.gmra.mrb[24].mxu1 %v11279_v35  ;;  %7406 = vmatpush1.bf16.msra.mxu0 %v9730_v4  ;;  %v1877_v4 = vld [vmem:[%s10614_s15 + $0x1d88] sm:$0xff]  ;;  %v1912_v5 = vld [vmem:[%s10614_s15 + $0x1ea0] sm:$0xff] }
 0x32f   : > { %7437 = vmatprep.mubr.bf16.mxu0 %v11283_v38  ;;  %7734 = vmatpush1.bf16.msra.mxu1 %v9732_v6  ;;  %v9772_v6 = vcombine.low %v1869_v20, %v1873_v39  ;;  %v9781_v32 = vcombine.high %v1877_v4, %v1881_v31  ;;  %v1909_v20 = vld [vmem:[%s10614_s15 + $0x1e88] sm:$0xff] }
 0x330   : > { %7765 = vmatprep.mubr.bf16.mxu1 %v11283_v38  ;;  %7407 = vmatprep.subr.bf16.mxu0 %v9739_v36  ;;  %v9779_v36 = vcombine.high %v1876_v12, %v1880_v30  ;;  %v1913_v39 = vld [vmem:[%s10614_s15 + $0x1ea8] sm:$0xff] }
 0x331   : > { %7735 = vmatprep.subr.bf16.mxu1 %v9741_v19  ;;  %v1888_v19 = vld [vmem:[%s10614_s15 + $0x1de0] sm:$0xff] }
 0x332   : > { %7408 = vmatpush1.bf16.msra.mxu0 %v9738_v48  ;;  %v9778_v48 = vcombine.low %v1876_v12, %v1880_v30  ;;  %v1916_v12 = vld [vmem:[%s10614_s15 + $0x1ec0] sm:$0xff] }
 0x333   : > { %7736 = vmatpush1.bf16.msra.mxu1 %v9740_v49  ;;  %7409 = vmatprep.subr.bf16.mxu0 %v9747_v50  ;;  %v9780_v49 = vcombine.low %v1877_v4, %v1881_v31  ;;  %v9787_v50 = vcombine.high %v1884_v37, %v1888_v19  ;;  %v1920_v30 = vld [vmem:[%s10614_s15 + $0x1ee0] sm:$0xff]  ;;  %v1917_v4 = vld [vmem:[%s10614_s15 + $0x1ec8] sm:$0xff] }
 0x334   : > { %7737 = vmatprep.subr.bf16.mxu1 %v9749_v52  ;;  %v9789_v52 = vcombine.high %v1885_v9, %v1889_v41  ;;  %v1921_v31 = vld [vmem:[%s10614_s15 + $0x1ee8] sm:$0xff] }
 0x336   : > { %7410 = vmatpush1.bf16.msra.mxu0 %v9746_v59  ;;  %v9786_v59 = vcombine.low %v1884_v37, %v1888_v19  ;;  %v1924_v37 = vld [vmem:[%s10614_s15 + $0x1f00] sm:$0xff] }
 0x337   : > { %7738 = vmatpush1.bf16.msra.mxu1 %v9748_v61  ;;  %7411 = vmatprep.subr.bf16.mxu0 %v9755_v62  ;;  %v9788_v61 = vcombine.low %v1885_v9, %v1889_v41  ;;  %v9795_v62 = vcombine.high %v1892_v28, %v1896_v56  ;;  %v1928_v19 = vld [vmem:[%s10614_s15 + $0x1f20] sm:$0xff]  ;;  %v1925_v9 = vld [vmem:[%s10614_s15 + $0x1f08] sm:$0xff] }
 0x338   : > { %7739 = vmatprep.subr.bf16.mxu1 %v9757_v1  ;;  %v9797_v1 = vcombine.high %v1893_v33, %v1897_v58  ;;  %v1929_v41 = vld [vmem:[%s10614_s15 + $0x1f28] sm:$0xff] }
 0x33a   : > { %7412 = vmatpush1.bf16.msra.mxu0 %v9754_v14  ;;  %v9794_v14 = vcombine.low %v1892_v28, %v1896_v56  ;;  %v1932_v28 = vld [vmem:[%s10614_s15 + $0x1f40] sm:$0xff] }
 0x33b   : > { %7740 = vmatpush1.bf16.msra.mxu1 %v9756_v43  ;;  %7413 = vmatprep.subr.bf16.mxu0 %v9763_v15  ;;  %v9796_v43 = vcombine.low %v1893_v33, %v1897_v58  ;;  %v9803_v15 = vcombine.high %v1900_v46, %v1904_v8  ;;  %v1936_v56 = vld [vmem:[%s10614_s15 + $0x1f60] sm:$0xff]  ;;  %v1933_v33 = vld [vmem:[%s10614_s15 + $0x1f48] sm:$0xff] }
 0x33c   : > { %7741 = vmatprep.subr.bf16.mxu1 %v9765_v18  ;;  %v9805_v18 = vcombine.high %v1901_v11, %v1905_v13  ;;  %v1937_v58 = vld [vmem:[%s10614_s15 + $0x1f68] sm:$0xff] }
 0x33e   : > { %7414 = vmatpush1.bf16.msra.mxu0 %v9762_v23  ;;  %v9802_v23 = vcombine.low %v1900_v46, %v1904_v8  ;;  %v1940_v46 = vld [vmem:[%s10614_s15 + $0x1f80] sm:$0xff] }
 0x33f   : > { %7742 = vmatpush1.bf16.msra.mxu1 %v9764_v24  ;;  %7415 = vmatprep.subr.bf16.mxu0 %v9771_v26  ;;  %v9804_v24 = vcombine.low %v1901_v11, %v1905_v13  ;;  %v9811_v26 = vcombine.high %v1908_v0, %v1912_v5  ;;  %v1944_v8 = vld [vmem:[%s10614_s15 + $0x1fa0] sm:$0xff]  ;;  %v1941_v11 = vld [vmem:[%s10614_s15 + $0x1f88] sm:$0xff] }
 0x340   : > { %7743 = vmatprep.subr.bf16.mxu1 %v9773_v22  ;;  %v9813_v22 = vcombine.high %v1909_v20, %v1913_v39  ;;  %v1945_v13 = vld [vmem:[%s10614_s15 + $0x1fa8] sm:$0xff] }
 0x342   : > { %7416 = vmatpush1.bf16.msra.mxu0 %v9770_v34  ;;  %v9810_v34 = vcombine.low %v1908_v0, %v1912_v5  ;;  %v1948_v0 = vld [vmem:[%s10614_s15 + $0x1fc0] sm:$0xff] }
 0x343   : > { %7744 = vmatpush1.bf16.msra.mxu1 %v9772_v6  ;;  %7417 = vmatprep.subr.bf16.mxu0 %v9779_v36  ;;  %v9812_v6 = vcombine.low %v1909_v20, %v1913_v39  ;;  %v9819_v36 = vcombine.high %v1916_v12, %v1920_v30  ;;  %v1952_v5 = vld [vmem:[%s10614_s15 + $0x1fe0] sm:$0xff]  ;;  %v1949_v20 = vld [vmem:[%s10614_s15 + $0x1fc8] sm:$0xff] }
 0x344   : > { %7745 = vmatprep.subr.bf16.mxu1 %v9781_v32  ;;  %v9821_v32 = vcombine.high %v1917_v4, %v1921_v31  ;;  %v1953_v39 = vld [vmem:[%s10614_s15 + $0x1fe8] sm:$0xff] }
 0x346   : > { %7418 = vmatpush1.bf16.msra.mxu0 %v9778_v48  ;;  %v9818_v48 = vcombine.low %v1916_v12, %v1920_v30  ;;  %v934_v12 = vld [vmem:[%s10614_s15 + $0x10] sm:$0xff] }
 0x347   : > { %7746 = vmatpush1.bf16.msra.mxu1 %v9780_v49  ;;  %7419 = vmatprep.subr.bf16.mxu0 %v9787_v50  ;;  %v9820_v49 = vcombine.low %v1917_v4, %v1921_v31  ;;  %v9827_v50 = vcombine.high %v1924_v37, %v1928_v19  ;;  %v938_v30 = vld [vmem:[%s10614_s15 + $0x30] sm:$0xff]  ;;  %v935_v4 = vld [vmem:[%s10614_s15 + $0x18] sm:$0xff] }
 0x348   : > { %7747 = vmatprep.subr.bf16.mxu1 %v9789_v52  ;;  %v9829_v52 = vcombine.high %v1925_v9, %v1929_v41  ;;  %v939_v31 = vld [vmem:[%s10614_s15 + $0x38] sm:$0xff] }
 0x34a   : > { %7420 = vmatpush1.bf16.msra.mxu0 %v9786_v59  ;;  %v9826_v59 = vcombine.low %v1924_v37, %v1928_v19  ;;  %v8841_v37 = vcombine.high %v935_v4, %v939_v31  ;;  %v942_v19 = vld [vmem:[%s10614_s15 + $0x50] sm:$0xff] }
 0x34b   : > { %7748 = vmatpush1.bf16.msra.mxu1 %v9788_v61  ;;  %7421 = vmatprep.subr.bf16.mxu0 %v9795_v62  ;;  %v9828_v61 = vcombine.low %v1925_v9, %v1929_v41  ;;  %v9835_v62 = vcombine.high %v1932_v28, %v1936_v56  ;;  %v946_v9 = vld [vmem:[%s10614_s15 + $0x70] sm:$0xff]  ;;  %v8838_v41 = vcombine.low %v934_v12, %v938_v30 }
 0x34c   : > { %7749 = vmatprep.subr.bf16.mxu1 %v9797_v1  ;;  %v9837_v1 = vcombine.high %v1933_v33, %v1937_v58 }
 0x34e   : > { %7422 = vmatpush1.bf16.msra.mxu0 %v9794_v14  ;;  %v9834_v14 = vcombine.low %v1932_v28, %v1936_v56  ;;  %v950_v28 = vld [vmem:[%s10614_s15 + $0x90] sm:$0xff] }
 0x34f   : > { %7750 = vmatpush1.bf16.msra.mxu1 %v9796_v43  ;;  %7423 = vmatprep.subr.bf16.mxu0 %v9803_v15  ;;  %v9836_v43 = vcombine.low %v1933_v33, %v1937_v58  ;;  %v9843_v15 = vcombine.high %v1940_v46, %v1944_v8  ;;  %v954_v56 = vld [vmem:[%s10614_s15 + $0xb0] sm:$0xff]  ;;  %v951_v58 = vld [vmem:[%s10614_s15 + $0x98] sm:$0xff] }
 0x350   : > { %7751 = vmatprep.subr.bf16.mxu1 %v9805_v18  ;;  %v9845_v18 = vcombine.high %v1941_v11, %v1945_v13 }
 0x352   : > { %7424 = vmatpush1.bf16.msra.mxu0 %v9802_v23  ;;  %v9842_v23 = vcombine.low %v1940_v46, %v1944_v8  ;;  %v958_v8 = vld [vmem:[%s10614_s15 + $0xd0] sm:$0xff] }
 0x353   : > { %7752 = vmatpush1.bf16.msra.mxu1 %v9804_v24  ;;  %7425 = vmatprep.subr.bf16.mxu0 %v9811_v26  ;;  %v9844_v24 = vcombine.low %v1941_v11, %v1945_v13  ;;  %v9851_v26 = vcombine.high %v1948_v0, %v1952_v5  ;;  %v962_v11 = vld [vmem:[%s10614_s15 + $0xf0] sm:$0xff]  ;;  %v959_v13 = vld [vmem:[%s10614_s15 + $0xd8] sm:$0xff] }
 0x354   : > { %7753 = vmatprep.subr.bf16.mxu1 %v9813_v22  ;;  %v9853_v22 = vcombine.high %v1949_v20, %v1953_v39 }
 0x356   : > { %7426 = vmatpush1.bf16.msra.mxu0 %v9810_v34  ;;  %v9850_v34 = vcombine.low %v1948_v0, %v1952_v5  ;;  %v966_v0 = vld [vmem:[%s10614_s15 + $0x110] sm:$0xff] }
 0x357   : > { %7754 = vmatpush1.bf16.msra.mxu1 %v9812_v6  ;;  %7427 = vmatprep.subr.bf16.mxu0 %v9819_v36  ;;  %v914_v6 = vmax.f32 %v10860_v16, 0.0  ;;  %v9852_v36 = vcombine.low %v1949_v20, %v1953_v39  ;;  %v8840_v16 = vcombine.low %v935_v4, %v939_v31  ;;  %v970_v5 = vld [vmem:[%s10614_s15 + $0x130] sm:$0xff]  ;;  %v967_v20 = vld [vmem:[%s10614_s15 + $0x118] sm:$0xff] }
 0x358   : > { %7755 = vmatprep.subr.bf16.mxu1 %v9821_v32  ;;  %v8839_v32 = vcombine.high %v934_v12, %v938_v30  ;;  %v971_v39 = vld [vmem:[%s10614_s15 + $0x138] sm:$0xff]  ;;  %v974_v12 = vld [vmem:[%s10614_s15 + $0x150] sm:$0xff] }
 0x359   : > { %v978_v30 = vld [vmem:[%s10614_s15 + $0x170] sm:$0xff]  ;;  %v975_v4 = vld [vmem:[%s10614_s15 + $0x158] sm:$0xff] }
 0x35a   : > { %7428 = vmatpush1.bf16.msra.mxu0 %v9818_v48  ;;  %v943_v48 = vld [vmem:[%s10614_s15 + $0x58] sm:$0xff] }
 0x35b   : > { %7756 = vmatpush1.bf16.msra.mxu1 %v9820_v49  ;;  %7429 = vmatprep.subr.bf16.mxu0 %v9827_v50  ;;  %v947_v49 = vld [vmem:[%s10614_s15 + $0x78] sm:$0xff]  ;;  %v11352_v50 = vpack.c.bf16 %v914_v6, %v914_v6  ;;  %v8872_v6 = vcombine.low %v967_v20, %v971_v39 }
 0x35c   : > { %7757 = vmatprep.subr.bf16.mxu1 %v9829_v52  ;;  %v8847_v52 = vcombine.high %v942_v19, %v946_v9  ;;  %v8849_v33 = vcombine.high %v943_v48, %v947_v49  ;;  %v979_v31 = vld [vmem:[%s10614_s15 + $0x178] sm:$0xff] }
 0x35e   : > { %7430 = vmatpush1.bf16.msra.mxu0 %v9826_v59  ;;  %v955_v59 = vld [vmem:[%s10614_s15 + $0xb8] sm:$0xff] }
 0x35f   : > { %7758 = vmatpush1.bf16.msra.mxu1 %v9828_v61  ;;  %7431 = vmatprep.subr.bf16.mxu0 %v9835_v62  ;;  %v8846_v61 = vcombine.low %v942_v19, %v946_v9  ;;  %v8848_v62 = vcombine.low %v943_v48, %v947_v49  ;;  %v8857_v46 = vcombine.high %v951_v58, %v955_v59  ;;  %v986_v19 = vld [vmem:[%s10614_s15 + $0x1b0] sm:$0xff]  ;;  %v983_v9 = vld [vmem:[%s10614_s15 + $0x198] sm:$0xff] }
 0x360   : > { %7759 = vmatprep.subr.bf16.mxu1 %v9837_v1  ;;  %v8855_v1 = vcombine.high %v950_v28, %v954_v56  ;;  %v8878_v48 = vcombine.low %v974_v12, %v978_v30  ;;  %v8880_v49 = vcombine.low %v975_v4, %v979_v31 }
 0x362   : > { %7432 = vmatpush1.bf16.msra.mxu0 %v9834_v14  ;;  %v963_v14 = vld [vmem:[%s10614_s15 + $0xf8] sm:$0xff] }
 0x363   : > { %7760 = vmatpush1.bf16.msra.mxu1 %v9836_v43  ;;  %7433 = vmatprep.subr.bf16.mxu0 %v9843_v15  ;;  %v8854_v43 = vcombine.low %v950_v28, %v954_v56  ;;  %v8856_v15 = vcombine.low %v951_v58, %v955_v59  ;;  %v990_v28 = vld [vmem:[%s10614_s15 + $0x1d0] sm:$0xff]  ;;  %v995_v58 = vld [vmem:[%s10614_s15 + $0x1f8] sm:$0xff] }
 0x364   : > { %7761 = vmatprep.subr.bf16.mxu1 %v9845_v18  ;;  %v8863_v18 = vcombine.high %v958_v8, %v962_v11  ;;  %v994_v56 = vld [vmem:[%s10614_s15 + $0x1f0] sm:$0xff] }
 0x366   : > { %7434 = vmatpush1.bf16.msra.mxu0 %v9842_v23  ;;  %v8862_v23 = vcombine.low %v958_v8, %v962_v11  ;;  %v1002_v8 = vld [vmem:[%s10614_s15 + $0x230] sm:$0xff]  ;;  %v999_v11 = vld [vmem:[%s10614_s15 + $0x218] sm:$0xff] }
 0x367   : > { %7762 = vmatpush1.bf16.msra.mxu1 %v9844_v24  ;;  %7435 = vmatprep.subr.bf16.mxu0 %v9851_v26  ;;  %v8864_v24 = vcombine.low %v959_v13, %v963_v14  ;;  %v8871_v26 = vcombine.high %v966_v0, %v970_v5 }
 0x368   : > { %7763 = vmatprep.subr.bf16.mxu1 %v9853_v22  ;;  %v8873_v22 = vcombine.high %v967_v20, %v971_v39  ;;  %v1011_v20 = vld [vmem:[%s10614_s15 + $0x278] sm:$0xff] }
 0x36a   : > { %7436 = vmatpush1.bf16.msra.mxu0 %v9850_v34  ;;  %v8870_v34 = vcombine.low %v966_v0, %v970_v5  ;;  %v1010_v0 = vld [vmem:[%s10614_s15 + $0x270] sm:$0xff]  ;;  %v1007_v5 = vld [vmem:[%s10614_s15 + $0x258] sm:$0xff] }
 0x36b   : > { %7764 = vmatpush1.bf16.msra.mxu1 %v9852_v36  ;;  %7774 = vmatprep.subr.bf16.mxu0 %v8839_v32  ;;  %v8879_v36 = vcombine.high %v974_v12, %v978_v30  ;;  %v8881_v32 = vcombine.high %v975_v4, %v979_v31  ;;  %v1018_v12 = vld [vmem:[%s10614_s15 + $0x2b0] sm:$0xff]  ;;  %v1015_v30 = vld [vmem:[%s10614_s15 + $0x298] sm:$0xff] }
 0x36c   : > { %8102 = vmatprep.subr.bf16.mxu1 %v8841_v37  ;;  %v982_v37 = vld [vmem:[%s10614_s15 + $0x190] sm:$0xff]  ;;  %v1019_v4 = vld [vmem:[%s10614_s15 + $0x2b8] sm:$0xff] }
 0x36d   : > { %7438 = vmatmul.mubr.bf16.vlgmr.msra.gmra.mrb[8].mxu0 %v11352_v50  ;;  %v8886_v59 = vcombine.low %v982_v37, %v986_v19 }
 0x36e   : > { %7766 = vmatmul.mubr.bf16.vlgmr.msra.gmra.mrb[24].mxu1 %v11352_v50  ;;  %7775 = vmatpush1.bf16.msra.mxu0 %v8838_v41  ;;  %v987_v41 = vld [vmem:[%s10614_s15 + $0x1b8] sm:$0xff] }
 0x36f   : > { %7806 = vmatprep.mubr.bf16.mxu0 %v10759_v63  ;;  %8103 = vmatpush1.bf16.msra.mxu1 %v8840_v16  ;;  %v8887_v16 = vcombine.high %v982_v37, %v986_v19  ;;  %v1026_v37 = vld [vmem:[%s10614_s15 + $0x2f0] sm:$0xff]  ;;  %v1023_v19 = vld [vmem:[%s10614_s15 + $0x2d8] sm:$0xff] }
 0x370   : > { %8134 = vmatprep.mubr.bf16.mxu1 %v10759_v63  ;;  %7776 = vmatprep.subr.bf16.mxu0 %v8847_v52  ;;  %v8865_v63 = vcombine.high %v959_v13, %v963_v14  ;;  %v8889_v52 = vcombine.high %v983_v9, %v987_v41  ;;  %v1003_v13 = vld [vmem:[%s10614_s15 + $0x238] sm:$0xff]  ;;  %v8894_v14 = vcombine.low %v990_v28, %v994_v56 }
 0x371   : > { %8104 = vmatprep.subr.bf16.mxu1 %v8849_v33  ;;  %v991_v33 = vld [vmem:[%s10614_s15 + $0x1d8] sm:$0xff] }
 0x372   : > { %7777 = vmatpush1.bf16.msra.mxu0 %v8846_v61  ;;  %v8888_v61 = vcombine.low %v983_v9, %v987_v41  ;;  %v1027_v9 = vld [vmem:[%s10614_s15 + $0x2f8] sm:$0xff] }
 0x373   : > { %8105 = vmatpush1.bf16.msra.mxu1 %v8848_v62  ;;  %7778 = vmatprep.subr.bf16.mxu0 %v8855_v1  ;;  %v8895_v62 = vcombine.high %v990_v28, %v994_v56  ;;  %v8897_v1 = vcombine.high %v991_v33, %v995_v58  ;;  %v1034_v28 = vld [vmem:[%s10614_s15 + $0x330] sm:$0xff]  ;;  %v1031_v56 = vld [vmem:[%s10614_s15 + $0x318] sm:$0xff] }
 0x374   : > { %8106 = vmatprep.subr.bf16.mxu1 %v8857_v46  ;;  %v998_v46 = vld [vmem:[%s10614_s15 + $0x210] sm:$0xff] }
 0x375   : > { %v8902_v39 = vcombine.low %v998_v46, %v1002_v8 }
 0x376   : > { %7779 = vmatpush1.bf16.msra.mxu0 %v8854_v43  ;;  %v8896_v43 = vcombine.low %v991_v33, %v995_v58  ;;  %v1035_v33 = vld [vmem:[%s10614_s15 + $0x338] sm:$0xff] }
 0x377   : > { %8107 = vmatpush1.bf16.msra.mxu1 %v8856_v15  ;;  %7780 = vmatprep.subr.bf16.mxu0 %v8863_v18  ;;  %v8903_v15 = vcombine.high %v998_v46, %v1002_v8  ;;  %v8905_v18 = vcombine.high %v999_v11, %v1003_v13  ;;  %v1042_v46 = vld [vmem:[%s10614_s15 + $0x370] sm:$0xff]  ;;  %v1039_v8 = vld [vmem:[%s10614_s15 + $0x358] sm:$0xff] }
 0x378   : > { %8108 = vmatprep.subr.bf16.mxu1 %v8865_v63  ;;  %v1006_v63 = vld [vmem:[%s10614_s15 + $0x250] sm:$0xff] }
 0x379   : > { %v8910_v31 = vcombine.low %v1006_v63, %v1010_v0 }
 0x37a   : > { %7781 = vmatpush1.bf16.msra.mxu0 %v8862_v23  ;;  %v8904_v23 = vcombine.low %v999_v11, %v1003_v13  ;;  %v1043_v11 = vld [vmem:[%s10614_s15 + $0x378] sm:$0xff] }
 0x37b   : > { %8109 = vmatpush1.bf16.msra.mxu1 %v8864_v24  ;;  %7782 = vmatprep.subr.bf16.mxu0 %v8871_v26  ;;  %v8911_v24 = vcombine.high %v1006_v63, %v1010_v0  ;;  %v8913_v26 = vcombine.high %v1007_v5, %v1011_v20  ;;  %v1050_v63 = vld [vmem:[%s10614_s15 + $0x3b0] sm:$0xff]  ;;  %v1047_v0 = vld [vmem:[%s10614_s15 + $0x398] sm:$0xff] }
 0x37c   : > { %8110 = vmatprep.subr.bf16.mxu1 %v8873_v22  ;;  %v1014_v22 = vld [vmem:[%s10614_s15 + $0x290] sm:$0xff] }
 0x37d   : > { %v8918_v41 = vcombine.low %v1014_v22, %v1018_v12 }
 0x37e   : > { %7783 = vmatpush1.bf16.msra.mxu0 %v8870_v34  ;;  %v8912_v34 = vcombine.low %v1007_v5, %v1011_v20  ;;  %v1051_v5 = vld [vmem:[%s10614_s15 + $0x3b8] sm:$0xff] }
 0x37f   : > { %8111 = vmatpush1.bf16.msra.mxu1 %v8872_v6  ;;  %7784 = vmatprep.subr.bf16.mxu0 %v8879_v36  ;;  %v8919_v6 = vcombine.high %v1014_v22, %v1018_v12  ;;  %v8921_v36 = vcombine.high %v1015_v30, %v1019_v4  ;;  %v1058_v22 = vld [vmem:[%s10614_s15 + $0x3f0] sm:$0xff]  ;;  %v1055_v12 = vld [vmem:[%s10614_s15 + $0x3d8] sm:$0xff] }
 0x380   : > { %8112 = vmatprep.subr.bf16.mxu1 %v8881_v32  ;;  %v1022_v32 = vld [vmem:[%s10614_s15 + $0x2d0] sm:$0xff] }
 0x381   : > { %v8926_v58 = vcombine.low %v1022_v32, %v1026_v37 }
 0x382   : > { %7785 = vmatpush1.bf16.msra.mxu0 %v8878_v48  ;;  %v8920_v48 = vcombine.low %v1015_v30, %v1019_v4  ;;  %v1059_v30 = vld [vmem:[%s10614_s15 + $0x3f8] sm:$0xff] }
 0x383   : > { %8113 = vmatpush1.bf16.msra.mxu1 %v8880_v49  ;;  %7786 = vmatprep.subr.bf16.mxu0 %v8887_v16  ;;  %v8927_v49 = vcombine.high %v1022_v32, %v1026_v37  ;;  %v8929_v16 = vcombine.high %v1023_v19, %v1027_v9  ;;  %v1066_v32 = vld [vmem:[%s10614_s15 + $0x430] sm:$0xff]  ;;  %v1063_v37 = vld [vmem:[%s10614_s15 + $0x418] sm:$0xff] }
 0x384   : > { %8114 = vmatprep.subr.bf16.mxu1 %v8889_v52  ;;  %v1030_v52 = vld [vmem:[%s10614_s15 + $0x310] sm:$0xff] }
 0x385   : > { %v8934_v13 = vcombine.low %v1030_v52, %v1034_v28 }
 0x386   : > { %7787 = vmatpush1.bf16.msra.mxu0 %v8886_v59  ;;  %v8928_v59 = vcombine.low %v1023_v19, %v1027_v9  ;;  %v1067_v19 = vld [vmem:[%s10614_s15 + $0x438] sm:$0xff] }
 0x387   : > { %8115 = vmatpush1.bf16.msra.mxu1 %v8888_v61  ;;  %7788 = vmatprep.subr.bf16.mxu0 %v8895_v62  ;;  %v8935_v61 = vcombine.high %v1030_v52, %v1034_v28  ;;  %v8937_v62 = vcombine.high %v1031_v56, %v1035_v33  ;;  %v1074_v52 = vld [vmem:[%s10614_s15 + $0x470] sm:$0xff] }
 0x388   : > { %8116 = vmatprep.subr.bf16.mxu1 %v8897_v1  ;;  %v1038_v1 = vld [vmem:[%s10614_s15 + $0x350] sm:$0xff] }
 0x389   : > { %v8942_v20 = vcombine.low %v1038_v1, %v1042_v46 }
 0x38a   : > { %7789 = vmatpush1.bf16.msra.mxu0 %v8894_v14  ;;  %v8936_v14 = vcombine.low %v1031_v56, %v1035_v33  ;;  %v1071_v56 = vld [vmem:[%s10614_s15 + $0x458] sm:$0xff] }
 0x38b   : > { %8117 = vmatpush1.bf16.msra.mxu1 %v8896_v43  ;;  %7790 = vmatprep.subr.bf16.mxu0 %v8903_v15  ;;  %v8943_v43 = vcombine.high %v1038_v1, %v1042_v46  ;;  %v8945_v15 = vcombine.high %v1039_v8, %v1043_v11  ;;  %v1075_v33 = vld [vmem:[%s10614_s15 + $0x478] sm:$0xff] }
 0x38c   : > { %8118 = vmatprep.subr.bf16.mxu1 %v8905_v18  ;;  %v1046_v18 = vld [vmem:[%s10614_s15 + $0x390] sm:$0xff]  ;;  %v8977_v1 = vcombine.high %v1071_v56, %v1075_v33  ;;  %v1079_v46 = vld [vmem:[%s10614_s15 + $0x498] sm:$0xff] }
 0x38d   : > { %v8950_v4 = vcombine.low %v1046_v18, %v1050_v63 }
 0x38e   : > { %7791 = vmatpush1.bf16.msra.mxu0 %v8902_v39  ;;  %v8944_v39 = vcombine.low %v1039_v8, %v1043_v11  ;;  %v1083_v8 = vld [vmem:[%s10614_s15 + $0x4b8] sm:$0xff] }
 0x38f   : > { %8119 = vmatpush1.bf16.msra.mxu1 %v8904_v23  ;;  %7792 = vmatprep.subr.bf16.mxu0 %v8911_v24  ;;  %v8951_v23 = vcombine.high %v1046_v18, %v1050_v63  ;;  %v8953_v24 = vcombine.high %v1047_v0, %v1051_v5  ;;  %v1090_v18 = vld [vmem:[%s10614_s15 + $0x4f0] sm:$0xff]  ;;  %v1087_v63 = vld [vmem:[%s10614_s15 + $0x4d8] sm:$0xff] }
 0x390   : > { %8120 = vmatprep.subr.bf16.mxu1 %v8913_v26  ;;  %v1054_v26 = vld [vmem:[%s10614_s15 + $0x3d0] sm:$0xff] }
 0x391   : > { %v8958_v9 = vcombine.low %v1054_v26, %v1058_v22 }
 0x392   : > { %7793 = vmatpush1.bf16.msra.mxu0 %v8910_v31  ;;  %v8952_v31 = vcombine.low %v1047_v0, %v1051_v5  ;;  %v8984_v5 = vcombine.low %v1079_v46, %v1083_v8 }
 0x393   : > { %8121 = vmatpush1.bf16.msra.mxu1 %v8912_v34  ;;  %7794 = vmatprep.subr.bf16.mxu0 %v8919_v6  ;;  %v8959_v34 = vcombine.high %v1054_v26, %v1058_v22  ;;  %v8961_v6 = vcombine.high %v1055_v12, %v1059_v30  ;;  %v1099_v26 = vld [vmem:[%s10614_s15 + $0x538] sm:$0xff] }
 0x394   : > { %8122 = vmatprep.subr.bf16.mxu1 %v8921_v36  ;;  %v1062_v36 = vld [vmem:[%s10614_s15 + $0x410] sm:$0xff] }
 0x395   : > { %v8966_v28 = vcombine.low %v1062_v36, %v1066_v32 }
 0x396   : > { %7795 = vmatpush1.bf16.msra.mxu0 %v8918_v41  ;;  %v8960_v41 = vcombine.low %v1055_v12, %v1059_v30 }
 0x397   : > { %8123 = vmatpush1.bf16.msra.mxu1 %v8920_v48  ;;  %7796 = vmatprep.subr.bf16.mxu0 %v8927_v49  ;;  %v8967_v48 = vcombine.high %v1062_v36, %v1066_v32  ;;  %v8969_v49 = vcombine.high %v1063_v37, %v1067_v19  ;;  %v1107_v36 = vld [vmem:[%s10614_s15 + $0x578] sm:$0xff] }
 0x398   : > { %8124 = vmatprep.subr.bf16.mxu1 %v8929_v16  ;;  %v1070_v16 = vld [vmem:[%s10614_s15 + $0x450] sm:$0xff] }
 0x399   : > { %v8974_v11 = vcombine.low %v1070_v16, %v1074_v52 }
 0x39a   : > { %7797 = vmatpush1.bf16.msra.mxu0 %v8926_v58  ;;  %v8968_v58 = vcombine.low %v1063_v37, %v1067_v19 }
 0x39b   : > { %8125 = vmatpush1.bf16.msra.mxu1 %v8928_v59  ;;  %7798 = vmatprep.subr.bf16.mxu0 %v8935_v61  ;;  %v8975_v59 = vcombine.high %v1070_v16, %v1074_v52  ;;  %v1078_v61 = vld [vmem:[%s10614_s15 + $0x490] sm:$0xff]  ;;  %v1115_v16 = vld [vmem:[%s10614_s15 + $0x5b8] sm:$0xff] }
 0x39c   : > { %8126 = vmatprep.subr.bf16.mxu1 %v8937_v62  ;;  %v1082_v62 = vld [vmem:[%s10614_s15 + $0x4b0] sm:$0xff] }
 0x39d   : > { %v8982_v0 = vcombine.low %v1078_v61, %v1082_v62 }
 0x39e   : > { %7799 = vmatpush1.bf16.msra.mxu0 %v8934_v13  ;;  %v8976_v13 = vcombine.low %v1071_v56, %v1075_v33 }
 0x39f   : > { %8127 = vmatpush1.bf16.msra.mxu1 %v8936_v14  ;;  %7800 = vmatprep.subr.bf16.mxu0 %v8943_v43  ;;  %v8983_v14 = vcombine.high %v1078_v61, %v1082_v62  ;;  %v8985_v43 = vcombine.high %v1079_v46, %v1083_v8  ;;  %v1119_v61 = vld [vmem:[%s10614_s15 + $0x5d8] sm:$0xff] }
 0x3a0   : > { %8128 = vmatprep.subr.bf16.mxu1 %v8945_v15  ;;  %v1086_v15 = vld [vmem:[%s10614_s15 + $0x4d0] sm:$0xff]  ;;  %v1123_v62 = vld [vmem:[%s10614_s15 + $0x5f8] sm:$0xff] }
 0x3a1   : > { %v8990_v22 = vcombine.low %v1086_v15, %v1090_v18 }
 0x3a2   : > { %7801 = vmatpush1.bf16.msra.mxu0 %v8942_v20  ;;  %v8991_v20 = vcombine.high %v1086_v15, %v1090_v18  ;;  %v1131_v15 = vld [vmem:[%s10614_s15 + $0x638] sm:$0xff] }
 0x3a3   : > { %8129 = vmatpush1.bf16.msra.mxu1 %v8944_v39  ;;  %7802 = vmatprep.subr.bf16.mxu0 %v8951_v23  ;;  %v1094_v39 = vld [vmem:[%s10614_s15 + $0x510] sm:$0xff] }
 0x3a4   : > { %8130 = vmatprep.subr.bf16.mxu1 %v8953_v24  ;;  %v1098_v23 = vld [vmem:[%s10614_s15 + $0x530] sm:$0xff]  ;;  %v1095_v24 = vld [vmem:[%s10614_s15 + $0x518] sm:$0xff] }
 0x3a5   : > { %v8999_v30 = vcombine.high %v1094_v39, %v1098_v23  ;;  %v8998_v32 = vcombine.low %v1094_v39, %v1098_v23  ;;  %v9000_v37 = vcombine.low %v1095_v24, %v1099_v26  ;;  %v1139_v39 = vld [vmem:[%s10614_s15 + $0x678] sm:$0xff] }
 0x3a6   : > { %7803 = vmatpush1.bf16.msra.mxu0 %v8950_v4  ;;  %v9001_v4 = vcombine.high %v1095_v24, %v1099_v26 }
 0x3a7   : > { %8131 = vmatpush1.bf16.msra.mxu1 %v8952_v31  ;;  %7804 = vmatprep.subr.bf16.mxu0 %v8959_v34  ;;  %v1102_v31 = vld [vmem:[%s10614_s15 + $0x550] sm:$0xff] }
 0x3a8   : > { %8132 = vmatprep.subr.bf16.mxu1 %v8961_v6  ;;  %v1106_v34 = vld [vmem:[%s10614_s15 + $0x570] sm:$0xff]  ;;  %v1103_v6 = vld [vmem:[%s10614_s15 + $0x558] sm:$0xff] }
 0x3a9   : > { %v9007_v19 = vcombine.high %v1102_v31, %v1106_v34  ;;  %v9006_v52 = vcombine.low %v1102_v31, %v1106_v34  ;;  %v1147_v31 = vld [vmem:[%s10614_s15 + $0x6b8] sm:$0xff] }
 0x3aa   : > { %7805 = vmatpush1.bf16.msra.mxu0 %v8958_v9  ;;  %v9009_v9 = vcombine.high %v1103_v6, %v1107_v36 }
 0x3ab   : > { %8133 = vmatpush1.bf16.msra.mxu1 %v8960_v41  ;;  %7815 = vmatprep.subr.bf16.mxu0 %v8967_v48  ;;  %v1110_v41 = vld [vmem:[%s10614_s15 + $0x590] sm:$0xff] }
 0x3ac   : > { %8143 = vmatprep.subr.bf16.mxu1 %v8969_v49  ;;  %v1114_v48 = vld [vmem:[%s10614_s15 + $0x5b0] sm:$0xff]  ;;  %v1111_v49 = vld [vmem:[%s10614_s15 + $0x598] sm:$0xff] }
 0x3ad   : > { %7807 = vmatmul.mubr.bf16.vlgmr.msra.gmra.mrb[12].mxu0 %v10763_v2  ;;  %v9015_v56 = vcombine.high %v1110_v41, %v1114_v48  ;;  %v9017_v33 = vcombine.high %v1111_v49, %v1115_v16  ;;  %v9016_v46 = vcombine.low %v1111_v49, %v1115_v16 }
 0x3ae   : > { %8135 = vmatmul.mubr.bf16.vlgmr.msra.gmra.mrb[28].mxu1 %v10763_v2  ;;  %7816 = vmatpush1.bf16.msra.mxu0 %v8966_v28  ;;  %v1091_v2 = vld [vmem:[%s10614_s15 + $0x4f8] sm:$0xff]  ;;  %v9008_v28 = vcombine.low %v1103_v6, %v1107_v36 }
 0x3af   : > { %7847 = vmatprep.mubr.bf16.mxu0 %v10779_v25  ;;  %8144 = vmatpush1.bf16.msra.mxu1 %v8968_v58  ;;  %v8992_v12 = vcombine.low %v1087_v63, %v1091_v2  ;;  %v1118_v58 = vld [vmem:[%s10614_s15 + $0x5d0] sm:$0xff] }
 0x3b0   : > { %8175 = vmatprep.mubr.bf16.mxu1 %v10779_v25  ;;  %7817 = vmatprep.subr.bf16.mxu0 %v8975_v59  ;;  %v8993_v25 = vcombine.high %v1087_v63, %v1091_v2  ;;  %v1122_v59 = vld [vmem:[%s10614_s15 + $0x5f0] sm:$0xff]  ;;  %v9024_v63 = vcombine.low %v1119_v61, %v1123_v62 }
 0x3b1   : > { %8145 = vmatprep.subr.bf16.mxu1 %v8977_v1  ;;  %v9014_v1 = vcombine.low %v1110_v41, %v1114_v48  ;;  %v9023_v8 = vcombine.high %v1118_v58, %v1122_v59  ;;  %v9022_v18 = vcombine.low %v1118_v58, %v1122_v59  ;;  %v1155_v41 = vld [vmem:[%s10614_s15 + $0x6f8] sm:$0xff] }
 0x3b2   : > { %7818 = vmatpush1.bf16.msra.mxu0 %v8974_v11  ;;  %v9025_v11 = vcombine.high %v1119_v61, %v1123_v62  ;;  %v1163_v58 = vld [vmem:[%s10614_s15 + $0x738] sm:$0xff] }
 0x3b3   : > { %8146 = vmatpush1.bf16.msra.mxu1 %v8976_v13  ;;  %7819 = vmatprep.subr.bf16.mxu0 %v8983_v14  ;;  %v1126_v13 = vld [vmem:[%s10614_s15 + $0x610] sm:$0xff] }
 0x3b4   : > { %8147 = vmatprep.subr.bf16.mxu1 %v8985_v43  ;;  %v1130_v14 = vld [vmem:[%s10614_s15 + $0x630] sm:$0xff]  ;;  %v1127_v43 = vld [vmem:[%s10614_s15 + $0x618] sm:$0xff] }
 0x3b5   : > { %v9031_v2 = vcombine.high %v1126_v13, %v1130_v14  ;;  %v9030_v23 = vcombine.low %v1126_v13, %v1130_v14  ;;  %v9032_v24 = vcombine.low %v1127_v43, %v1131_v15  ;;  %v1171_v13 = vld [vmem:[%s10614_s15 + $0x778] sm:$0xff] }
 0x3b6   : > { %7820 = vmatpush1.bf16.msra.mxu0 %v8982_v0  ;;  %v9033_v0 = vcombine.high %v1127_v43, %v1131_v15 }
 0x3b7   : > { %8148 = vmatpush1.bf16.msra.mxu1 %v8984_v5  ;;  %7821 = vmatprep.subr.bf16.mxu0 %v8991_v20  ;;  %v1134_v5 = vld [vmem:[%s10614_s15 + $0x650] sm:$0xff] }
 0x3b8   : > { %8149 = vmatprep.subr.bf16.mxu1 %v8993_v25  ;;  %v1138_v20 = vld [vmem:[%s10614_s15 + $0x670] sm:$0xff]  ;;  %v1135_v25 = vld [vmem:[%s10614_s15 + $0x658] sm:$0xff] }
 0x3b9   : > { %v9039_v26 = vcombine.high %v1134_v5, %v1138_v20  ;;  %v9038_v34 = vcombine.low %v1134_v5, %v1138_v20  ;;  %v9040_v6 = vcombine.low %v1135_v25, %v1139_v39  ;;  %v1179_v5 = vld [vmem:[%s10614_s15 + $0x7b8] sm:$0xff] }
 0x3ba   : > { %7822 = vmatpush1.bf16.msra.mxu0 %v8990_v22  ;;  %v9041_v22 = vcombine.high %v1135_v25, %v1139_v39 }
 0x3bb   : > { %8150 = vmatpush1.bf16.msra.mxu1 %v8992_v12  ;;  %7823 = vmatprep.subr.bf16.mxu0 %v8999_v30  ;;  %v1142_v12 = vld [vmem:[%s10614_s15 + $0x690] sm:$0xff] }
 0x3bc   : > { %8151 = vmatprep.subr.bf16.mxu1 %v9001_v4  ;;  %v1146_v30 = vld [vmem:[%s10614_s15 + $0x6b0] sm:$0xff]  ;;  %v1143_v4 = vld [vmem:[%s10614_s15 + $0x698] sm:$0xff] }
 0x3bd   : > { %v9047_v36 = vcombine.high %v1142_v12, %v1146_v30  ;;  %v9046_v48 = vcombine.low %v1142_v12, %v1146_v30  ;;  %v9048_v49 = vcombine.low %v1143_v4, %v1147_v31  ;;  %v1187_v12 = vld [vmem:[%s10614_s15 + $0x7f8] sm:$0xff] }
 0x3be   : > { %7824 = vmatpush1.bf16.msra.mxu0 %v8998_v32  ;;  %v9049_v32 = vcombine.high %v1143_v4, %v1147_v31 }
 0x3bf   : > { %8152 = vmatpush1.bf16.msra.mxu1 %v9000_v37  ;;  %7825 = vmatprep.subr.bf16.mxu0 %v9007_v19  ;;  %v1150_v37 = vld [vmem:[%s10614_s15 + $0x6d0] sm:$0xff] }
 0x3c0   : > { %8153 = vmatprep.subr.bf16.mxu1 %v9009_v9  ;;  %v1154_v19 = vld [vmem:[%s10614_s15 + $0x6f0] sm:$0xff]  ;;  %v1151_v9 = vld [vmem:[%s10614_s15 + $0x6d8] sm:$0xff] }
 0x3c1   : > { %v9055_v16 = vcombine.high %v1150_v37, %v1154_v19  ;;  %v9054_v59 = vcombine.low %v1150_v37, %v1154_v19  ;;  %v9056_v61 = vcombine.low %v1151_v9, %v1155_v41  ;;  %v1195_v37 = vld [vmem:[%s10614_s15 + $0x838] sm:$0xff] }
 0x3c2   : > { %7826 = vmatpush1.bf16.msra.mxu0 %v9006_v52  ;;  %v9057_v52 = vcombine.high %v1151_v9, %v1155_v41 }
 0x3c3   : > { %8154 = vmatpush1.bf16.msra.mxu1 %v9008_v28  ;;  %7827 = vmatprep.subr.bf16.mxu0 %v9015_v56  ;;  %v1158_v28 = vld [vmem:[%s10614_s15 + $0x710] sm:$0xff] }
 0x3c4   : > { %8155 = vmatprep.subr.bf16.mxu1 %v9017_v33  ;;  %v1162_v56 = vld [vmem:[%s10614_s15 + $0x730] sm:$0xff]  ;;  %v1159_v33 = vld [vmem:[%s10614_s15 + $0x718] sm:$0xff] }
 0x3c5   : > { %v9063_v62 = vcombine.high %v1158_v28, %v1162_v56  ;;  %v9062_v14 = vcombine.low %v1158_v28, %v1162_v56  ;;  %v9064_v43 = vcombine.low %v1159_v33, %v1163_v58  ;;  %v1199_v28 = vld [vmem:[%s10614_s15 + $0x858] sm:$0xff] }
 0x3c6   : > { %7828 = vmatpush1.bf16.msra.mxu0 %v9014_v1  ;;  %v9065_v1 = vcombine.high %v1159_v33, %v1163_v58  ;;  %v1203_v56 = vld [vmem:[%s10614_s15 + $0x878] sm:$0xff] }
 0x3c7   : > { %8156 = vmatpush1.bf16.msra.mxu1 %v9016_v46  ;;  %7829 = vmatprep.subr.bf16.mxu0 %v9023_v8  ;;  %v1166_v46 = vld [vmem:[%s10614_s15 + $0x750] sm:$0xff] }
 0x3c8   : > { %8157 = vmatprep.subr.bf16.mxu1 %v9025_v11  ;;  %v1170_v8 = vld [vmem:[%s10614_s15 + $0x770] sm:$0xff]  ;;  %v1167_v11 = vld [vmem:[%s10614_s15 + $0x758] sm:$0xff] }
 0x3c9   : > { %v9071_v15 = vcombine.high %v1166_v46, %v1170_v8  ;;  %v9070_v20 = vcombine.low %v1166_v46, %v1170_v8  ;;  %v9072_v25 = vcombine.low %v1167_v11, %v1171_v13  ;;  %v1211_v46 = vld [vmem:[%s10614_s15 + $0x8b8] sm:$0xff] }
 0x3ca   : > { %7830 = vmatpush1.bf16.msra.mxu0 %v9022_v18  ;;  %v9073_v18 = vcombine.high %v1167_v11, %v1171_v13  ;;  %v9104_v11 = vcombine.low %v1199_v28, %v1203_v56 }
 0x3cb   : > { %8158 = vmatpush1.bf16.msra.mxu1 %v9024_v63  ;;  %7831 = vmatprep.subr.bf16.mxu0 %v9031_v2  ;;  %v1174_v63 = vld [vmem:[%s10614_s15 + $0x790] sm:$0xff] }
 0x3cc   : > { %8159 = vmatprep.subr.bf16.mxu1 %v9033_v0  ;;  %v1178_v2 = vld [vmem:[%s10614_s15 + $0x7b0] sm:$0xff]  ;;  %v1175_v0 = vld [vmem:[%s10614_s15 + $0x798] sm:$0xff] }
 0x3cd   : > { %v9079_v39 = vcombine.high %v1174_v63, %v1178_v2  ;;  %v9078_v30 = vcombine.low %v1174_v63, %v1178_v2  ;;  %v9080_v4 = vcombine.low %v1175_v0, %v1179_v5 }
 0x3ce   : > { %7832 = vmatpush1.bf16.msra.mxu0 %v9030_v23  ;;  %v9081_v23 = vcombine.high %v1175_v0, %v1179_v5  ;;  %v1222_v5 = vld [vmem:[%s10614_s15 + $0x910] sm:$0xff] }
 0x3cf   : > { %8160 = vmatpush1.bf16.msra.mxu1 %v9032_v24  ;;  %7833 = vmatprep.subr.bf16.mxu0 %v9039_v26  ;;  %v1182_v24 = vld [vmem:[%s10614_s15 + $0x7d0] sm:$0xff] }
 0x3d0   : > { %8161 = vmatprep.subr.bf16.mxu1 %v9041_v22  ;;  %v1186_v26 = vld [vmem:[%s10614_s15 + $0x7f0] sm:$0xff]  ;;  %v1183_v22 = vld [vmem:[%s10614_s15 + $0x7d8] sm:$0xff] }
 0x3d1   : > { %v9087_v31 = vcombine.high %v1182_v24, %v1186_v26  ;;  %v9086_v19 = vcombine.low %v1182_v24, %v1186_v26  ;;  %v9088_v9 = vcombine.low %v1183_v22, %v1187_v12 }
 0x3d2   : > { %7834 = vmatpush1.bf16.msra.mxu0 %v9038_v34  ;;  %v9089_v34 = vcombine.high %v1183_v22, %v1187_v12  ;;  %v1230_v12 = vld [vmem:[%s10614_s15 + $0x950] sm:$0xff] }
 0x3d3   : > { %8162 = vmatpush1.bf16.msra.mxu1 %v9040_v6  ;;  %7835 = vmatprep.subr.bf16.mxu0 %v9047_v36  ;;  %v1190_v6 = vld [vmem:[%s10614_s15 + $0x810] sm:$0xff] }
 0x3d4   : > { %8163 = vmatprep.subr.bf16.mxu1 %v9049_v32  ;;  %v1194_v36 = vld [vmem:[%s10614_s15 + $0x830] sm:$0xff]  ;;  %v1191_v32 = vld [vmem:[%s10614_s15 + $0x818] sm:$0xff] }
 0x3d5   : > { %v9095_v41 = vcombine.high %v1190_v6, %v1194_v36  ;;  %v9096_v33 = vcombine.low %v1191_v32, %v1195_v37 }
 0x3d6   : > { %7836 = vmatpush1.bf16.msra.mxu0 %v9046_v48  ;;  %v9097_v48 = vcombine.high %v1191_v32, %v1195_v37  ;;  %v1238_v37 = vld [vmem:[%s10614_s15 + $0x990] sm:$0xff] }
 0x3d7   : > { %8164 = vmatpush1.bf16.msra.mxu1 %v9048_v49  ;;  %7837 = vmatprep.subr.bf16.mxu0 %v9055_v16  ;;  %v1198_v49 = vld [vmem:[%s10614_s15 + $0x850] sm:$0xff] }
 0x3d8   : > { %8165 = vmatprep.subr.bf16.mxu1 %v9057_v52  ;;  %v1202_v16 = vld [vmem:[%s10614_s15 + $0x870] sm:$0xff]  ;;  %v9094_v52 = vcombine.low %v1190_v6, %v1194_v36 }
 0x3d9   : > { %v9103_v58 = vcombine.high %v1198_v49, %v1202_v16  ;;  %v9102_v8 = vcombine.low %v1198_v49, %v1202_v16 }
 0x3da   : > { %7838 = vmatpush1.bf16.msra.mxu0 %v9054_v59  ;;  %v1206_v59 = vld [vmem:[%s10614_s15 + $0x890] sm:$0xff] }
 0x3db   : > { %8166 = vmatpush1.bf16.msra.mxu1 %v9056_v61  ;;  %7839 = vmatprep.subr.bf16.mxu0 %v9063_v62  ;;  %v1210_v61 = vld [vmem:[%s10614_s15 + $0x8b0] sm:$0xff]  ;;  %v9105_v62 = vcombine.high %v1199_v28, %v1203_v56 }
 0x3dc   : > { %8167 = vmatprep.subr.bf16.mxu1 %v9065_v1  ;;  %v1207_v1 = vld [vmem:[%s10614_s15 + $0x898] sm:$0xff]  ;;  %v9111_v13 = vcombine.high %v1206_v59, %v1210_v61  ;;  %v9110_v63 = vcombine.low %v1206_v59, %v1210_v61  ;;  %v1246_v28 = vld [vmem:[%s10614_s15 + $0x9d0] sm:$0xff] }
 0x3dd   : > { %v9112_v2 = vcombine.low %v1207_v1, %v1211_v46  ;;  %v1250_v56 = vld [vmem:[%s10614_s15 + $0x9f0] sm:$0xff] }
 0x3de   : > { %7840 = vmatpush1.bf16.msra.mxu0 %v9062_v14  ;;  %v9113_v14 = vcombine.high %v1207_v1, %v1211_v46  ;;  %v1254_v46 = vld [vmem:[%s10614_s15 + $0xa10] sm:$0xff] }
 0x3df   : > { %8168 = vmatpush1.bf16.msra.mxu1 %v9064_v43  ;;  %7841 = vmatprep.subr.bf16.mxu0 %v9071_v15  ;;  %v1214_v43 = vld [vmem:[%s10614_s15 + $0x8d0] sm:$0xff] }
 0x3e0   : > { %8169 = vmatprep.subr.bf16.mxu1 %v9073_v18  ;;  %v1218_v15 = vld [vmem:[%s10614_s15 + $0x8f0] sm:$0xff]  ;;  %v1215_v18 = vld [vmem:[%s10614_s15 + $0x8d8] sm:$0xff] }
 0x3e1   : > { %v9119_v0 = vcombine.high %v1214_v43, %v1218_v15 }
 0x3e2   : > { %7842 = vmatpush1.bf16.msra.mxu0 %v9070_v20  ;;  %v1226_v20 = vld [vmem:[%s10614_s15 + $0x930] sm:$0xff] }
 0x3e3   : > { %8170 = vmatpush1.bf16.msra.mxu1 %v9072_v25  ;;  %7843 = vmatprep.subr.bf16.mxu0 %v9079_v39  ;;  %v1223_v25 = vld [vmem:[%s10614_s15 + $0x918] sm:$0xff]  ;;  %v9127_v26 = vcombine.high %v1222_v5, %v1226_v20 }
 0x3e4   : > { %8171 = vmatprep.subr.bf16.mxu1 %v9081_v23  ;;  %v1227_v39 = vld [vmem:[%s10614_s15 + $0x938] sm:$0xff]  ;;  %v9118_v23 = vcombine.low %v1214_v43, %v1218_v15 }
 0x3e5   : > { %v9129_v22 = vcombine.high %v1223_v25, %v1227_v39  ;;  %v9128_v6 = vcombine.low %v1223_v25, %v1227_v39  ;;  %v1270_v39 = vld [vmem:[%s10614_s15 + $0xa90] sm:$0xff] }
 0x3e6   : > { %7844 = vmatpush1.bf16.msra.mxu0 %v9078_v30  ;;  %v1234_v30 = vld [vmem:[%s10614_s15 + $0x970] sm:$0xff] }
 0x3e7   : > { %8172 = vmatpush1.bf16.msra.mxu1 %v9080_v4  ;;  %7845 = vmatprep.subr.bf16.mxu0 %v9087_v31  ;;  %v1231_v4 = vld [vmem:[%s10614_s15 + $0x958] sm:$0xff]  ;;  %v9135_v36 = vcombine.high %v1230_v12, %v1234_v30 }
 0x3e8   : > { %8173 = vmatprep.subr.bf16.mxu1 %v9089_v34  ;;  %v1235_v31 = vld [vmem:[%s10614_s15 + $0x978] sm:$0xff]  ;;  %v9126_v34 = vcombine.low %v1222_v5, %v1226_v20 }
 0x3e9   : > { %v9137_v32 = vcombine.high %v1231_v4, %v1235_v31  ;;  %v9136_v49 = vcombine.low %v1231_v4, %v1235_v31  ;;  %v1278_v31 = vld [vmem:[%s10614_s15 + $0xad0] sm:$0xff] }
 0x3ea   : > { %7846 = vmatpush1.bf16.msra.mxu0 %v9086_v19  ;;  %v1242_v19 = vld [vmem:[%s10614_s15 + $0x9b0] sm:$0xff] }
 0x3eb   : > { %8174 = vmatpush1.bf16.msra.mxu1 %v9088_v9  ;;  %7856 = vmatprep.subr.bf16.mxu0 %v9095_v41  ;;  %v1239_v9 = vld [vmem:[%s10614_s15 + $0x998] sm:$0xff]  ;;  %v9143_v16 = vcombine.high %v1238_v37, %v1242_v19  ;;  %v9142_v59 = vcombine.low %v1238_v37, %v1242_v19 }
 0x3ec   : > { %8184 = vmatprep.subr.bf16.mxu1 %v9097_v48  ;;  %v1243_v41 = vld [vmem:[%s10614_s15 + $0x9b8] sm:$0xff]  ;;  %v9134_v48 = vcombine.low %v1230_v12, %v1234_v30 }
 0x3ed   : > { %7848 = vmatmul.mubr.bf16.vlgmr.msra.gmra.mrb[12].mxu0 %v10898_v57  ;;  %v9144_v61 = vcombine.low %v1239_v9, %v1243_v41 }
 0x3ee   : > { %8176 = vmatmul.mubr.bf16.vlgmr.msra.gmra.mrb[28].mxu1 %v10898_v57  ;;  %7857 = vmatpush1.bf16.msra.mxu0 %v9094_v52  ;;  %v1219_v57 = vld [vmem:[%s10614_s15 + $0x8f8] sm:$0xff]  ;;  %v9145_v52 = vcombine.high %v1239_v9, %v1243_v41  ;;  %v1286_v41 = vld [vmem:[%s10614_s15 + $0xb10] sm:$0xff] }
 0x3ef   : > { %7888 = vmatprep.mubr.bf16.mxu0 %v10904_v10  ;;  %8185 = vmatpush1.bf16.msra.mxu1 %v9096_v33  ;;  %v9120_v24 = vcombine.low %v1215_v18, %v1219_v57  ;;  %v1247_v33 = vld [vmem:[%s10614_s15 + $0x9d8] sm:$0xff] }
 0x3f0   : > { %8216 = vmatprep.mubr.bf16.mxu1 %v10904_v10  ;;  %7858 = vmatprep.subr.bf16.mxu0 %v9103_v58  ;;  %v9121_v10 = vcombine.high %v1215_v18, %v1219_v57  ;;  %v1251_v58 = vld [vmem:[%s10614_s15 + $0x9f8] sm:$0xff]  ;;  %v1262_v57 = vld [vmem:[%s10614_s15 + $0xa50] sm:$0xff] }
 0x3f1   : > { %8186 = vmatprep.subr.bf16.mxu1 %v9105_v62  ;;  %v9151_v62 = vcombine.high %v1246_v28, %v1250_v56  ;;  %v9153_v1 = vcombine.high %v1247_v33, %v1251_v58  ;;  %v9152_v43 = vcombine.low %v1247_v33, %v1251_v58  ;;  %v1294_v58 = vld [vmem:[%s10614_s15 + $0xb50] sm:$0xff] }
 0x3f2   : > { %7859 = vmatpush1.bf16.msra.mxu0 %v9102_v8  ;;  %v1258_v8 = vld [vmem:[%s10614_s15 + $0xa30] sm:$0xff] }
 0x3f3   : > { %8187 = vmatpush1.bf16.msra.mxu1 %v9104_v11  ;;  %7860 = vmatprep.subr.bf16.mxu0 %v9111_v13  ;;  %v1255_v11 = vld [vmem:[%s10614_s15 + $0xa18] sm:$0xff]  ;;  %v9159_v15 = vcombine.high %v1254_v46, %v1258_v8 }
 0x3f4   : > { %8188 = vmatprep.subr.bf16.mxu1 %v9113_v14  ;;  %v1259_v13 = vld [vmem:[%s10614_s15 + $0xa38] sm:$0xff]  ;;  %v9150_v14 = vcombine.low %v1246_v28, %v1250_v56 }
 0x3f5   : > { %v9161_v18 = vcombine.high %v1255_v11, %v1259_v13  ;;  %v9160_v5 = vcombine.low %v1255_v11, %v1259_v13  ;;  %v1302_v13 = vld [vmem:[%s10614_s15 + $0xb90] sm:$0xff] }
 0x3f6   : > { %7861 = vmatpush1.bf16.msra.mxu0 %v9110_v63  ;;  %v1266_v63 = vld [vmem:[%s10614_s15 + $0xa70] sm:$0xff] }
 0x3f7   : > { %8189 = vmatpush1.bf16.msra.mxu1 %v9112_v2  ;;  %7862 = vmatprep.subr.bf16.mxu0 %v9119_v0  ;;  %v1263_v2 = vld [vmem:[%s10614_s15 + $0xa58] sm:$0xff]  ;;  %v9167_v20 = vcombine.high %v1262_v57, %v1266_v63 }
 0x3f8   : > { %8190 = vmatprep.subr.bf16.mxu1 %v9121_v10  ;;  %v1267_v0 = vld [vmem:[%s10614_s15 + $0xa78] sm:$0xff]  ;;  %v9158_v10 = vcombine.low %v1254_v46, %v1258_v8 }
 0x3f9   : > { %v9169_v25 = vcombine.high %v1263_v2, %v1267_v0  ;;  %v9168_v12 = vcombine.low %v1263_v2, %v1267_v0  ;;  %v1310_v0 = vld [vmem:[%s10614_s15 + $0xbd0] sm:$0xff] }
 0x3fa   : > { %7863 = vmatpush1.bf16.msra.mxu0 %v9118_v23  ;;  %v1274_v23 = vld [vmem:[%s10614_s15 + $0xab0] sm:$0xff] }
 0x3fb   : > { %8191 = vmatpush1.bf16.msra.mxu1 %v9120_v24  ;;  %7864 = vmatprep.subr.bf16.mxu0 %v9127_v26  ;;  %v1271_v24 = vld [vmem:[%s10614_s15 + $0xa98] sm:$0xff]  ;;  %v9175_v30 = vcombine.high %v1270_v39, %v1274_v23 }
 0x3fc   : > { %8192 = vmatprep.subr.bf16.mxu1 %v9129_v22  ;;  %v1275_v26 = vld [vmem:[%s10614_s15 + $0xab8] sm:$0xff]  ;;  %v9166_v22 = vcombine.low %v1262_v57, %v1266_v63 }
 0x3fd   : > { %v9177_v4 = vcombine.high %v1271_v24, %v1275_v26  ;;  %v9176_v37 = vcombine.low %v1271_v24, %v1275_v26  ;;  %v1318_v26 = vld [vmem:[%s10614_s15 + $0xc10] sm:$0xff] }
 0x3fe   : > { %7865 = vmatpush1.bf16.msra.mxu0 %v9126_v34  ;;  %v1282_v34 = vld [vmem:[%s10614_s15 + $0xaf0] sm:$0xff] }
 0x3ff   : > { %8193 = vmatpush1.bf16.msra.mxu1 %v9128_v6  ;;  %7866 = vmatprep.subr.bf16.mxu0 %v9135_v36  ;;  %v1279_v6 = vld [vmem:[%s10614_s15 + $0xad8] sm:$0xff]  ;;  %v9183_v19 = vcombine.high %v1278_v31, %v1282_v34 }
 0x400   : > { %8194 = vmatprep.subr.bf16.mxu1 %v9137_v32  ;;  %v1283_v36 = vld [vmem:[%s10614_s15 + $0xaf8] sm:$0xff]  ;;  %v9174_v32 = vcombine.low %v1270_v39, %v1274_v23 }
 0x401   : > { %v9185_v9 = vcombine.high %v1279_v6, %v1283_v36  ;;  %v9184_v28 = vcombine.low %v1279_v6, %v1283_v36  ;;  %v1326_v36 = vld [vmem:[%s10614_s15 + $0xc50] sm:$0xff] }
 0x402   : > { %7867 = vmatpush1.bf16.msra.mxu0 %v9134_v48  ;;  %v1290_v48 = vld [vmem:[%s10614_s15 + $0xb30] sm:$0xff] }
 0x403   : > { %8195 = vmatpush1.bf16.msra.mxu1 %v9136_v49  ;;  %7868 = vmatprep.subr.bf16.mxu0 %v9143_v16  ;;  %v1287_v49 = vld [vmem:[%s10614_s15 + $0xb18] sm:$0xff]  ;;  %v9191_v56 = vcombine.high %v1286_v41, %v1290_v48 }
 0x404   : > { %8196 = vmatprep.subr.bf16.mxu1 %v9145_v52  ;;  %v1291_v16 = vld [vmem:[%s10614_s15 + $0xb38] sm:$0xff]  ;;  %v9182_v52 = vcombine.low %v1278_v31, %v1282_v34 }
 0x405   : > { %v9193_v33 = vcombine.high %v1287_v49, %v1291_v16  ;;  %v9192_v46 = vcombine.low %v1287_v49, %v1291_v16  ;;  %v1334_v49 = vld [vmem:[%s10614_s15 + $0xc90] sm:$0xff] }
 0x406   : > { %7869 = vmatpush1.bf16.msra.mxu0 %v9142_v59  ;;  %v1298_v59 = vld [vmem:[%s10614_s15 + $0xb70] sm:$0xff] }
 0x407   : > { %8197 = vmatpush1.bf16.msra.mxu1 %v9144_v61  ;;  %7870 = vmatprep.subr.bf16.mxu0 %v9151_v62  ;;  %v1295_v61 = vld [vmem:[%s10614_s15 + $0xb58] sm:$0xff]  ;;  %v9199_v8 = vcombine.high %v1294_v58, %v1298_v59  ;;  %v1338_v16 = vld [vmem:[%s10614_s15 + $0xcb0] sm:$0xff] }
 0x408   : > { %8198 = vmatprep.subr.bf16.mxu1 %v9153_v1  ;;  %v1299_v62 = vld [vmem:[%s10614_s15 + $0xb78] sm:$0xff]  ;;  %v9190_v1 = vcombine.low %v1286_v41, %v1290_v48 }
 0x409   : > { %v9201_v11 = vcombine.high %v1295_v61, %v1299_v62  ;;  %v9200_v57 = vcombine.low %v1295_v61, %v1299_v62  ;;  %v1342_v62 = vld [vmem:[%s10614_s15 + $0xcd0] sm:$0xff] }
 0x40a   : > { %7871 = vmatpush1.bf16.msra.mxu0 %v9150_v14  ;;  %v1306_v14 = vld [vmem:[%s10614_s15 + $0xbb0] sm:$0xff] }
 0x40b   : > { %8199 = vmatpush1.bf16.msra.mxu1 %v9152_v43  ;;  %7872 = vmatprep.subr.bf16.mxu0 %v9159_v15  ;;  %v1303_v43 = vld [vmem:[%s10614_s15 + $0xb98] sm:$0xff]  ;;  %v9207_v63 = vcombine.high %v1302_v13, %v1306_v14 }
 0x40c   : > { %8200 = vmatprep.subr.bf16.mxu1 %v9161_v18  ;;  %v1307_v15 = vld [vmem:[%s10614_s15 + $0xbb8] sm:$0xff]  ;;  %v9198_v18 = vcombine.low %v1294_v58, %v1298_v59  ;;  %v9239_v59 = vcombine.high %v1334_v49, %v1338_v16 }
 0x40d   : > { %v9209_v2 = vcombine.high %v1303_v43, %v1307_v15  ;;  %v9208_v39 = vcombine.low %v1303_v43, %v1307_v15  ;;  %v1354_v43 = vld [vmem:[%s10614_s15 + $0xd30] sm:$0xff]  ;;  %v1351_v15 = vld [vmem:[%s10614_s15 + $0xd18] sm:$0xff] }
 0x40e   : > { %7873 = vmatpush1.bf16.msra.mxu0 %v9158_v10  ;;  %v1314_v10 = vld [vmem:[%s10614_s15 + $0xbf0] sm:$0xff] }
 0x40f   : > { %8201 = vmatpush1.bf16.msra.mxu1 %v9160_v5  ;;  %7874 = vmatprep.subr.bf16.mxu0 %v9167_v20  ;;  %v1311_v5 = vld [vmem:[%s10614_s15 + $0xbd8] sm:$0xff]  ;;  %v9215_v23 = vcombine.high %v1310_v0, %v1314_v10 }
 0x410   : > { %8202 = vmatprep.subr.bf16.mxu1 %v9169_v25  ;;  %v1315_v20 = vld [vmem:[%s10614_s15 + $0xbf8] sm:$0xff]  ;;  %v9206_v25 = vcombine.low %v1302_v13, %v1306_v14  ;;  %v1350_v14 = vld [vmem:[%s10614_s15 + $0xd10] sm:$0xff] }
 0x411   : > { %v9217_v24 = vcombine.high %v1311_v5, %v1315_v20  ;;  %v9216_v31 = vcombine.low %v1311_v5, %v1315_v20  ;;  %v1362_v5 = vld [vmem:[%s10614_s15 + $0xd70] sm:$0xff]  ;;  %v1359_v20 = vld [vmem:[%s10614_s15 + $0xd58] sm:$0xff] }
 0x412   : > { %7875 = vmatpush1.bf16.msra.mxu0 %v9166_v22  ;;  %v1322_v22 = vld [vmem:[%s10614_s15 + $0xc30] sm:$0xff] }
 0x413   : > { %8203 = vmatpush1.bf16.msra.mxu1 %v9168_v12  ;;  %7876 = vmatprep.subr.bf16.mxu0 %v9175_v30  ;;  %v1319_v12 = vld [vmem:[%s10614_s15 + $0xc18] sm:$0xff]  ;;  %v9223_v34 = vcombine.high %v1318_v26, %v1322_v22 }
 0x414   : > { %8204 = vmatprep.subr.bf16.mxu1 %v9177_v4  ;;  %v1323_v30 = vld [vmem:[%s10614_s15 + $0xc38] sm:$0xff]  ;;  %v9214_v4 = vcombine.low %v1310_v0, %v1314_v10  ;;  %v1358_v10 = vld [vmem:[%s10614_s15 + $0xd50] sm:$0xff] }
 0x415   : > { %v9225_v6 = vcombine.high %v1319_v12, %v1323_v30  ;;  %v9224_v41 = vcombine.low %v1319_v12, %v1323_v30  ;;  %v1370_v12 = vld [vmem:[%s10614_s15 + $0xdb0] sm:$0xff]  ;;  %v1367_v30 = vld [vmem:[%s10614_s15 + $0xd98] sm:$0xff] }
 0x416   : > { %7877 = vmatpush1.bf16.msra.mxu0 %v9174_v32  ;;  %v1330_v32 = vld [vmem:[%s10614_s15 + $0xc70] sm:$0xff] }
 0x417   : > { %8205 = vmatpush1.bf16.msra.mxu1 %v9176_v37  ;;  %7878 = vmatprep.subr.bf16.mxu0 %v9183_v19  ;;  %v9222_v37 = vcombine.low %v1318_v26, %v1322_v22  ;;  %v1327_v19 = vld [vmem:[%s10614_s15 + $0xc58] sm:$0xff]  ;;  %v9231_v48 = vcombine.high %v1326_v36, %v1330_v32  ;;  %v1366_v22 = vld [vmem:[%s10614_s15 + $0xd90] sm:$0xff] }
 0x418   : > { %8206 = vmatprep.subr.bf16.mxu1 %v9185_v9  ;;  %v1331_v9 = vld [vmem:[%s10614_s15 + $0xc78] sm:$0xff] }
 0x419   : > { %v9232_v58 = vcombine.low %v1327_v19, %v1331_v9 }
 0x41a   : > { %7879 = vmatpush1.bf16.msra.mxu0 %v9182_v52  ;;  %v9233_v52 = vcombine.high %v1327_v19, %v1331_v9  ;;  %v1378_v19 = vld [vmem:[%s10614_s15 + $0xdf0] sm:$0xff] }
 0x41b   : > { %8207 = vmatpush1.bf16.msra.mxu1 %v9184_v28  ;;  %7880 = vmatprep.subr.bf16.mxu0 %v9191_v56  ;;  %v1335_v28 = vld [vmem:[%s10614_s15 + $0xc98] sm:$0xff] }
 0x41c   : > { %8208 = vmatprep.subr.bf16.mxu1 %v9193_v33  ;;  %v1339_v56 = vld [vmem:[%s10614_s15 + $0xcb8] sm:$0xff]  ;;  %v9230_v33 = vcombine.low %v1326_v36, %v1330_v32 }
 0x41d   : > { %v9241_v61 = vcombine.high %v1335_v28, %v1339_v56 }
 0x41e   : > { %7881 = vmatpush1.bf16.msra.mxu0 %v9190_v1  ;;  %v1346_v1 = vld [vmem:[%s10614_s15 + $0xcf0] sm:$0xff] }
 0x41f   : > { %8209 = vmatpush1.bf16.msra.mxu1 %v9192_v46  ;;  %7882 = vmatprep.subr.bf16.mxu0 %v9199_v8  ;;  %v1343_v46 = vld [vmem:[%s10614_s15 + $0xcd8] sm:$0xff]  ;;  %v9238_v8 = vcombine.low %v1334_v49, %v1338_v16  ;;  %v9247_v13 = vcombine.high %v1342_v62, %v1346_v1 }
 0x420   : > { %8210 = vmatprep.subr.bf16.mxu1 %v9201_v11  ;;  %v9240_v11 = vcombine.low %v1335_v28, %v1339_v56  ;;  %v1379_v49 = vld [vmem:[%s10614_s15 + $0xdf8] sm:$0xff]  ;;  %v9270_v28 = vcombine.low %v1366_v22, %v1370_v12 }
 0x422   : > { %7883 = vmatpush1.bf16.msra.mxu0 %v9198_v18  ;;  %v1355_v18 = vld [vmem:[%s10614_s15 + $0xd38] sm:$0xff] }
 0x423   : > { %8211 = vmatpush1.bf16.msra.mxu1 %v9200_v57  ;;  %7884 = vmatprep.subr.bf16.mxu0 %v9207_v63  ;;  %v9246_v57 = vcombine.low %v1342_v62, %v1346_v1  ;;  %v9257_v0 = vcombine.high %v1351_v15, %v1355_v18  ;;  %v1382_v1 = vld [vmem:[%s10614_s15 + $0xe10] sm:$0xff] }
 0x424   : > { %8212 = vmatprep.subr.bf16.mxu1 %v9209_v2  ;;  %v9255_v2 = vcombine.high %v1350_v14, %v1354_v43 }
 0x426   : > { %7885 = vmatpush1.bf16.msra.mxu0 %v9206_v25  ;;  %v1363_v25 = vld [vmem:[%s10614_s15 + $0xd78] sm:$0xff] }
 0x427   : > { %8213 = vmatpush1.bf16.msra.mxu1 %v9208_v39  ;;  %7886 = vmatprep.subr.bf16.mxu0 %v9215_v23  ;;  %v9254_v39 = vcombine.low %v1350_v14, %v1354_v43  ;;  %v9256_v23 = vcombine.low %v1351_v15, %v1355_v18  ;;  %v9265_v26 = vcombine.high %v1359_v20, %v1363_v25  ;;  %v1390_v43 = vld [vmem:[%s10614_s15 + $0xe50] sm:$0xff]  ;;  %v1391_v18 = vld [vmem:[%s10614_s15 + $0xe58] sm:$0xff] }
 0x428   : > { %8214 = vmatprep.subr.bf16.mxu1 %v9217_v24  ;;  %v9263_v24 = vcombine.high %v1358_v10, %v1362_v5  ;;  %v1394_v15 = vld [vmem:[%s10614_s15 + $0xe70] sm:$0xff] }
 0x42a   : > { %7887 = vmatpush1.bf16.msra.mxu0 %v9214_v4  ;;  %v1371_v4 = vld [vmem:[%s10614_s15 + $0xdb8] sm:$0xff] }
 0x42b   : > { %8215 = vmatpush1.bf16.msra.mxu1 %v9216_v31  ;;  %7897 = vmatprep.subr.bf16.mxu0 %v9223_v34  ;;  %v9262_v31 = vcombine.low %v1358_v10, %v1362_v5  ;;  %v9264_v34 = vcombine.low %v1359_v20, %v1363_v25  ;;  %v9273_v32 = vcombine.high %v1367_v30, %v1371_v4  ;;  %v1398_v5 = vld [vmem:[%s10614_s15 + $0xe90] sm:$0xff]  ;;  %v1399_v25 = vld [vmem:[%s10614_s15 + $0xe98] sm:$0xff] }
 0x42c   : > { %8225 = vmatprep.subr.bf16.mxu1 %v9225_v6  ;;  %v9271_v6 = vcombine.high %v1366_v22, %v1370_v12  ;;  %v1402_v20 = vld [vmem:[%s10614_s15 + $0xeb0] sm:$0xff] }
 0x42d   : > { %7889 = vmatmul.mubr.bf16.vlgmr.msra.gmra.mrb[12].mxu0 %v10976_v54  ;;  %v1406_v12 = vld [vmem:[%s10614_s15 + $0xed0] sm:$0xff] }
 0x42e   : > { %8217 = vmatmul.mubr.bf16.vlgmr.msra.gmra.mrb[28].mxu1 %v10976_v54  ;;  %7898 = vmatpush1.bf16.msra.mxu0 %v9222_v37  ;;  %v1347_v54 = vld [vmem:[%s10614_s15 + $0xcf8] sm:$0xff]  ;;  %v1374_v37 = vld [vmem:[%s10614_s15 + $0xdd0] sm:$0xff] }
 0x42f   : > { %7929 = vmatprep.mubr.bf16.mxu0 %v10982_v29  ;;  %8226 = vmatpush1.bf16.msra.mxu1 %v9224_v41  ;;  %v9248_v63 = vcombine.low %v1343_v46, %v1347_v54 }
 0x430   : > { %8257 = vmatprep.mubr.bf16.mxu1 %v10982_v29  ;;  %7899 = vmatprep.subr.bf16.mxu0 %v9231_v48  ;;  %v9249_v29 = vcombine.high %v1343_v46, %v1347_v54  ;;  %v1375_v48 = vld [vmem:[%s10614_s15 + $0xdd8] sm:$0xff]  ;;  %v1386_v46 = vld [vmem:[%s10614_s15 + $0xe30] sm:$0xff] }
 0x431   : > { %8227 = vmatprep.subr.bf16.mxu1 %v9233_v52  ;;  %v9281_v62 = vcombine.high %v1375_v48, %v1379_v49  ;;  %v1383_v54 = vld [vmem:[%s10614_s15 + $0xe18] sm:$0xff] }
 0x432   : > { %7900 = vmatpush1.bf16.msra.mxu0 %v9230_v33 }
 0x433   : > { %8228 = vmatpush1.bf16.msra.mxu1 %v9232_v58  ;;  %7901 = vmatprep.subr.bf16.mxu0 %v9239_v59  ;;  %v9272_v58 = vcombine.low %v1367_v30, %v1371_v4  ;;  %v9279_v59 = vcombine.high %v1374_v37, %v1378_v19  ;;  %v1410_v30 = vld [vmem:[%s10614_s15 + $0xef0] sm:$0xff]  ;;  %v1407_v4 = vld [vmem:[%s10614_s15 + $0xed8] sm:$0xff] }
 0x434   : > { %8229 = vmatprep.subr.bf16.mxu1 %v9241_v61 }
 0x436   : > { %7902 = vmatpush1.bf16.msra.mxu0 %v9238_v8  ;;  %v1387_v8 = vld [vmem:[%s10614_s15 + $0xe38] sm:$0xff] }
 0x437   : > { %8230 = vmatpush1.bf16.msra.mxu1 %v9240_v11  ;;  %7903 = vmatprep.subr.bf16.mxu0 %v9247_v13  ;;  %v9278_v11 = vcombine.low %v1374_v37, %v1378_v19  ;;  %v9280_v13 = vcombine.low %v1375_v48, %v1379_v49  ;;  %v9289_v14 = vcombine.high %v1383_v54, %v1387_v8  ;;  %v1414_v19 = vld [vmem:[%s10614_s15 + $0xf10] sm:$0xff]  ;;  %v1415_v49 = vld [vmem:[%s10614_s15 + $0xf18] sm:$0xff] }
 0x438   : > { %8231 = vmatprep.subr.bf16.mxu1 %v9249_v29  ;;  %v9287_v29 = vcombine.high %v1382_v1, %v1386_v46  ;;  %v1418_v48 = vld [vmem:[%s10614_s15 + $0xf30] sm:$0xff] }
 0x43a   : > { %7904 = vmatpush1.bf16.msra.mxu0 %v9246_v57  ;;  %v1395_v57 = vld [vmem:[%s10614_s15 + $0xe78] sm:$0xff] }
 0x43b   : > { %8232 = vmatpush1.bf16.msra.mxu1 %v9248_v63  ;;  %7905 = vmatprep.subr.bf16.mxu0 %v9255_v2  ;;  %v9286_v63 = vcombine.low %v1382_v1, %v1386_v46  ;;  %v9288_v2 = vcombine.low %v1383_v54, %v1387_v8  ;;  %v9297_v10 = vcombine.high %v1391_v18, %v1395_v57  ;;  %v1427_v1 = vld [vmem:[%s10614_s15 + $0xf78] sm:$0xff] }
 0x43c   : > { %8233 = vmatprep.subr.bf16.mxu1 %v9257_v0  ;;  %v9295_v0 = vcombine.high %v1390_v43, %v1394_v15  ;;  %v9318_v46 = vcombine.low %v1414_v19, %v1418_v48 }
 0x43e   : > { %7906 = vmatpush1.bf16.msra.mxu0 %v9254_v39  ;;  %v1403_v39 = vld [vmem:[%s10614_s15 + $0xeb8] sm:$0xff] }
 0x43f   : > { %8234 = vmatpush1.bf16.msra.mxu1 %v9256_v23  ;;  %7907 = vmatprep.subr.bf16.mxu0 %v9263_v24  ;;  %v9294_v23 = vcombine.low %v1390_v43, %v1394_v15  ;;  %v9296_v24 = vcombine.low %v1391_v18, %v1395_v57  ;;  %v9305_v22 = vcombine.high %v1399_v25, %v1403_v39  ;;  %v1435_v43 = vld [vmem:[%s10614_s15 + $0xfb8] sm:$0xff] }
 0x440   : > { %v11582_v36 = vpop.f32.mrb[8].mxu0  ;;  %8235 = vmatprep.subr.bf16.mxu1 %v9265_v26  ;;  %v9303_v26 = vcombine.high %v1398_v5, %v1402_v20 }
 0x441   : > { %v11586_v9 = vpop.f32.mrb[24].mxu1  ;;  %v11588_v41 = vpop.f32.mrb[9].mxu0 }
 0x442   : > { %v11592_v16 = vpop.f32.mrb[25].mxu1  ;;  %v7443_v52 = vpop.f32.mrb[10].mxu0  ;;  %7908 = vmatpush1.bf16.msra.mxu0 %v9262_v31  ;;  %v1411_v31 = vld [vmem:[%s10614_s15 + $0xef8] sm:$0xff] }
 0x443   : > { %v7771_v56 = vpop.f32.mrb[26].mxu1  ;;  %8236 = vmatpush1.bf16.msra.mxu1 %v9264_v34  ;;  %v7444_v33 = vpop.f32.mrb[11].mxu0  ;;  %7909 = vmatprep.subr.bf16.mxu0 %v9271_v6  ;;  %v9302_v34 = vcombine.low %v1398_v5, %v1402_v20  ;;  %v9304_v6 = vcombine.low %v1399_v25, %v1403_v39  ;;  %v9313_v37 = vcombine.high %v1407_v4, %v1411_v31  ;;  %v1419_v52 = vld [vmem:[%s10614_s15 + $0xf38] sm:$0xff] }
 0x444   : > { %v7772_v61 = vpop.f32.mrb[27].mxu1  ;;  %8237 = vmatprep.subr.bf16.mxu1 %v9273_v32  ;;  %v9311_v32 = vcombine.high %v1406_v12, %v1410_v30  ;;  %v9312_v56 = vcombine.low %v1407_v4, %v1411_v31  ;;  %v9319_v33 = vcombine.high %v1414_v19, %v1418_v48  ;;  %v9320_v54 = vcombine.low %v1415_v49, %v1419_v52  ;;  %v1443_v5 = vld [vmem:[%s10614_s15 + $0xff8] sm:$0xff] }
 0x445   : > { %v1426_v61 = vld [vmem:[%s10614_s15 + $0xf70] sm:$0xff]  ;;  %v1455_v19 = vld [vmem:[%s10614_s15 + $0x1058] sm:$0xff] }
 0x446   : > { %7910 = vmatpush1.bf16.msra.mxu0 %v9270_v28  ;;  %v9310_v28 = vcombine.low %v1406_v12, %v1410_v30  ;;  %v1451_v12 = vld [vmem:[%s10614_s15 + $0x1038] sm:$0xff] }
 0x447   : > { %8238 = vmatpush1.bf16.msra.mxu1 %v9272_v58  ;;  %7911 = vmatprep.subr.bf16.mxu0 %v9279_v59  ;;  %v9321_v58 = vcombine.high %v1415_v49, %v1419_v52  ;;  %v1422_v59 = vld [vmem:[%s10614_s15 + $0xf50] sm:$0xff]  ;;  %v1459_v48 = vld [vmem:[%s10614_s15 + $0x1078] sm:$0xff] }
 0x448   : > { %8239 = vmatprep.subr.bf16.mxu1 %v9281_v62  ;;  %v1423_v62 = vld [vmem:[%s10614_s15 + $0xf58] sm:$0xff]  ;;  %v9327_v8 = vcombine.high %v1422_v59, %v1426_v61  ;;  %v9326_v15 = vcombine.low %v1422_v59, %v1426_v61 }
 0x449   : > { %v9328_v18 = vcombine.low %v1423_v62, %v1427_v1  ;;  %v1467_v59 = vld [vmem:[%s10614_s15 + $0x10b8] sm:$0xff] }
 0x44a   : > { %7912 = vmatpush1.bf16.msra.mxu0 %v9278_v11  ;;  %v9329_v11 = vcombine.high %v1423_v62, %v1427_v1  ;;  %v9360_v62 = vcombine.low %v1455_v19, %v1459_v48 }
 0x44b   : > { %8240 = vmatpush1.bf16.msra.mxu1 %v9280_v13  ;;  %7913 = vmatprep.subr.bf16.mxu0 %v9287_v29  ;;  %v1430_v13 = vld [vmem:[%s10614_s15 + $0xf90] sm:$0xff] }
 0x44c   : > { %8241 = vmatprep.subr.bf16.mxu1 %v9289_v14  ;;  %v1434_v29 = vld [vmem:[%s10614_s15 + $0xfb0] sm:$0xff]  ;;  %v1431_v14 = vld [vmem:[%s10614_s15 + $0xf98] sm:$0xff] }
 0x44d   : > { %v9335_v57 = vcombine.high %v1430_v13, %v1434_v29  ;;  %v9334_v20 = vcombine.low %v1430_v13, %v1434_v29  ;;  %v9336_v25 = vcombine.low %v1431_v14, %v1435_v43 }
 0x44e   : > { %7914 = vmatpush1.bf16.msra.mxu0 %v9286_v63  ;;  %v9337_v63 = vcombine.high %v1431_v14, %v1435_v43  ;;  %v1478_v43 = vld [vmem:[%s10614_s15 + $0x1110] sm:$0xff] }
 0x44f   : > { %8242 = vmatpush1.bf16.msra.mxu1 %v9288_v2  ;;  %7915 = vmatprep.subr.bf16.mxu0 %v9295_v0  ;;  %v1438_v2 = vld [vmem:[%s10614_s15 + $0xfd0] sm:$0xff] }
 0x450   : > { %8243 = vmatprep.subr.bf16.mxu1 %v9297_v10  ;;  %v1442_v0 = vld [vmem:[%s10614_s15 + $0xff0] sm:$0xff]  ;;  %v1439_v10 = vld [vmem:[%s10614_s15 + $0xfd8] sm:$0xff] }
 0x451   : > { %v9343_v39 = vcombine.high %v1438_v2, %v1442_v0  ;;  %v9342_v30 = vcombine.low %v1438_v2, %v1442_v0  ;;  %v9344_v4 = vcombine.low %v1439_v10, %v1443_v5 }
 0x452   : > { %7916 = vmatpush1.bf16.msra.mxu0 %v9294_v23  ;;  %v9345_v23 = vcombine.high %v1439_v10, %v1443_v5  ;;  %v1486_v5 = vld [vmem:[%s10614_s15 + $0x1150] sm:$0xff] }
 0x453   : > { %8244 = vmatpush1.bf16.msra.mxu1 %v9296_v24  ;;  %7917 = vmatprep.subr.bf16.mxu0 %v9303_v26  ;;  %v1446_v24 = vld [vmem:[%s10614_s15 + $0x1010] sm:$0xff] }
 0x454   : > { %8245 = vmatprep.subr.bf16.mxu1 %v9305_v22  ;;  %v1450_v26 = vld [vmem:[%s10614_s15 + $0x1030] sm:$0xff]  ;;  %v1447_v22 = vld [vmem:[%s10614_s15 + $0x1018] sm:$0xff] }
 0x455   : > { %v9351_v31 = vcombine.high %v1446_v24, %v1450_v26  ;;  %v9352_v49 = vcombine.low %v1447_v22, %v1451_v12 }
 0x456   : > { %7918 = vmatpush1.bf16.msra.mxu0 %v9302_v34  ;;  %v9353_v34 = vcombine.high %v1447_v22, %v1451_v12  ;;  %v1494_v12 = vld [vmem:[%s10614_s15 + $0x1190] sm:$0xff] }
 0x457   : > { %8246 = vmatpush1.bf16.msra.mxu1 %v9304_v6  ;;  %7919 = vmatprep.subr.bf16.mxu0 %v9311_v32  ;;  %v1454_v6 = vld [vmem:[%s10614_s15 + $0x1050] sm:$0xff] }
 0x458   : > { %8247 = vmatprep.subr.bf16.mxu1 %v9313_v37  ;;  %v1458_v32 = vld [vmem:[%s10614_s15 + $0x1070] sm:$0xff]  ;;  %v9350_v37 = vcombine.low %v1446_v24, %v1450_v26 }
 0x459   : > { %v9359_v52 = vcombine.high %v1454_v6, %v1458_v32  ;;  %v9358_v61 = vcombine.low %v1454_v6, %v1458_v32 }
 0x45a   : > { %7920 = vmatpush1.bf16.msra.mxu0 %v9310_v28  ;;  %v1462_v28 = vld [vmem:[%s10614_s15 + $0x1090] sm:$0xff] }
 0x45b   : > { %8248 = vmatpush1.bf16.msra.mxu1 %v9312_v56  ;;  %7921 = vmatprep.subr.bf16.mxu0 %v9319_v33  ;;  %v1466_v56 = vld [vmem:[%s10614_s15 + $0x10b0] sm:$0xff]  ;;  %v9361_v33 = vcombine.high %v1455_v19, %v1459_v48 }
 0x45c   : > { %8249 = vmatprep.subr.bf16.mxu1 %v9321_v58  ;;  %v1463_v58 = vld [vmem:[%s10614_s15 + $0x1098] sm:$0xff]  ;;  %v9367_v1 = vcombine.high %v1462_v28, %v1466_v56  ;;  %v9366_v13 = vcombine.low %v1462_v28, %v1466_v56  ;;  %v1502_v19 = vld [vmem:[%s10614_s15 + $0x11d0] sm:$0xff] }
 0x45d   : > { %v9368_v29 = vcombine.low %v1463_v58, %v1467_v59  ;;  %v1506_v48 = vld [vmem:[%s10614_s15 + $0x11f0] sm:$0xff] }
 0x45e   : > { %7922 = vmatpush1.bf16.msra.mxu0 %v9318_v46  ;;  %v9369_v46 = vcombine.high %v1463_v58, %v1467_v59  ;;  %v1510_v59 = vld [vmem:[%s10614_s15 + $0x1210] sm:$0xff] }
 0x45f   : > { %8250 = vmatpush1.bf16.msra.mxu1 %v9320_v54  ;;  %7923 = vmatprep.subr.bf16.mxu0 %v9327_v8  ;;  %v1470_v54 = vld [vmem:[%s10614_s15 + $0x10d0] sm:$0xff] }
 0x460   : > { %8251 = vmatprep.subr.bf16.mxu1 %v9329_v11  ;;  %v1474_v8 = vld [vmem:[%s10614_s15 + $0x10f0] sm:$0xff]  ;;  %v1471_v11 = vld [vmem:[%s10614_s15 + $0x10d8] sm:$0xff] }
 0x461   : > { %v9375_v14 = vcombine.high %v1470_v54, %v1474_v8 }
 0x462   : > { %7924 = vmatpush1.bf16.msra.mxu0 %v9326_v15  ;;  %v1482_v15 = vld [vmem:[%s10614_s15 + $0x1130] sm:$0xff] }
 0x463   : > { %8252 = vmatpush1.bf16.msra.mxu1 %v9328_v18  ;;  %7925 = vmatprep.subr.bf16.mxu0 %v9335_v57  ;;  %v1479_v18 = vld [vmem:[%s10614_s15 + $0x1118] sm:$0xff]  ;;  %v9383_v0 = vcombine.high %v1478_v43, %v1482_v15 }
 0x464   : > { %8253 = vmatprep.subr.bf16.mxu1 %v9337_v63  ;;  %v1483_v57 = vld [vmem:[%s10614_s15 + $0x1138] sm:$0xff]  ;;  %v9374_v63 = vcombine.low %v1470_v54, %v1474_v8 }
 0x465   : > { %v9385_v10 = vcombine.high %v1479_v18, %v1483_v57  ;;  %v9384_v24 = vcombine.low %v1479_v18, %v1483_v57  ;;  %v1526_v57 = vld [vmem:[%s10614_s15 + $0x1290] sm:$0xff] }
 0x466   : > { %7926 = vmatpush1.bf16.msra.mxu0 %v9334_v20  ;;  %v1490_v20 = vld [vmem:[%s10614_s15 + $0x1170] sm:$0xff] }
 0x467   : > { %8254 = vmatpush1.bf16.msra.mxu1 %v9336_v25  ;;  %7927 = vmatprep.subr.bf16.mxu0 %v9343_v39  ;;  %v1487_v25 = vld [vmem:[%s10614_s15 + $0x1158] sm:$0xff]  ;;  %v9391_v26 = vcombine.high %v1486_v5, %v1490_v20 }
 0x468   : > { %8255 = vmatprep.subr.bf16.mxu1 %v9345_v23  ;;  %v1491_v39 = vld [vmem:[%s10614_s15 + $0x1178] sm:$0xff]  ;;  %v9382_v23 = vcombine.low %v1478_v43, %v1482_v15 }
 0x469   : > { %v9393_v22 = vcombine.high %v1487_v25, %v1491_v39  ;;  %v9392_v6 = vcombine.low %v1487_v25, %v1491_v39  ;;  %v1534_v39 = vld [vmem:[%s10614_s15 + $0x12d0] sm:$0xff] }
 0x46a   : > { %7928 = vmatpush1.bf16.msra.mxu0 %v9342_v30  ;;  %v1498_v30 = vld [vmem:[%s10614_s15 + $0x11b0] sm:$0xff] }
 0x46b   : > { %8256 = vmatpush1.bf16.msra.mxu1 %v9344_v4  ;;  %7938 = vmatprep.subr.bf16.mxu0 %v9351_v31  ;;  %v1495_v4 = vld [vmem:[%s10614_s15 + $0x1198] sm:$0xff]  ;;  %v9399_v32 = vcombine.high %v1494_v12, %v1498_v30  ;;  %v9398_v28 = vcombine.low %v1494_v12, %v1498_v30 }
 0x46c   : > { %8266 = vmatprep.subr.bf16.mxu1 %v9353_v34  ;;  %v1499_v31 = vld [vmem:[%s10614_s15 + $0x11b8] sm:$0xff]  ;;  %v9390_v34 = vcombine.low %v1486_v5, %v1490_v20 }
 0x46d   : > { %7930 = vmatmul.mubr.bf16.vlgmr.msra.gmra.mrb[12].mxu0 %v11055_v40  ;;  %v9400_v56 = vcombine.low %v1495_v4, %v1499_v31 }
 0x46e   : > { %8258 = vmatmul.mubr.bf16.vlgmr.msra.gmra.mrb[28].mxu1 %v11055_v40  ;;  %7939 = vmatpush1.bf16.msra.mxu0 %v9350_v37  ;;  %v1475_v40 = vld [vmem:[%s10614_s15 + $0x10f8] sm:$0xff]  ;;  %v9401_v37 = vcombine.high %v1495_v4, %v1499_v31  ;;  %v1542_v31 = vld [vmem:[%s10614_s15 + $0x1310] sm:$0xff] }
 0x46f   : > { %7970 = vmatprep.mubr.bf16.mxu0 %v11057_v42  ;;  %8267 = vmatpush1.bf16.msra.mxu1 %v9352_v49  ;;  %v9376_v2 = vcombine.low %v1471_v11, %v1475_v40  ;;  %v1503_v49 = vld [vmem:[%s10614_s15 + $0x11d8] sm:$0xff] }
 0x470   : > { %8298 = vmatprep.mubr.bf16.mxu1 %v11057_v42  ;;  %7940 = vmatprep.subr.bf16.mxu0 %v9359_v52  ;;  %v9377_v42 = vcombine.high %v1471_v11, %v1475_v40  ;;  %v1507_v52 = vld [vmem:[%s10614_s15 + $0x11f8] sm:$0xff]  ;;  %v1518_v40 = vld [vmem:[%s10614_s15 + $0x1250] sm:$0xff] }
 0x471   : > { %8268 = vmatprep.subr.bf16.mxu1 %v9361_v33  ;;  %v9407_v33 = vcombine.high %v1502_v19, %v1506_v48  ;;  %v9409_v58 = vcombine.high %v1503_v49, %v1507_v52  ;;  %v9408_v54 = vcombine.low %v1503_v49, %v1507_v52  ;;  %v1550_v52 = vld [vmem:[%s10614_s15 + $0x1350] sm:$0xff] }
 0x472   : > { %7941 = vmatpush1.bf16.msra.mxu0 %v9358_v61  ;;  %v1514_v61 = vld [vmem:[%s10614_s15 + $0x1230] sm:$0xff] }
 0x473   : > { %8269 = vmatpush1.bf16.msra.mxu1 %v9360_v62  ;;  %7942 = vmatprep.subr.bf16.mxu0 %v9367_v1  ;;  %v1511_v62 = vld [vmem:[%s10614_s15 + $0x1218] sm:$0xff]  ;;  %v9415_v8 = vcombine.high %v1510_v59, %v1514_v61 }
 0x474   : > { %8270 = vmatprep.subr.bf16.mxu1 %v9369_v46  ;;  %v1515_v1 = vld [vmem:[%s10614_s15 + $0x1238] sm:$0xff]  ;;  %v9406_v46 = vcombine.low %v1502_v19, %v1506_v48 }
 0x475   : > { %v9417_v11 = vcombine.high %v1511_v62, %v1515_v1  ;;  %v9416_v43 = vcombine.low %v1511_v62, %v1515_v1  ;;  %v1558_v1 = vld [vmem:[%s10614_s15 + $0x1390] sm:$0xff] }
 0x476   : > { %7943 = vmatpush1.bf16.msra.mxu0 %v9366_v13  ;;  %v1522_v13 = vld [vmem:[%s10614_s15 + $0x1270] sm:$0xff] }
 0x477   : > { %8271 = vmatpush1.bf16.msra.mxu1 %v9368_v29  ;;  %7944 = vmatprep.subr.bf16.mxu0 %v9375_v14  ;;  %v1519_v29 = vld [vmem:[%s10614_s15 + $0x1258] sm:$0xff]  ;;  %v9423_v15 = vcombine.high %v1518_v40, %v1522_v13 }
 0x478   : > { %8272 = vmatprep.subr.bf16.mxu1 %v9377_v42  ;;  %v1523_v14 = vld [vmem:[%s10614_s15 + $0x1278] sm:$0xff]  ;;  %v9414_v42 = vcombine.low %v1510_v59, %v1514_v61 }
 0x479   : > { %v9425_v18 = vcombine.high %v1519_v29, %v1523_v14  ;;  %v9424_v5 = vcombine.low %v1519_v29, %v1523_v14  ;;  %v1566_v14 = vld [vmem:[%s10614_s15 + $0x13d0] sm:$0xff] }
 0x47a   : > { %7945 = vmatpush1.bf16.msra.mxu0 %v9374_v63  ;;  %v1530_v63 = vld [vmem:[%s10614_s15 + $0x12b0] sm:$0xff] }
 0x47b   : > { %8273 = vmatpush1.bf16.msra.mxu1 %v9376_v2  ;;  %7946 = vmatprep.subr.bf16.mxu0 %v9383_v0  ;;  %v1527_v2 = vld [vmem:[%s10614_s15 + $0x1298] sm:$0xff]  ;;  %v9431_v20 = vcombine.high %v1526_v57, %v1530_v63 }
 0x47c   : > { %8274 = vmatprep.subr.bf16.mxu1 %v9385_v10  ;;  %v1531_v0 = vld [vmem:[%s10614_s15 + $0x12b8] sm:$0xff]  ;;  %v9422_v10 = vcombine.low %v1518_v40, %v1522_v13 }
 0x47d   : > { %v9433_v25 = vcombine.high %v1527_v2, %v1531_v0  ;;  %v9432_v12 = vcombine.low %v1527_v2, %v1531_v0  ;;  %v1574_v0 = vld [vmem:[%s10614_s15 + $0x1410] sm:$0xff] }
 0x47e   : > { %7947 = vmatpush1.bf16.msra.mxu0 %v9382_v23  ;;  %v1538_v23 = vld [vmem:[%s10614_s15 + $0x12f0] sm:$0xff] }
 0x47f   : > { %8275 = vmatpush1.bf16.msra.mxu1 %v9384_v24  ;;  %7948 = vmatprep.subr.bf16.mxu0 %v9391_v26  ;;  %v1535_v24 = vld [vmem:[%s10614_s15 + $0x12d8] sm:$0xff]  ;;  %v9439_v30 = vcombine.high %v1534_v39, %v1538_v23 }
 0x480   : > { %8276 = vmatprep.subr.bf16.mxu1 %v9393_v22  ;;  %v1539_v26 = vld [vmem:[%s10614_s15 + $0x12f8] sm:$0xff]  ;;  %v9430_v22 = vcombine.low %v1526_v57, %v1530_v63 }
 0x481   : > { %v9441_v4 = vcombine.high %v1535_v24, %v1539_v26  ;;  %v9440_v19 = vcombine.low %v1535_v24, %v1539_v26  ;;  %v1582_v26 = vld [vmem:[%s10614_s15 + $0x1450] sm:$0xff] }
 0x482   : > { %7949 = vmatpush1.bf16.msra.mxu0 %v9390_v34  ;;  %v1546_v34 = vld [vmem:[%s10614_s15 + $0x1330] sm:$0xff] }
 0x483   : > { %8277 = vmatpush1.bf16.msra.mxu1 %v9392_v6  ;;  %7950 = vmatprep.subr.bf16.mxu0 %v9399_v32  ;;  %v1543_v6 = vld [vmem:[%s10614_s15 + $0x1318] sm:$0xff]  ;;  %v9447_v48 = vcombine.high %v1542_v31, %v1546_v34 }
 0x484   : > { %8278 = vmatprep.subr.bf16.mxu1 %v9401_v37  ;;  %v1547_v32 = vld [vmem:[%s10614_s15 + $0x1338] sm:$0xff]  ;;  %v9438_v37 = vcombine.low %v1534_v39, %v1538_v23 }
 0x485   : > { %v9449_v49 = vcombine.high %v1543_v6, %v1547_v32  ;;  %v9448_v59 = vcombine.low %v1543_v6, %v1547_v32  ;;  %v1590_v6 = vld [vmem:[%s10614_s15 + $0x1490] sm:$0xff] }
 0x486   : > { %7951 = vmatpush1.bf16.msra.mxu0 %v9398_v28  ;;  %v1554_v28 = vld [vmem:[%s10614_s15 + $0x1370] sm:$0xff] }
 0x487   : > { %8279 = vmatpush1.bf16.msra.mxu1 %v9400_v56  ;;  %7952 = vmatprep.subr.bf16.mxu0 %v9407_v33  ;;  %v1551_v56 = vld [vmem:[%s10614_s15 + $0x1358] sm:$0xff]  ;;  %v9455_v61 = vcombine.high %v1550_v52, %v1554_v28  ;;  %v1594_v32 = vld [vmem:[%s10614_s15 + $0x14b0] sm:$0xff] }
 0x488   : > { %8280 = vmatprep.subr.bf16.mxu1 %v9409_v58  ;;  %v1555_v33 = vld [vmem:[%s10614_s15 + $0x1378] sm:$0xff]  ;;  %v9446_v58 = vcombine.low %v1542_v31, %v1546_v34 }
 0x489   : > { %v9457_v62 = vcombine.high %v1551_v56, %v1555_v33  ;;  %v9456_v40 = vcombine.low %v1551_v56, %v1555_v33  ;;  %v1598_v33 = vld [vmem:[%s10614_s15 + $0x14d0] sm:$0xff] }
 0x48a   : > { %7953 = vmatpush1.bf16.msra.mxu0 %v9406_v46  ;;  %v1562_v46 = vld [vmem:[%s10614_s15 + $0x13b0] sm:$0xff] }
 0x48b   : > { %8281 = vmatpush1.bf16.msra.mxu1 %v9408_v54  ;;  %7954 = vmatprep.subr.bf16.mxu0 %v9415_v8  ;;  %v1559_v54 = vld [vmem:[%s10614_s15 + $0x1398] sm:$0xff]  ;;  %v9463_v13 = vcombine.high %v1558_v1, %v1562_v46 }
 0x48c   : > { %8282 = vmatprep.subr.bf16.mxu1 %v9417_v11  ;;  %v1563_v8 = vld [vmem:[%s10614_s15 + $0x13b8] sm:$0xff]  ;;  %v9454_v11 = vcombine.low %v1550_v52, %v1554_v28  ;;  %v9495_v28 = vcombine.high %v1590_v6, %v1594_v32 }
 0x48d   : > { %v9465_v29 = vcombine.high %v1559_v54, %v1563_v8  ;;  %v9464_v57 = vcombine.low %v1559_v54, %v1563_v8  ;;  %v1610_v54 = vld [vmem:[%s10614_s15 + $0x1530] sm:$0xff]  ;;  %v1607_v8 = vld [vmem:[%s10614_s15 + $0x1518] sm:$0xff] }
 0x48e   : > { %7955 = vmatpush1.bf16.msra.mxu0 %v9414_v42  ;;  %v1570_v42 = vld [vmem:[%s10614_s15 + $0x13f0] sm:$0xff] }
 0x48f   : > { %8283 = vmatpush1.bf16.msra.mxu1 %v9416_v43  ;;  %7956 = vmatprep.subr.bf16.mxu0 %v9423_v15  ;;  %v1567_v43 = vld [vmem:[%s10614_s15 + $0x13d8] sm:$0xff]  ;;  %v9471_v63 = vcombine.high %v1566_v14, %v1570_v42 }
 0x490   : > { %8284 = vmatprep.subr.bf16.mxu1 %v9425_v18  ;;  %v1571_v15 = vld [vmem:[%s10614_s15 + $0x13f8] sm:$0xff]  ;;  %v9462_v18 = vcombine.low %v1558_v1, %v1562_v46  ;;  %v1606_v46 = vld [vmem:[%s10614_s15 + $0x1510] sm:$0xff] }
 0x491   : > { %v9473_v2 = vcombine.high %v1567_v43, %v1571_v15  ;;  %v9472_v39 = vcombine.low %v1567_v43, %v1571_v15  ;;  %v1618_v43 = vld [vmem:[%s10614_s15 + $0x1570] sm:$0xff]  ;;  %v1615_v15 = vld [vmem:[%s10614_s15 + $0x1558] sm:$0xff] }
 0x492   : > { %7957 = vmatpush1.bf16.msra.mxu0 %v9422_v10  ;;  %v1578_v10 = vld [vmem:[%s10614_s15 + $0x1430] sm:$0xff] }
 0x493   : > { %8285 = vmatpush1.bf16.msra.mxu1 %v9424_v5  ;;  %7958 = vmatprep.subr.bf16.mxu0 %v9431_v20  ;;  %v1575_v5 = vld [vmem:[%s10614_s15 + $0x1418] sm:$0xff]  ;;  %v9479_v23 = vcombine.high %v1574_v0, %v1578_v10 }
 0x494   : > { %8286 = vmatprep.subr.bf16.mxu1 %v9433_v25  ;;  %v1579_v20 = vld [vmem:[%s10614_s15 + $0x1438] sm:$0xff]  ;;  %v9470_v25 = vcombine.low %v1566_v14, %v1570_v42  ;;  %v1614_v42 = vld [vmem:[%s10614_s15 + $0x1550] sm:$0xff] }
 0x495   : > { %v9481_v24 = vcombine.high %v1575_v5, %v1579_v20  ;;  %v9480_v31 = vcombine.low %v1575_v5, %v1579_v20  ;;  %v1626_v5 = vld [vmem:[%s10614_s15 + $0x15b0] sm:$0xff]  ;;  %v1623_v20 = vld [vmem:[%s10614_s15 + $0x1598] sm:$0xff] }
 0x496   : > { %7959 = vmatpush1.bf16.msra.mxu0 %v9430_v22  ;;  %v1586_v22 = vld [vmem:[%s10614_s15 + $0x1470] sm:$0xff] }
 0x497   : > { %8287 = vmatpush1.bf16.msra.mxu1 %v9432_v12  ;;  %7960 = vmatprep.subr.bf16.mxu0 %v9439_v30  ;;  %v9478_v12 = vcombine.low %v1574_v0, %v1578_v10  ;;  %v1583_v30 = vld [vmem:[%s10614_s15 + $0x1458] sm:$0xff]  ;;  %v9487_v34 = vcombine.high %v1582_v26, %v1586_v22  ;;  %v1622_v10 = vld [vmem:[%s10614_s15 + $0x1590] sm:$0xff] }
 0x498   : > { %8288 = vmatprep.subr.bf16.mxu1 %v9441_v4  ;;  %v1587_v4 = vld [vmem:[%s10614_s15 + $0x1478] sm:$0xff] }
 0x499   : > { %v9488_v52 = vcombine.low %v1583_v30, %v1587_v4 }
 0x49a   : > { %7961 = vmatpush1.bf16.msra.mxu0 %v9438_v37  ;;  %v9489_v37 = vcombine.high %v1583_v30, %v1587_v4  ;;  %v1631_v30 = vld [vmem:[%s10614_s15 + $0x15d8] sm:$0xff] }
 0x49b   : > { %8289 = vmatpush1.bf16.msra.mxu1 %v9440_v19  ;;  %7962 = vmatprep.subr.bf16.mxu0 %v9447_v48  ;;  %v1591_v19 = vld [vmem:[%s10614_s15 + $0x1498] sm:$0xff] }
 0x49c   : > { %8290 = vmatprep.subr.bf16.mxu1 %v9449_v49  ;;  %v1595_v48 = vld [vmem:[%s10614_s15 + $0x14b8] sm:$0xff]  ;;  %v9486_v49 = vcombine.low %v1582_v26, %v1586_v22  ;;  %v1630_v22 = vld [vmem:[%s10614_s15 + $0x15d0] sm:$0xff] }
 0x49d   : > { %v9497_v56 = vcombine.high %v1591_v19, %v1595_v48  ;;  %v1635_v4 = vld [vmem:[%s10614_s15 + $0x15f8] sm:$0xff] }
 0x49e   : > { %7963 = vmatpush1.bf16.msra.mxu0 %v9446_v58  ;;  %v1602_v58 = vld [vmem:[%s10614_s15 + $0x14f0] sm:$0xff] }
 0x49f   : > { %8291 = vmatpush1.bf16.msra.mxu1 %v9448_v59  ;;  %7964 = vmatprep.subr.bf16.mxu0 %v9455_v61  ;;  %v1599_v59 = vld [vmem:[%s10614_s15 + $0x14d8] sm:$0xff]  ;;  %v9494_v61 = vcombine.low %v1590_v6, %v1594_v32  ;;  %v9503_v1 = vcombine.high %v1598_v33, %v1602_v58  ;;  %v9537_v32 = vcombine.high %v1631_v30, %v1635_v4 }
 0x4a0   : > { %8292 = vmatprep.subr.bf16.mxu1 %v9457_v62  ;;  %v9496_v62 = vcombine.low %v1591_v19, %v1595_v48  ;;  %v1642_v19 = vld [vmem:[%s10614_s15 + $0x1630] sm:$0xff]  ;;  %v1639_v48 = vld [vmem:[%s10614_s15 + $0x1618] sm:$0xff] }
 0x4a2   : > { %7965 = vmatpush1.bf16.msra.mxu0 %v9454_v11  ;;  %v1611_v11 = vld [vmem:[%s10614_s15 + $0x1538] sm:$0xff] }
 0x4a3   : > { %8293 = vmatpush1.bf16.msra.mxu1 %v9456_v40  ;;  %7966 = vmatprep.subr.bf16.mxu0 %v9463_v13  ;;  %v9502_v40 = vcombine.low %v1598_v33, %v1602_v58  ;;  %v9513_v14 = vcombine.high %v1607_v8, %v1611_v11  ;;  %v1646_v58 = vld [vmem:[%s10614_s15 + $0x1650] sm:$0xff] }
 0x4a4   : > { %8294 = vmatprep.subr.bf16.mxu1 %v9465_v29  ;;  %v9511_v29 = vcombine.high %v1606_v46, %v1610_v54 }
 0x4a6   : > { %7967 = vmatpush1.bf16.msra.mxu0 %v9462_v18  ;;  %v1619_v18 = vld [vmem:[%s10614_s15 + $0x1578] sm:$0xff] }
 0x4a7   : > { %8295 = vmatpush1.bf16.msra.mxu1 %v9464_v57  ;;  %7968 = vmatprep.subr.bf16.mxu0 %v9471_v63  ;;  %v9510_v57 = vcombine.low %v1606_v46, %v1610_v54  ;;  %v9512_v63 = vcombine.low %v1607_v8, %v1611_v11  ;;  %v9521_v0 = vcombine.high %v1615_v15, %v1619_v18  ;;  %v1654_v54 = vld [vmem:[%s10614_s15 + $0x1690] sm:$0xff]  ;;  %v1655_v11 = vld [vmem:[%s10614_s15 + $0x1698] sm:$0xff] }
 0x4a8   : > { %8296 = vmatprep.subr.bf16.mxu1 %v9473_v2  ;;  %v9519_v2 = vcombine.high %v1614_v42, %v1618_v43  ;;  %v1658_v8 = vld [vmem:[%s10614_s15 + $0x16b0] sm:$0xff] }
 0x4aa   : > { %7969 = vmatpush1.bf16.msra.mxu0 %v9470_v25  ;;  %v1627_v25 = vld [vmem:[%s10614_s15 + $0x15b8] sm:$0xff] }
 0x4ab   : > { %8297 = vmatpush1.bf16.msra.mxu1 %v9472_v39  ;;  %7979 = vmatprep.subr.bf16.mxu0 %v9479_v23  ;;  %v9518_v39 = vcombine.low %v1614_v42, %v1618_v43  ;;  %v9520_v23 = vcombine.low %v1615_v15, %v1619_v18  ;;  %v9529_v26 = vcombine.high %v1623_v20, %v1627_v25  ;;  %v1662_v43 = vld [vmem:[%s10614_s15 + $0x16d0] sm:$0xff]  ;;  %v1663_v18 = vld [vmem:[%s10614_s15 + $0x16d8] sm:$0xff] }
 0x4ac   : > { %8307 = vmatprep.subr.bf16.mxu1 %v9481_v24  ;;  %v9527_v24 = vcombine.high %v1622_v10, %v1626_v5  ;;  %v1666_v15 = vld [vmem:[%s10614_s15 + $0x16f0] sm:$0xff] }
 0x4ad   : > { %7971 = vmatmul.mubr.bf16.vlgmr.msra.gmra.mrb[12].mxu0 %v11131_v7 }
 0x4ae   : > { %8299 = vmatmul.mubr.bf16.vlgmr.msra.gmra.mrb[28].mxu1 %v11131_v7  ;;  %7980 = vmatpush1.bf16.msra.mxu0 %v9478_v12  ;;  %v1603_v7 = vld [vmem:[%s10614_s15 + $0x14f8] sm:$0xff]  ;;  %v1634_v12 = vld [vmem:[%s10614_s15 + $0x15f0] sm:$0xff] }
 0x4af   : > { %8011 = vmatprep.mubr.bf16.mxu0 %v11135_v44  ;;  %8308 = vmatpush1.bf16.msra.mxu1 %v9480_v31  ;;  %v9504_v13 = vcombine.low %v1599_v59, %v1603_v7  ;;  %v9526_v31 = vcombine.low %v1622_v10, %v1626_v5  ;;  %v9535_v6 = vcombine.high %v1630_v22, %v1634_v12  ;;  %v1670_v5 = vld [vmem:[%s10614_s15 + $0x1710] sm:$0xff] }
 0x4b0   : > { %8339 = vmatprep.mubr.bf16.mxu1 %v11135_v44  ;;  %7981 = vmatprep.subr.bf16.mxu0 %v9487_v34  ;;  %v9505_v44 = vcombine.high %v1599_v59, %v1603_v7  ;;  %v9528_v34 = vcombine.low %v1623_v20, %v1627_v25  ;;  %v1650_v59 = vld [vmem:[%s10614_s15 + $0x1670] sm:$0xff]  ;;  %v1647_v7 = vld [vmem:[%s10614_s15 + $0x1658] sm:$0xff] }
 0x4b1   : > { %8309 = vmatprep.subr.bf16.mxu1 %v9489_v37  ;;  %v1638_v37 = vld [vmem:[%s10614_s15 + $0x1610] sm:$0xff]  ;;  %v1671_v25 = vld [vmem:[%s10614_s15 + $0x1718] sm:$0xff] }
 0x4b2   : > { %7982 = vmatpush1.bf16.msra.mxu0 %v9486_v49  ;;  %v1643_v49 = vld [vmem:[%s10614_s15 + $0x1638] sm:$0xff]  ;;  %v1674_v20 = vld [vmem:[%s10614_s15 + $0x1730] sm:$0xff] }
 0x4b3   : > { %8310 = vmatpush1.bf16.msra.mxu1 %v9488_v52  ;;  %7983 = vmatprep.subr.bf16.mxu0 %v9495_v28  ;;  %v9534_v52 = vcombine.low %v1630_v22, %v1634_v12  ;;  %v9536_v28 = vcombine.low %v1631_v30, %v1635_v4  ;;  %v9545_v33 = vcombine.high %v1639_v48, %v1643_v49  ;;  %v1678_v12 = vld [vmem:[%s10614_s15 + $0x1750] sm:$0xff]  ;;  %v1679_v4 = vld [vmem:[%s10614_s15 + $0x1758] sm:$0xff] }
 0x4b4   : > { %8311 = vmatprep.subr.bf16.mxu1 %v9497_v56  ;;  %v9543_v56 = vcombine.high %v1638_v37, %v1642_v19  ;;  %v1682_v30 = vld [vmem:[%s10614_s15 + $0x1770] sm:$0xff] }
 0x4b6   : > { %7984 = vmatpush1.bf16.msra.mxu0 %v9494_v61  ;;  %v1651_v61 = vld [vmem:[%s10614_s15 + $0x1678] sm:$0xff] }
 0x4b7   : > { %8312 = vmatpush1.bf16.msra.mxu1 %v9496_v62  ;;  %7985 = vmatprep.subr.bf16.mxu0 %v9503_v1  ;;  %v9542_v62 = vcombine.low %v1638_v37, %v1642_v19  ;;  %v9544_v1 = vcombine.low %v1639_v48, %v1643_v49  ;;  %v9553_v46 = vcombine.high %v1647_v7, %v1651_v61  ;;  %v1686_v19 = vld [vmem:[%s10614_s15 + $0x1790] sm:$0xff]  ;;  %v1687_v49 = vld [vmem:[%s10614_s15 + $0x1798] sm:$0xff] }
 0x4b8   : > { %8313 = vmatprep.subr.bf16.mxu1 %v9505_v44  ;;  %v9551_v44 = vcombine.high %v1646_v58, %v1650_v59  ;;  %v1690_v48 = vld [vmem:[%s10614_s15 + $0x17b0] sm:$0xff] }
 0x4ba   : > { %7986 = vmatpush1.bf16.msra.mxu0 %v9502_v40  ;;  %v1659_v40 = vld [vmem:[%s10614_s15 + $0x16b8] sm:$0xff] }
 0x4bb   : > { %8314 = vmatpush1.bf16.msra.mxu1 %v9504_v13  ;;  %7987 = vmatprep.subr.bf16.mxu0 %v9511_v29  ;;  %v9550_v13 = vcombine.low %v1646_v58, %v1650_v59  ;;  %v9552_v29 = vcombine.low %v1647_v7, %v1651_v61  ;;  %v9561_v42 = vcombine.high %v1655_v11, %v1659_v40  ;;  %v1694_v59 = vld [vmem:[%s10614_s15 + $0x17d0] sm:$0xff]  ;;  %v1695_v61 = vld [vmem:[%s10614_s15 + $0x17d8] sm:$0xff] }
 0x4bc   : > { %8315 = vmatprep.subr.bf16.mxu1 %v9513_v14  ;;  %v9559_v14 = vcombine.high %v1654_v54, %v1658_v8  ;;  %v1698_v7 = vld [vmem:[%s10614_s15 + $0x17f0] sm:$0xff] }
 0x4be   : > { %7988 = vmatpush1.bf16.msra.mxu0 %v9510_v57  ;;  %v1667_v57 = vld [vmem:[%s10614_s15 + $0x16f8] sm:$0xff] }
 0x4bf   : > { %8316 = vmatpush1.bf16.msra.mxu1 %v9512_v63  ;;  %7989 = vmatprep.subr.bf16.mxu0 %v9519_v2  ;;  %v9558_v63 = vcombine.low %v1654_v54, %v1658_v8  ;;  %v9560_v2 = vcombine.low %v1655_v11, %v1659_v40  ;;  %v9569_v10 = vcombine.high %v1663_v18, %v1667_v57  ;;  %v1702_v8 = vld [vmem:[%s10614_s15 + $0x1810] sm:$0xff]  ;;  %v1703_v40 = vld [vmem:[%s10614_s15 + $0x1818] sm:$0xff] }
 0x4c0   : > { %8317 = vmatprep.subr.bf16.mxu1 %v9521_v0  ;;  %v9567_v0 = vcombine.high %v1662_v43, %v1666_v15  ;;  %v1706_v11 = vld [vmem:[%s10614_s15 + $0x1830] sm:$0xff] }
 0x4c2   : > { %7990 = vmatpush1.bf16.msra.mxu0 %v9518_v39  ;;  %v1675_v39 = vld [vmem:[%s10614_s15 + $0x1738] sm:$0xff] }
 0x4c3   : > { %8318 = vmatpush1.bf16.msra.mxu1 %v9520_v23  ;;  %7991 = vmatprep.subr.bf16.mxu0 %v9527_v24  ;;  %v9566_v23 = vcombine.low %v1662_v43, %v1666_v15  ;;  %v9568_v24 = vcombine.low %v1663_v18, %v1667_v57  ;;  %v9577_v22 = vcombine.high %v1671_v25, %v1675_v39  ;;  %v1710_v15 = vld [vmem:[%s10614_s15 + $0x1850] sm:$0xff] }
 0x4c4   : > { %8319 = vmatprep.subr.bf16.mxu1 %v9529_v26  ;;  %v9575_v26 = vcombine.high %v1670_v5, %v1674_v20  ;;  %v1714_v18 = vld [vmem:[%s10614_s15 + $0x1870] sm:$0xff]  ;;  %v9606_v57 = vcombine.low %v1702_v8, %v1706_v11 }
 0x4c6   : > { %7992 = vmatpush1.bf16.msra.mxu0 %v9526_v31  ;;  %v1683_v31 = vld [vmem:[%s10614_s15 + $0x1778] sm:$0xff] }
 0x4c7   : > { %8320 = vmatpush1.bf16.msra.mxu1 %v9528_v34  ;;  %7993 = vmatprep.subr.bf16.mxu0 %v9535_v6  ;;  %v9574_v34 = vcombine.low %v1670_v5, %v1674_v20  ;;  %v9576_v6 = vcombine.low %v1671_v25, %v1675_v39  ;;  %v9585_v37 = vcombine.high %v1679_v4, %v1683_v31  ;;  %v1718_v5 = vld [vmem:[%s10614_s15 + $0x1890] sm:$0xff]  ;;  %v1719_v39 = vld [vmem:[%s10614_s15 + $0x1898] sm:$0xff] }
 0x4c8   : > { %8321 = vmatprep.subr.bf16.mxu1 %v9537_v32  ;;  %v9583_v32 = vcombine.high %v1678_v12, %v1682_v30  ;;  %v1722_v20 = vld [vmem:[%s10614_s15 + $0x18b0] sm:$0xff] }
 0x4ca   : > { %7994 = vmatpush1.bf16.msra.mxu0 %v9534_v52  ;;  %v1691_v52 = vld [vmem:[%s10614_s15 + $0x17b8] sm:$0xff] }
 0x4cb   : > { %8322 = vmatpush1.bf16.msra.mxu1 %v9536_v28  ;;  %7995 = vmatprep.subr.bf16.mxu0 %v9543_v56  ;;  %v9582_v28 = vcombine.low %v1678_v12, %v1682_v30  ;;  %v9584_v56 = vcombine.low %v1679_v4, %v1683_v31  ;;  %v9593_v58 = vcombine.high %v1687_v49, %v1691_v52  ;;  %v1726_v30 = vld [vmem:[%s10614_s15 + $0x18d0] sm:$0xff]  ;;  %v1727_v31 = vld [vmem:[%s10614_s15 + $0x18d8] sm:$0xff] }
 0x4cc   : > { %8323 = vmatprep.subr.bf16.mxu1 %v9545_v33  ;;  %v9591_v33 = vcombine.high %v1686_v19, %v1690_v48  ;;  %v1730_v4 = vld [vmem:[%s10614_s15 + $0x18f0] sm:$0xff] }
 0x4ce   : > { %7996 = vmatpush1.bf16.msra.mxu0 %v9542_v62  ;;  %v1699_v62 = vld [vmem:[%s10614_s15 + $0x17f8] sm:$0xff] }
 0x4cf   : > { %8324 = vmatpush1.bf16.msra.mxu1 %v9544_v1  ;;  %7997 = vmatprep.subr.bf16.mxu0 %v9551_v44  ;;  %v9590_v1 = vcombine.low %v1686_v19, %v1690_v48  ;;  %v9592_v44 = vcombine.low %v1687_v49, %v1691_v52  ;;  %v9601_v54 = vcombine.high %v1695_v61, %v1699_v62  ;;  %v1738_v19 = vld [vmem:[%s10614_s15 + $0x1930] sm:$0xff]  ;;  %v1735_v48 = vld [vmem:[%s10614_s15 + $0x1918] sm:$0xff] }
 0x4d0   : > { %8325 = vmatprep.subr.bf16.mxu1 %v9553_v46  ;;  %v9599_v46 = vcombine.high %v1694_v59, %v1698_v7  ;;  %v1739_v49 = vld [vmem:[%s10614_s15 + $0x1938] sm:$0xff]  ;;  %v9630_v52 = vcombine.low %v1726_v30, %v1730_v4 }
 0x4d2   : > { %7998 = vmatpush1.bf16.msra.mxu0 %v9550_v13  ;;  %v1707_v13 = vld [vmem:[%s10614_s15 + $0x1838] sm:$0xff] }
 0x4d3   : > { %8326 = vmatpush1.bf16.msra.mxu1 %v9552_v29  ;;  %7999 = vmatprep.subr.bf16.mxu0 %v9559_v14  ;;  %v9598_v29 = vcombine.low %v1694_v59, %v1698_v7  ;;  %v9600_v14 = vcombine.low %v1695_v61, %v1699_v62  ;;  %v9609_v43 = vcombine.high %v1703_v40, %v1707_v13  ;;  %v1746_v59 = vld [vmem:[%s10614_s15 + $0x1970] sm:$0xff]  ;;  %v1743_v7 = vld [vmem:[%s10614_s15 + $0x1958] sm:$0xff] }
 0x4d4   : > { %8327 = vmatprep.subr.bf16.mxu1 %v9561_v42  ;;  %v9607_v42 = vcombine.high %v1702_v8, %v1706_v11  ;;  %v1747_v61 = vld [vmem:[%s10614_s15 + $0x1978] sm:$0xff]  ;;  %v1754_v8 = vld [vmem:[%s10614_s15 + $0x19b0] sm:$0xff] }
 0x4d5   : > { %v1751_v11 = vld [vmem:[%s10614_s15 + $0x1998] sm:$0xff] }
 0x4d6   : > { %8000 = vmatpush1.bf16.msra.mxu0 %v9558_v63  ;;  %v1711_v63 = vld [vmem:[%s10614_s15 + $0x1858] sm:$0xff] }
 0x4d7   : > { %8328 = vmatpush1.bf16.msra.mxu1 %v9560_v2  ;;  %8001 = vmatprep.subr.bf16.mxu0 %v9567_v0  ;;  %v1715_v2 = vld [vmem:[%s10614_s15 + $0x1878] sm:$0xff]  ;;  %v9608_v0 = vcombine.low %v1703_v40, %v1707_v13 }
 0x4d8   : > { %8329 = vmatprep.subr.bf16.mxu1 %v9569_v10  ;;  %v9615_v10 = vcombine.high %v1710_v15, %v1714_v18  ;;  %v9617_v25 = vcombine.high %v1711_v63, %v1715_v2  ;;  %v1755_v40 = vld [vmem:[%s10614_s15 + $0x19b8] sm:$0xff] }
 0x4da   : > { %8002 = vmatpush1.bf16.msra.mxu0 %v9566_v23  ;;  %v1723_v23 = vld [vmem:[%s10614_s15 + $0x18b8] sm:$0xff] }
 0x4db   : > { %8330 = vmatpush1.bf16.msra.mxu1 %v9568_v24  ;;  %8003 = vmatprep.subr.bf16.mxu0 %v9575_v26  ;;  %v9614_v24 = vcombine.low %v1710_v15, %v1714_v18  ;;  %v9616_v26 = vcombine.low %v1711_v63, %v1715_v2  ;;  %v9625_v12 = vcombine.high %v1719_v39, %v1723_v23  ;;  %v1762_v15 = vld [vmem:[%s10614_s15 + $0x19f0] sm:$0xff]  ;;  %v1759_v18 = vld [vmem:[%s10614_s15 + $0x19d8] sm:$0xff] }
 0x4dc   : > { %8331 = vmatprep.subr.bf16.mxu1 %v9577_v22  ;;  %v9623_v22 = vcombine.high %v1718_v5, %v1722_v20  ;;  %v9656_v2 = vcombine.low %v1751_v11, %v1755_v40 }
 0x4de   : > { %8004 = vmatpush1.bf16.msra.mxu0 %v9574_v34  ;;  %v9622_v34 = vcombine.low %v1718_v5, %v1722_v20  ;;  %v1766_v5 = vld [vmem:[%s10614_s15 + $0x1a10] sm:$0xff] }
 0x4df   : > { %8332 = vmatpush1.bf16.msra.mxu1 %v9576_v6  ;;  %8005 = vmatprep.subr.bf16.mxu0 %v9583_v32  ;;  %v9624_v6 = vcombine.low %v1719_v39, %v1723_v23  ;;  %v9631_v32 = vcombine.high %v1726_v30, %v1730_v4  ;;  %v1770_v20 = vld [vmem:[%s10614_s15 + $0x1a30] sm:$0xff]  ;;  %v1771_v39 = vld [vmem:[%s10614_s15 + $0x1a38] sm:$0xff] }
 0x4e0   : > { %8333 = vmatprep.subr.bf16.mxu1 %v9585_v37  ;;  %v1734_v37 = vld [vmem:[%s10614_s15 + $0x1910] sm:$0xff]  ;;  %v1775_v4 = vld [vmem:[%s10614_s15 + $0x1a58] sm:$0xff] }
 0x4e1   : > { %v9638_v62 = vcombine.low %v1734_v37, %v1738_v19  ;;  %v1778_v30 = vld [vmem:[%s10614_s15 + $0x1a70] sm:$0xff] }
 0x4e2   : > { %8006 = vmatpush1.bf16.msra.mxu0 %v9582_v28 }
 0x4e3   : > { %8334 = vmatpush1.bf16.msra.mxu1 %v9584_v56  ;;  %8007 = vmatprep.subr.bf16.mxu0 %v9591_v33  ;;  %v9639_v56 = vcombine.high %v1734_v37, %v1738_v19  ;;  %v9641_v33 = vcombine.high %v1735_v48, %v1739_v49  ;;  %v1786_v37 = vld [vmem:[%s10614_s15 + $0x1ab0] sm:$0xff]  ;;  %v1783_v19 = vld [vmem:[%s10614_s15 + $0x1a98] sm:$0xff] }
 0x4e4   : > { %8335 = vmatprep.subr.bf16.mxu1 %v9593_v58  ;;  %v1742_v58 = vld [vmem:[%s10614_s15 + $0x1950] sm:$0xff] }
 0x4e5   : > { %v9646_v13 = vcombine.low %v1742_v58, %v1746_v59 }
 0x4e6   : > { %8008 = vmatpush1.bf16.msra.mxu0 %v9590_v1  ;;  %v9640_v1 = vcombine.low %v1735_v48, %v1739_v49  ;;  %v1787_v48 = vld [vmem:[%s10614_s15 + $0x1ab8] sm:$0xff] }
 0x4e7   : > { %8336 = vmatpush1.bf16.msra.mxu1 %v9592_v44  ;;  %8009 = vmatprep.subr.bf16.mxu0 %v9599_v46  ;;  %v9647_v44 = vcombine.high %v1742_v58, %v1746_v59  ;;  %v9649_v46 = vcombine.high %v1743_v7, %v1747_v61  ;;  %v1794_v58 = vld [vmem:[%s10614_s15 + $0x1af0] sm:$0xff]  ;;  %v1791_v59 = vld [vmem:[%s10614_s15 + $0x1ad8] sm:$0xff] }
 0x4e8   : > { %8337 = vmatprep.subr.bf16.mxu1 %v9601_v54  ;;  %v1750_v54 = vld [vmem:[%s10614_s15 + $0x1990] sm:$0xff] }
 0x4e9   : > { %v9654_v63 = vcombine.low %v1750_v54, %v1754_v8 }
 0x4ea   : > { %8010 = vmatpush1.bf16.msra.mxu0 %v9598_v29  ;;  %v9648_v29 = vcombine.low %v1743_v7, %v1747_v61  ;;  %v1795_v7 = vld [vmem:[%s10614_s15 + $0x1af8] sm:$0xff] }
 0x4eb   : > { %8338 = vmatpush1.bf16.msra.mxu1 %v9600_v14  ;;  %8020 = vmatprep.subr.bf16.mxu0 %v9607_v42  ;;  %v9655_v14 = vcombine.high %v1750_v54, %v1754_v8  ;;  %v9657_v42 = vcombine.high %v1751_v11, %v1755_v40  ;;  %v1802_v54 = vld [vmem:[%s10614_s15 + $0x1b30] sm:$0xff]  ;;  %v1799_v8 = vld [vmem:[%s10614_s15 + $0x1b18] sm:$0xff] }
 0x4ec   : > { %8348 = vmatprep.subr.bf16.mxu1 %v9609_v43  ;;  %v1758_v43 = vld [vmem:[%s10614_s15 + $0x19d0] sm:$0xff]  ;;  %v1803_v11 = vld [vmem:[%s10614_s15 + $0x1b38] sm:$0xff] }
 0x4ed   : > { %8012 = vmatmul.mubr.bf16.vlgmr.msra.gmra.mrb[12].mxu0 %v11205_v21  ;;  %v9662_v23 = vcombine.low %v1758_v43, %v1762_v15 }
 0x4ee   : > { %8340 = vmatmul.mubr.bf16.vlgmr.msra.gmra.mrb[28].mxu1 %v11205_v21  ;;  %8021 = vmatpush1.bf16.msra.mxu0 %v9606_v57  ;;  %v1731_v21 = vld [vmem:[%s10614_s15 + $0x18f8] sm:$0xff] }
 0x4ef   : > { %8052 = vmatprep.mubr.bf16.mxu0 %v11209_v27  ;;  %8349 = vmatpush1.bf16.msra.mxu1 %v9608_v0  ;;  %v9632_v28 = vcombine.low %v1727_v31, %v1731_v21  ;;  %v1763_v57 = vld [vmem:[%s10614_s15 + $0x19f8] sm:$0xff]  ;;  %v9663_v0 = vcombine.high %v1758_v43, %v1762_v15  ;;  %v1810_v43 = vld [vmem:[%s10614_s15 + $0x1b70] sm:$0xff] }
 0x4f0   : > { %8380 = vmatprep.mubr.bf16.mxu1 %v11209_v27  ;;  %8022 = vmatprep.subr.bf16.mxu0 %v9615_v10  ;;  %v9633_v27 = vcombine.high %v1727_v31, %v1731_v21  ;;  %v9665_v10 = vcombine.high %v1759_v18, %v1763_v57  ;;  %v1779_v31 = vld [vmem:[%s10614_s15 + $0x1a78] sm:$0xff]  ;;  %v9670_v21 = vcombine.low %v1766_v5, %v1770_v20 }
 0x4f1   : > { %8350 = vmatprep.subr.bf16.mxu1 %v9617_v25  ;;  %v1767_v25 = vld [vmem:[%s10614_s15 + $0x1a18] sm:$0xff] }
 0x4f2   : > { %8023 = vmatpush1.bf16.msra.mxu0 %v9614_v24  ;;  %v9664_v24 = vcombine.low %v1759_v18, %v1763_v57  ;;  %v1807_v15 = vld [vmem:[%s10614_s15 + $0x1b58] sm:$0xff] }
 0x4f3   : > { %8351 = vmatpush1.bf16.msra.mxu1 %v9616_v26  ;;  %8024 = vmatprep.subr.bf16.mxu0 %v9623_v22  ;;  %v9671_v26 = vcombine.high %v1766_v5, %v1770_v20  ;;  %v9673_v22 = vcombine.high %v1767_v25, %v1771_v39  ;;  %v1811_v18 = vld [vmem:[%s10614_s15 + $0x1b78] sm:$0xff]  ;;  %v1818_v5 = vld [vmem:[%s10614_s15 + $0x1bb0] sm:$0xff] }
 0x4f4   : > { %8352 = vmatprep.subr.bf16.mxu1 %v9625_v12  ;;  %v1774_v12 = vld [vmem:[%s10614_s15 + $0x1a50] sm:$0xff]  ;;  %v1815_v20 = vld [vmem:[%s10614_s15 + $0x1b98] sm:$0xff] }
 0x4f5   : > { %v9678_v49 = vcombine.low %v1774_v12, %v1778_v30 }
 0x4f6   : > { %8025 = vmatpush1.bf16.msra.mxu0 %v9622_v34  ;;  %v9672_v34 = vcombine.low %v1767_v25, %v1771_v39  ;;  %v1819_v25 = vld [vmem:[%s10614_s15 + $0x1bb8] sm:$0xff] }
 0x4f7   : > { %8353 = vmatpush1.bf16.msra.mxu1 %v9624_v6  ;;  %8026 = vmatprep.subr.bf16.mxu0 %v9631_v32  ;;  %v9679_v6 = vcombine.high %v1774_v12, %v1778_v30  ;;  %v9681_v32 = vcombine.high %v1775_v4, %v1779_v31  ;;  %v1826_v12 = vld [vmem:[%s10614_s15 + $0x1bf0] sm:$0xff]  ;;  %v1823_v30 = vld [vmem:[%s10614_s15 + $0x1bd8] sm:$0xff] }
 0x4f8   : > { %8354 = vmatprep.subr.bf16.mxu1 %v9633_v27  ;;  %v1782_v27 = vld [vmem:[%s10614_s15 + $0x1a90] sm:$0xff] }
 0x4f9   : > { %v9686_v61 = vcombine.low %v1782_v27, %v1786_v37 }
 0x4fa   : > { %8027 = vmatpush1.bf16.msra.mxu0 %v9630_v52  ;;  %v9680_v52 = vcombine.low %v1775_v4, %v1779_v31  ;;  %v1827_v4 = vld [vmem:[%s10614_s15 + $0x1bf8] sm:$0xff] }
 0x4fb   : > { %8355 = vmatpush1.bf16.msra.mxu1 %v9632_v28  ;;  %8028 = vmatprep.subr.bf16.mxu0 %v9639_v56  ;;  %v9687_v28 = vcombine.high %v1782_v27, %v1786_v37  ;;  %v9689_v56 = vcombine.high %v1783_v19, %v1787_v48  ;;  %v1834_v27 = vld [vmem:[%s10614_s15 + $0x1c30] sm:$0xff]  ;;  %v1831_v37 = vld [vmem:[%s10614_s15 + $0x1c18] sm:$0xff] }
 0x4fc   : > { %8356 = vmatprep.subr.bf16.mxu1 %v9641_v33  ;;  %v1790_v33 = vld [vmem:[%s10614_s15 + $0x1ad0] sm:$0xff] }
 0x4fd   : > { %v9694_v40 = vcombine.low %v1790_v33, %v1794_v58 }
 0x4fe   : > { %8029 = vmatpush1.bf16.msra.mxu0 %v9638_v62  ;;  %v9688_v62 = vcombine.low %v1783_v19, %v1787_v48  ;;  %v1835_v19 = vld [vmem:[%s10614_s15 + $0x1c38] sm:$0xff] }
 0x4ff   : > { %8357 = vmatpush1.bf16.msra.mxu1 %v9640_v1  ;;  %8030 = vmatprep.subr.bf16.mxu0 %v9647_v44  ;;  %v9695_v1 = vcombine.high %v1790_v33, %v1794_v58  ;;  %v9697_v44 = vcombine.high %v1791_v59, %v1795_v7  ;;  %v1842_v33 = vld [vmem:[%s10614_s15 + $0x1c70] sm:$0xff] }
 0x500   : > { %8358 = vmatprep.subr.bf16.mxu1 %v9649_v46  ;;  %v1798_v46 = vld [vmem:[%s10614_s15 + $0x1b10] sm:$0xff] }
 0x501   : > { %v9702_v57 = vcombine.low %v1798_v46, %v1802_v54 }
 0x502   : > { %8031 = vmatpush1.bf16.msra.mxu0 %v9646_v13  ;;  %v9696_v13 = vcombine.low %v1791_v59, %v1795_v7  ;;  %v1839_v59 = vld [vmem:[%s10614_s15 + $0x1c58] sm:$0xff] }
 0x503   : > { %8359 = vmatpush1.bf16.msra.mxu1 %v9648_v29  ;;  %8032 = vmatprep.subr.bf16.mxu0 %v9655_v14  ;;  %v9703_v29 = vcombine.high %v1798_v46, %v1802_v54  ;;  %v9705_v14 = vcombine.high %v1799_v8, %v1803_v11  ;;  %v1843_v7 = vld [vmem:[%s10614_s15 + $0x1c78] sm:$0xff] }
 0x504   : > { %8360 = vmatprep.subr.bf16.mxu1 %v9657_v42  ;;  %v1806_v42 = vld [vmem:[%s10614_s15 + $0x1b50] sm:$0xff]  ;;  %v9745_v46 = vcombine.high %v1839_v59, %v1843_v7  ;;  %v1847_v54 = vld [vmem:[%s10614_s15 + $0x1c98] sm:$0xff] }
 0x505   : > { %v9710_v39 = vcombine.low %v1806_v42, %v1810_v43 }
 0x506   : > { %8033 = vmatpush1.bf16.msra.mxu0 %v9654_v63  ;;  %v9704_v63 = vcombine.low %v1799_v8, %v1803_v11  ;;  %v1851_v8 = vld [vmem:[%s10614_s15 + $0x1cb8] sm:$0xff] }
 0x507   : > { %8361 = vmatpush1.bf16.msra.mxu1 %v9656_v2  ;;  %8034 = vmatprep.subr.bf16.mxu0 %v9663_v0  ;;  %v9711_v2 = vcombine.high %v1806_v42, %v1810_v43  ;;  %v9713_v0 = vcombine.high %v1807_v15, %v1811_v18  ;;  %v1858_v42 = vld [vmem:[%s10614_s15 + $0x1cf0] sm:$0xff]  ;;  %v1855_v43 = vld [vmem:[%s10614_s15 + $0x1cd8] sm:$0xff] }
 0x508   : > { %8362 = vmatprep.subr.bf16.mxu1 %v9665_v10  ;;  %v1814_v10 = vld [vmem:[%s10614_s15 + $0x1b90] sm:$0xff] }
 0x509   : > { %v9718_v31 = vcombine.low %v1814_v10, %v1818_v5 }
 0x50a   : > { %8035 = vmatpush1.bf16.msra.mxu0 %v9662_v23  ;;  %v9712_v23 = vcombine.low %v1807_v15, %v1811_v18  ;;  %v9752_v18 = vcombine.low %v1847_v54, %v1851_v8 }
 0x50b   : > { %8363 = vmatpush1.bf16.msra.mxu1 %v9664_v24  ;;  %8036 = vmatprep.subr.bf16.mxu0 %v9671_v26  ;;  %v9719_v24 = vcombine.high %v1814_v10, %v1818_v5  ;;  %v9721_v26 = vcombine.high %v1815_v20, %v1819_v25  ;;  %v1867_v10 = vld [vmem:[%s10614_s15 + $0x1d38] sm:$0xff] }
 0x50c   : > { %8364 = vmatprep.subr.bf16.mxu1 %v9673_v22  ;;  %v1822_v22 = vld [vmem:[%s10614_s15 + $0x1bd0] sm:$0xff] }
 0x50d   : > { %v9726_v48 = vcombine.low %v1822_v22, %v1826_v12 }
 0x50e   : > { %8037 = vmatpush1.bf16.msra.mxu0 %v9670_v21  ;;  %v9720_v21 = vcombine.low %v1815_v20, %v1819_v25 }
 0x50f   : > { %8365 = vmatpush1.bf16.msra.mxu1 %v9672_v34  ;;  %8038 = vmatprep.subr.bf16.mxu0 %v9679_v6  ;;  %v9727_v34 = vcombine.high %v1822_v22, %v1826_v12  ;;  %v9729_v6 = vcombine.high %v1823_v30, %v1827_v4  ;;  %v1875_v22 = vld [vmem:[%s10614_s15 + $0x1d78] sm:$0xff] }
 0x510   : > { %8366 = vmatprep.subr.bf16.mxu1 %v9681_v32  ;;  %v1830_v32 = vld [vmem:[%s10614_s15 + $0x1c10] sm:$0xff] }
 0x511   : > { %v9734_v58 = vcombine.low %v1830_v32, %v1834_v27 }
 0x512   : > { %8039 = vmatpush1.bf16.msra.mxu0 %v9678_v49  ;;  %v9728_v49 = vcombine.low %v1823_v30, %v1827_v4 }
 0x513   : > { %8367 = vmatpush1.bf16.msra.mxu1 %v9680_v52  ;;  %8040 = vmatprep.subr.bf16.mxu0 %v9687_v28  ;;  %v9735_v52 = vcombine.high %v1830_v32, %v1834_v27  ;;  %v9737_v28 = vcombine.high %v1831_v37, %v1835_v19  ;;  %v1883_v32 = vld [vmem:[%s10614_s15 + $0x1db8] sm:$0xff] }
 0x514   : > { %8368 = vmatprep.subr.bf16.mxu1 %v9689_v56  ;;  %v1838_v56 = vld [vmem:[%s10614_s15 + $0x1c50] sm:$0xff] }
 0x515   : > { %v9742_v11 = vcombine.low %v1838_v56, %v1842_v33 }
 0x516   : > { %8041 = vmatpush1.bf16.msra.mxu0 %v9686_v61  ;;  %v9736_v61 = vcombine.low %v1831_v37, %v1835_v19 }
 0x517   : > { %8369 = vmatpush1.bf16.msra.mxu1 %v9688_v62  ;;  %8042 = vmatprep.subr.bf16.mxu0 %v9695_v1  ;;  %v9743_v62 = vcombine.high %v1838_v56, %v1842_v33  ;;  %v1846_v1 = vld [vmem:[%s10614_s15 + $0x1c90] sm:$0xff]  ;;  %v1891_v56 = vld [vmem:[%s10614_s15 + $0x1df8] sm:$0xff] }
 0x518   : > { %8370 = vmatprep.subr.bf16.mxu1 %v9697_v44  ;;  %v1850_v44 = vld [vmem:[%s10614_s15 + $0x1cb0] sm:$0xff] }
 0x519   : > { %v9750_v15 = vcombine.low %v1846_v1, %v1850_v44 }
 0x51a   : > { %8043 = vmatpush1.bf16.msra.mxu0 %v9694_v40  ;;  %v9744_v40 = vcombine.low %v1839_v59, %v1843_v7 }
 0x51b   : > { %8371 = vmatpush1.bf16.msra.mxu1 %v9696_v13  ;;  %8044 = vmatprep.subr.bf16.mxu0 %v9703_v29  ;;  %v9751_v13 = vcombine.high %v1846_v1, %v1850_v44  ;;  %v9753_v29 = vcombine.high %v1847_v54, %v1851_v8  ;;  %v1895_v1 = vld [vmem:[%s10614_s15 + $0x1e18] sm:$0xff] }
 0x51c   : > { %8372 = vmatprep.subr.bf16.mxu1 %v9705_v14  ;;  %v1854_v14 = vld [vmem:[%s10614_s15 + $0x1cd0] sm:$0xff]  ;;  %v1899_v44 = vld [vmem:[%s10614_s15 + $0x1e38] sm:$0xff] }
 0x51d   : > { %v9758_v5 = vcombine.low %v1854_v14, %v1858_v42 }
 0x51e   : > { %8045 = vmatpush1.bf16.msra.mxu0 %v9702_v57  ;;  %v9759_v57 = vcombine.high %v1854_v14, %v1858_v42  ;;  %v1907_v14 = vld [vmem:[%s10614_s15 + $0x1e78] sm:$0xff] }
 0x51f   : > { %8373 = vmatpush1.bf16.msra.mxu1 %v9704_v63  ;;  %8046 = vmatprep.subr.bf16.mxu0 %v9711_v2  ;;  %v1862_v63 = vld [vmem:[%s10614_s15 + $0x1d10] sm:$0xff] }
 0x520   : > { %8374 = vmatprep.subr.bf16.mxu1 %v9713_v0  ;;  %v1866_v2 = vld [vmem:[%s10614_s15 + $0x1d30] sm:$0xff]  ;;  %v1863_v0 = vld [vmem:[%s10614_s15 + $0x1d18] sm:$0xff] }
 0x521   : > { %v9767_v25 = vcombine.high %v1862_v63, %v1866_v2  ;;  %v9766_v12 = vcombine.low %v1862_v63, %v1866_v2  ;;  %v9768_v30 = vcombine.low %v1863_v0, %v1867_v10  ;;  %v1915_v63 = vld [vmem:[%s10614_s15 + $0x1eb8] sm:$0xff] }
 0x522   : > { %8047 = vmatpush1.bf16.msra.mxu0 %v9710_v39  ;;  %v9769_v39 = vcombine.high %v1863_v0, %v1867_v10 }
 0x523   : > { %8375 = vmatpush1.bf16.msra.mxu1 %v9712_v23  ;;  %8048 = vmatprep.subr.bf16.mxu0 %v9719_v24  ;;  %v1870_v23 = vld [vmem:[%s10614_s15 + $0x1d50] sm:$0xff] }
 0x524   : > { %8376 = vmatprep.subr.bf16.mxu1 %v9721_v26  ;;  %v1874_v24 = vld [vmem:[%s10614_s15 + $0x1d70] sm:$0xff]  ;;  %v1871_v26 = vld [vmem:[%s10614_s15 + $0x1d58] sm:$0xff] }
 0x525   : > { %v9775_v4 = vcombine.high %v1870_v23, %v1874_v24  ;;  %v9774_v27 = vcombine.low %v1870_v23, %v1874_v24  ;;  %v9776_v37 = vcombine.low %v1871_v26, %v1875_v22  ;;  %v1923_v23 = vld [vmem:[%s10614_s15 + $0x1ef8] sm:$0xff] }
 0x526   : > { %8049 = vmatpush1.bf16.msra.mxu0 %v9718_v31  ;;  %v9777_v31 = vcombine.high %v1871_v26, %v1875_v22 }
 0x527   : > { %8377 = vmatpush1.bf16.msra.mxu1 %v9720_v21  ;;  %8050 = vmatprep.subr.bf16.mxu0 %v9727_v34  ;;  %v1878_v21 = vld [vmem:[%s10614_s15 + $0x1d90] sm:$0xff] }
 0x528   : > { %8378 = vmatprep.subr.bf16.mxu1 %v9729_v6  ;;  %v1882_v34 = vld [vmem:[%s10614_s15 + $0x1db0] sm:$0xff]  ;;  %v1879_v6 = vld [vmem:[%s10614_s15 + $0x1d98] sm:$0xff] }
 0x529   : > { %v9783_v19 = vcombine.high %v1878_v21, %v1882_v34  ;;  %v9782_v33 = vcombine.low %v1878_v21, %v1882_v34  ;;  %v1931_v21 = vld [vmem:[%s10614_s15 + $0x1f38] sm:$0xff] }
 0x52a   : > { %8051 = vmatpush1.bf16.msra.mxu0 %v9726_v48  ;;  %v9785_v48 = vcombine.high %v1879_v6, %v1883_v32 }
 0x52b   : > { %8379 = vmatpush1.bf16.msra.mxu1 %v9728_v49  ;;  %8061 = vmatprep.subr.bf16.mxu0 %v9735_v52  ;;  %v1886_v49 = vld [vmem:[%s10614_s15 + $0x1dd0] sm:$0xff] }
 0x52c   : > { %8389 = vmatprep.subr.bf16.mxu1 %v9737_v28  ;;  %v1890_v52 = vld [vmem:[%s10614_s15 + $0x1df0] sm:$0xff]  ;;  %v1887_v28 = vld [vmem:[%s10614_s15 + $0x1dd8] sm:$0xff] }
 0x52d   : > { %8053 = vmatmul.mubr.bf16.vlgmr.msra.gmra.mrb[12].mxu0 %v11279_v35  ;;  %v9791_v59 = vcombine.high %v1886_v49, %v1890_v52  ;;  %v9793_v7 = vcombine.high %v1887_v28, %v1891_v56  ;;  %v9792_v54 = vcombine.low %v1887_v28, %v1891_v56 }
 0x52e   : > { %8381 = vmatmul.mubr.bf16.vlgmr.msra.gmra.mrb[28].mxu1 %v11279_v35  ;;  %8062 = vmatpush1.bf16.msra.mxu0 %v9734_v58  ;;  %v1859_v35 = vld [vmem:[%s10614_s15 + $0x1cf8] sm:$0xff]  ;;  %v9784_v58 = vcombine.low %v1879_v6, %v1883_v32 }
 0x52f   : > { %8093 = vmatprep.mubr.bf16.mxu0 %v11283_v38  ;;  %8390 = vmatpush1.bf16.msra.mxu1 %v9736_v61  ;;  %v9760_v20 = vcombine.low %v1855_v43, %v1859_v35  ;;  %v1894_v61 = vld [vmem:[%s10614_s15 + $0x1e10] sm:$0xff] }
 0x530   : > { %8421 = vmatprep.mubr.bf16.mxu1 %v11283_v38  ;;  %8063 = vmatprep.subr.bf16.mxu0 %v9743_v62  ;;  %v9761_v38 = vcombine.high %v1855_v43, %v1859_v35  ;;  %v1898_v62 = vld [vmem:[%s10614_s15 + $0x1e30] sm:$0xff]  ;;  %v9800_v43 = vcombine.low %v1895_v1, %v1899_v44 }
 0x531   : > { %8391 = vmatprep.subr.bf16.mxu1 %v9745_v46  ;;  %v9790_v46 = vcombine.low %v1886_v49, %v1890_v52  ;;  %v9799_v8 = vcombine.high %v1894_v61, %v1898_v62  ;;  %v9798_v42 = vcombine.low %v1894_v61, %v1898_v62  ;;  %v1939_v49 = vld [vmem:[%s10614_s15 + $0x1f78] sm:$0xff] }
 0x532   : > { %8064 = vmatpush1.bf16.msra.mxu0 %v9742_v11  ;;  %v9801_v11 = vcombine.high %v1895_v1, %v1899_v44  ;;  %v1943_v61 = vld [vmem:[%s10614_s15 + $0x1f98] sm:$0xff] }
 0x533   : > { %8392 = vmatpush1.bf16.msra.mxu1 %v9744_v40  ;;  %8065 = vmatprep.subr.bf16.mxu0 %v9751_v13  ;;  %v1902_v40 = vld [vmem:[%s10614_s15 + $0x1e50] sm:$0xff]  ;;  %v1947_v62 = vld [vmem:[%s10614_s15 + $0x1fb8] sm:$0xff] }
 0x534   : > { %8393 = vmatprep.subr.bf16.mxu1 %v9753_v29  ;;  %v1906_v13 = vld [vmem:[%s10614_s15 + $0x1e70] sm:$0xff]  ;;  %v1903_v29 = vld [vmem:[%s10614_s15 + $0x1e58] sm:$0xff] }
 0x535   : > { %v9807_v35 = vcombine.high %v1902_v40, %v1906_v13  ;;  %v9806_v2 = vcombine.low %v1902_v40, %v1906_v13  ;;  %v9808_v0 = vcombine.low %v1903_v29, %v1907_v14  ;;  %v1954_v40 = vld [vmem:[%s10614_s15 + $0x1ff0] sm:$0xff]  ;;  %v1951_v13 = vld [vmem:[%s10614_s15 + $0x1fd8] sm:$0xff] }
 0x536   : > { %8066 = vmatpush1.bf16.msra.mxu0 %v9750_v15  ;;  %v9809_v15 = vcombine.high %v1903_v29, %v1907_v14  ;;  %v1955_v29 = vld [vmem:[%s10614_s15 + $0x1ff8] sm:$0xff] }
 0x537   : > { %8394 = vmatpush1.bf16.msra.mxu1 %v9752_v18  ;;  %8067 = vmatprep.subr.bf16.mxu0 %v9759_v57  ;;  %v1910_v18 = vld [vmem:[%s10614_s15 + $0x1e90] sm:$0xff] }
 0x538   : > { %8395 = vmatprep.subr.bf16.mxu1 %v9761_v38  ;;  %v1914_v57 = vld [vmem:[%s10614_s15 + $0x1eb0] sm:$0xff]  ;;  %v1911_v38 = vld [vmem:[%s10614_s15 + $0x1e98] sm:$0xff] }
 0x539   : > { %v9815_v10 = vcombine.high %v1910_v18, %v1914_v57  ;;  %v9814_v24 = vcombine.low %v1910_v18, %v1914_v57  ;;  %v9816_v26 = vcombine.low %v1911_v38, %v1915_v63  ;;  %v8446_v18 = vld [vmem:[%s10622_s17] sm:$0x77]  ;;  %v9856_v57 = vcombine.low %v1951_v13, %v1955_v29 }
 0x53a   : > { %8068 = vmatpush1.bf16.msra.mxu0 %v9758_v5  ;;  %v9817_v5 = vcombine.high %v1911_v38, %v1915_v63  ;;  %v9859_v38 = vcombine.high %v8446_v18, %v8446_v18 }
 0x53b   : > { %8396 = vmatpush1.bf16.msra.mxu1 %v9760_v20  ;;  %8069 = vmatprep.subr.bf16.mxu0 %v9767_v25  ;;  %v1918_v20 = vld [vmem:[%s10614_s15 + $0x1ed0] sm:$0xff] }
 0x53c   : > { %8397 = vmatprep.subr.bf16.mxu1 %v9769_v39  ;;  %v1922_v25 = vld [vmem:[%s10614_s15 + $0x1ef0] sm:$0xff]  ;;  %v1919_v39 = vld [vmem:[%s10614_s15 + $0x1ed8] sm:$0xff] }
 0x53d   : > { %v9823_v22 = vcombine.high %v1918_v20, %v1922_v25  ;;  %v9822_v34 = vcombine.low %v1918_v20, %v1922_v25  ;;  %v9824_v6 = vcombine.low %v1919_v39, %v1923_v23 }
 0x53e   : > { %8070 = vmatpush1.bf16.msra.mxu0 %v9766_v12  ;;  %v9825_v12 = vcombine.high %v1919_v39, %v1923_v23 }
 0x53f   : > { %8398 = vmatpush1.bf16.msra.mxu1 %v9768_v30  ;;  %8071 = vmatprep.subr.bf16.mxu0 %v9775_v4  ;;  %v1926_v30 = vld [vmem:[%s10614_s15 + $0x1f10] sm:$0xff] }
 0x540   : > { %8399 = vmatprep.subr.bf16.mxu1 %v9777_v31  ;;  %v1930_v4 = vld [vmem:[%s10614_s15 + $0x1f30] sm:$0xff]  ;;  %v1927_v31 = vld [vmem:[%s10614_s15 + $0x1f18] sm:$0xff] }
 0x541   : > { %v9831_v32 = vcombine.high %v1926_v30, %v1930_v4  ;;  %v9830_v52 = vcombine.low %v1926_v30, %v1930_v4  ;;  %v9832_v28 = vcombine.low %v1927_v31, %v1931_v21 }
 0x542   : > { %8072 = vmatpush1.bf16.msra.mxu0 %v9774_v27  ;;  %v9833_v27 = vcombine.high %v1927_v31, %v1931_v21  ;;  %v8449_v31 = vld [vmem:[%s10622_s17 + $0x18] sm:$0x77] }
 0x543   : > { %8400 = vmatpush1.bf16.msra.mxu1 %v9776_v37  ;;  %8073 = vmatprep.subr.bf16.mxu0 %v9783_v19  ;;  %v1934_v37 = vld [vmem:[%s10614_s15 + $0x1f50] sm:$0xff]  ;;  %v9865_v21 = vcombine.high %v8449_v31, %v8449_v31 }
 0x544   : > { %8401 = vmatprep.subr.bf16.mxu1 %v9785_v48  ;;  %v1938_v19 = vld [vmem:[%s10614_s15 + $0x1f70] sm:$0xff]  ;;  %v1935_v48 = vld [vmem:[%s10614_s15 + $0x1f58] sm:$0xff] }
 0x545   : > { %v9839_v56 = vcombine.high %v1934_v37, %v1938_v19  ;;  %v9838_v1 = vcombine.low %v1934_v37, %v1938_v19  ;;  %v9840_v44 = vcombine.low %v1935_v48, %v1939_v49 }
 0x546   : > { %8074 = vmatpush1.bf16.msra.mxu0 %v9782_v33  ;;  %v9841_v33 = vcombine.high %v1935_v48, %v1939_v49 }
 0x547   : > { %8402 = vmatpush1.bf16.msra.mxu1 %v9784_v58  ;;  %8075 = vmatprep.subr.bf16.mxu0 %v9791_v59  ;;  %v1942_v58 = vld [vmem:[%s10614_s15 + $0x1f90] sm:$0xff] }
 0x548   : > { %8403 = vmatprep.subr.bf16.mxu1 %v9793_v7  ;;  %v1946_v59 = vld [vmem:[%s10614_s15 + $0x1fb0] sm:$0xff]  ;;  %v11893_v7 = vld [vmem:[%s10620_s11] sm:$0xff] }
 0x549   : > { %v9846_v14 = vcombine.low %v1942_v58, %v1946_v59 }
 0x54a   : > { %8076 = vmatpush1.bf16.msra.mxu0 %v9790_v46  ;;  %v9847_v46 = vcombine.high %v1942_v58, %v1946_v59 }
 0x54b   : > { %8404 = vmatpush1.bf16.msra.mxu1 %v9792_v54  ;;  %8077 = vmatprep.subr.bf16.mxu0 %v9799_v8  ;;  %v1965_v54 = vrot.slane %v11893_v7, %v10746_v47  ;;  %v9849_v8 = vcombine.high %v1943_v61, %v1947_v62 }
 0x54c   : > { %8405 = vmatprep.subr.bf16.mxu1 %v9801_v11  ;;  %v1950_v11 = vld [vmem:[%s10614_s15 + $0x1fd0] sm:$0xff] }
 0x54d   : > { %v9854_v47 = vcombine.low %v1950_v11, %v1954_v40 }
 0x54e   : > { %8078 = vmatpush1.bf16.msra.mxu0 %v9798_v42  ;;  %v9848_v42 = vcombine.low %v1943_v61, %v1947_v62  ;;  %v9864_v61 = vcombine.low %v8449_v31, %v8449_v31 }
 0x54f   : > { %8406 = vmatpush1.bf16.msra.mxu1 %v9800_v43  ;;  %8079 = vmatprep.subr.bf16.mxu0 %v9807_v35  ;;  %v9855_v43 = vcombine.high %v1950_v11, %v1954_v40  ;;  %v9872_v35 = vadd.f32 %v11588_v41, %v1965_v54 }
 0x550   : > { %8407 = vmatprep.subr.bf16.mxu1 %v9809_v15  ;;  %v9857_v15 = vcombine.high %v1951_v13, %v1955_v29 }
 0x551   : > { %v8431_v63 = vmax.f32 %v9872_v35, 0.0 }
 0x552   : > { %8080 = vmatpush1.bf16.msra.mxu0 %v9806_v2  ;;  %v1961_v2 = vrot.slane %v11893_v7, %v10741_v45 }
 0x553   : > { %8408 = vmatpush1.bf16.msra.mxu1 %v9808_v0  ;;  %8081 = vmatprep.subr.bf16.mxu0 %v9815_v10  ;;  %v8439_v41 = vpack.c.bf16 %v8431_v63, %v8431_v63  ;;  %v1973_v0 = vrot.slane %v11893_v7, %v10753_v55  ;;  %v8447_v10 = vld [vmem:[%s10622_s17 + $0x8] sm:$0x77] }
 0x554   : > { %8409 = vmatprep.subr.bf16.mxu1 %v9817_v5  ;;  %v9858_v5 = vcombine.low %v8446_v18, %v8446_v18  ;;  %v9871_v20 = vadd.f32 %v11582_v36, %v1961_v2  ;;  %v9861_v25 = vcombine.high %v8447_v10, %v8447_v10 }
 0x555   : > { %v9874_v39 = vadd.f32 %v11592_v16, %v1973_v0 }
 0x556   : > { %8082 = vmatpush1.bf16.msra.mxu0 %v9814_v24  ;;  %v8430_v23 = vmax.f32 %v9871_v20, 0.0  ;;  %v8448_v24 = vld [vmem:[%s10622_s17 + $0x10] sm:$0x77] }
 0x557   : > { %8410 = vmatpush1.bf16.msra.mxu1 %v9816_v26  ;;  %8083 = vmatprep.subr.bf16.mxu0 %v9823_v22  ;;  %v8433_v45 = vmax.f32 %v9874_v39, 0.0  ;;  %v9860_v26 = vcombine.low %v8447_v10, %v8447_v10  ;;  %v1969_v22 = vrot.slane %v11893_v7, %v10823_v17  ;;  %v9862_v30 = vcombine.low %v8448_v24, %v8448_v24 }
 0x558   : > { %8411 = vmatprep.subr.bf16.mxu1 %v9825_v12  ;;  %v8438_v55 = vpack.c.bf16 %v8430_v23, %v8430_v23  ;;  %v9863_v12 = vcombine.high %v8448_v24, %v8448_v24  ;;  %v1981_v17 = vrot.slane %v11893_v7, %v10811_v3 }
 0x559   : > { %v9873_v36 = vadd.f32 %v11586_v9, %v1969_v22 }
 0x55a   : > { %8084 = vmatpush1.bf16.msra.mxu0 %v9822_v34  ;;  %v1977_v34 = vrot.slane %v11893_v7, %v10800_v51 }
 0x55b   : > { %8412 = vmatpush1.bf16.msra.mxu1 %v9824_v6  ;;  %8085 = vmatprep.subr.bf16.mxu0 %v9831_v32  ;;  %v8432_v16 = vmax.f32 %v9873_v36, 0.0  ;;  %v1989_v6 = vrot.slane %v11893_v7, %v10850_v60  ;;  %v1985_v60 = vrot.slane %v11893_v7, %v10844_v53 }
 0x55c   : > { %8413 = vmatprep.subr.bf16.mxu1 %v9833_v27 }
 0x55d   : > { %v8440_v4 = vpack.c.bf16 %v8432_v16, %v8432_v16 }
 0x55e   : > { %8086 = vmatpush1.bf16.msra.mxu0 %v9830_v52 }
 0x55f   : > { %8414 = vmatpush1.bf16.msra.mxu1 %v9832_v28  ;;  %8087 = vmatprep.subr.bf16.mxu0 %v9839_v56 }
 0x560   : > { %8415 = vmatprep.subr.bf16.mxu1 %v9841_v33 }
 0x562   : > { %8088 = vmatpush1.bf16.msra.mxu0 %v9838_v1 }
 0x563   : > { %8416 = vmatpush1.bf16.msra.mxu1 %v9840_v44  ;;  %8089 = vmatprep.subr.bf16.mxu0 %v9847_v46 }
 0x564   : > { %8417 = vmatprep.subr.bf16.mxu1 %v9849_v8 }
 0x566   : > { %8090 = vmatpush1.bf16.msra.mxu0 %v9846_v14 }
 0x567   : > { %8418 = vmatpush1.bf16.msra.mxu1 %v9848_v42  ;;  %8091 = vmatprep.subr.bf16.mxu0 %v9855_v43 }
 0x568   : > { %8419 = vmatprep.subr.bf16.mxu1 %v9857_v15 }
 0x56a   : > { %8092 = vmatpush1.bf16.msra.mxu0 %v9854_v47 }
 0x56b   : > { %8420 = vmatpush1.bf16.msra.mxu1 %v9856_v57  ;;  %8478 = vmatprep.subr.bf16.mxu0 %v9859_v38 }
 0x56d   : > { %8094 = vmatmul.mubr.bf16.vlgmr.msra.gmra.mrb[12].mxu0 %v11352_v50 }
 0x56e   : > { %8422 = vmatmul.mubr.bf16.vlgmr.msra.gmra.mrb[28].mxu1 %v11352_v50  ;;  %8510 = vmatprep.mubr.bf16.mxu0 %v8439_v41  ;;  %v8441_v50 = vpack.c.bf16 %v8433_v45, %v8433_v45 }
 0x573   : > { %8479 = vmatpush1.bf16.xpose.msra.mxu0 %v9858_v5 }
 0x574   : > { %8518 = vmatprep.subr.bf16.mxu0 %v9861_v25 }
 0x57a   : > { %8511 = vmatmul.mubr.bf16.vlgmr.msra.gmra.mrb[16].mxu0 %v8438_v55 }
 0x57b   : > { %8550 = vmatprep.mubr.bf16.mxu0 %v8441_v50  ;;  %8519 = vmatpush1.bf16.xpose.msra.mxu0 %v9860_v26 }
 0x57c   : > { %8558 = vmatprep.subr.bf16.mxu0 %v9863_v12 }
 0x586   : > { %8551 = vmatmul.mubr.bf16.vlgmr.msra.gmra.mrb[16].mxu0 %v8440_v4 }
 0x587   : > { %8559 = vmatpush1.bf16.xpose.msra.mxu0 %v9862_v30 }
 0x588   : > { %8598 = vmatprep.subr.bf16.mxu0 %v9865_v21 }
 0x640   : > { %v8095_v32 = vpop.f32.mrb[12].mxu0 }
 0x641   : > { %v9875_v9 = vadd.f32 %v8095_v32, %v1977_v34  ;;  %v8423_v27 = vpop.f32.mrb[28].mxu1  ;;  %v8097_v37 = vpop.f32.mrb[13].mxu0 }
 0x642   : > { %v9876_v19 = vadd.f32 %v8097_v37, %v1981_v17  ;;  %v8425_v48 = vpop.f32.mrb[29].mxu1  ;;  %v8099_v49 = vpop.f32.mrb[14].mxu0  ;;  %v9877_v44 = vadd.f32 %v8423_v27, %v1985_v60 }
 0x643   : > { %v8434_v52 = vmax.f32 %v9875_v9, 0.0  ;;  %v9878_v28 = vadd.f32 %v8425_v48, %v1989_v6  ;;  %v8427_v56 = vpop.f32.mrb[30].mxu1  ;;  %v8100_v33 = vpop.f32.mrb[15].mxu0 }
 0x644   : > { %v8435_v58 = vmax.f32 %v9876_v19, 0.0  ;;  %v8428_v51 = vpop.f32.mrb[31].mxu1  ;;  %v8436_v46 = vmax.f32 %v9877_v44, 0.0 }
 0x645   : > { %v8437_v59 = vmax.f32 %v9878_v28, 0.0  ;;  %v8442_v62 = vpack.c.bf16 %v8434_v52, %v8434_v52 }
 0x646   : > { %v8443_v3 = vpack.c.bf16 %v8435_v58, %v8435_v58  ;;  %v8444_v54 = vpack.c.bf16 %v8436_v46, %v8436_v46 }
 0x647   : > { %v8445_v1 = vpack.c.bf16 %v8437_v59, %v8437_v59 }
 0x648   : > { %8590 = vmatprep.mubr.bf16.mxu0 %v8443_v3 }
 0x649   : > { %8591 = vmatmul.mubr.bf16.vlgmr.msra.gmra.mrb[16].mxu0 %v8442_v62 }
 0x64a   : > { %8599 = vmatpush1.bf16.xpose.msra.mxu0 %v9864_v61  ;;  %8630 = vmatprep.mubr.bf16.mxu0 %v8445_v1 }
 0x655   : > { %8631 = vmatmul.mubr.bf16.vlgmr.msra.gmra.mrb[16].mxu0 %v8444_v54 }
 0x728   : > { %v8632_v8 = vpop.f32.mrb[16].mxu0 }
 0x729   : > { %8639 = vst.msk [vmem:[%s383_s19] sm:$0xff] %vm8638_vm2, %v8632_v8  ;;  %v8634_v53 = vpop.f32.mrb[17].mxu0 }
 0x72a   : > { %v8635_v7 = vpop.f32.mrb[18].mxu0 }
 0x72b   : > { %v8636_v11 = vpop.f32.mrb[19].mxu0 }
 0x72c PF: > { %s11996_s24 = sld [smem:[#allocation17_spill]]  ;;  %s11997_s3 = sld [smem:[#allocation16_spill]] }
 0x72d   : > { %s11998_s23 = sld [smem:[#allocation18_spill]]  ;;  %s11999_s21 = smov %s10325_s22 }
 0x732   : > { %p21_p9 = scmp.ge.s32.totalorder %s11996_s24, 4   ;;  %s12000_s22 = smov %s11997_s3 }
 0x734   :  { %23 = sbr.rel (!%p21_p9) target bundleno = 11 (0xb), region = 121 }
 0x73b   :  { %8659 = vsyncpa [#allocation3], 1 }
 0x73c   :  { %8661 = vsyncpa [#allocation3 + $0x1], 1 }
 0x73d   :  { %8662 = vsyncpa [#allocation5], 1 }
 0x73e   :  { %8663 = vsyncpa [#allocation8], 1 }
 0x73f   :  { %8665 = vsyncpa [#allocation8 + $0x1], 1 }
 0x740   :  { %8666 = vsyncpa [#allocation11], 1 }
 0x741   :  { %8668 = vsyncpa [#allocation11 + $0x1], 1 }

</bundles_post_ra>
